<compile_context>
chip_gen: v5e
topology: v5e:2x2
jax: 0.10.0
libtpu: 0.0.40
codegen_flags: <defaults>
</compile_context>

<pallas_src>
import functools

import jax
import jax.numpy as jnp
import numpy as np
from jax.experimental import pallas as pl
from jax.experimental.pallas import tpu as pltpu

BETA = 0.5        # snn.Leaky(beta=0.5)
THR = 1.0         # snntorch default threshold
NUM_STEPS = 16    # module default


# ----------------------------------------------------------------------------
# In-kernel helpers
# ----------------------------------------------------------------------------
def _conv_pool(act_ref, b, t_ref, taps, oh, half, ytmp_ref):
    """Valid conv (banded weights) fused with a 2x2 max-pool, one batch element.

    act_ref : ref [B, H_in, W_in*C_in]   activation slab, lanes = w*C_in + c
    t_ref   : ref [KH, W_in*C_in, 256]   banded weights; even-ow output columns
              live in lanes [0,128), odd-ow in [128,256), col = (ow//2)*OC + oc
    Returns a value [oh//2, half] (half = (OW//2)*OC): pooled conv output, no bias.
    """
    y = jnp.dot(act_ref[b, 0:oh, :], t_ref[0], preferred_element_type=jnp.float32)
    for kh in range(1, taps):
        y = y + jnp.dot(act_ref[b, kh:kh + oh, :], t_ref[kh],
                        preferred_element_type=jnp.float32)
    # W-direction pool: max of the even-ow and odd-ow column halves (padding
    # lanes in both halves are exactly zero, so they never affect the result).
    yw = jnp.maximum(y[:, 0:128], y[:, 128:256])            # [oh, 128]
    # H-direction pool: stage in VMEM, read even/odd rows with sublane stride 2.
    ytmp_ref[0:oh, :] = yw
    ohp = oh // 2
    r_even = ytmp_ref[pl.ds(0, ohp, stride=2), :]
    r_odd = ytmp_ref[pl.ds(1, ohp, stride=2), :]
    return jnp.maximum(r_even, r_odd)[:, 0:half]            # [oh//2, half]


def _leaky(cur, mem_ref, b):
    """snntorch Leaky (reset-by-subtraction). Updates mem in place, returns spikes."""
    mem = mem_ref[b]
    reset = (mem > THR).astype(jnp.float32)
    mem_new = BETA * mem + cur - reset * THR
    mem_ref[b] = mem_new
    return (mem_new > THR).astype(jnp.float32)


# ----------------------------------------------------------------------------
# Fused SNN kernel: one grid step == one timestep
# ----------------------------------------------------------------------------
def _snn_kernel(x_ref, t1_ref, b1_ref, t2_ref, b2_ref, t3_ref, b3_ref,
                wl_ref, bl_ref,
                out_ref,
                cur1_ref, mem1_ref, spk1_ref, mem2_ref, spk2_ref, mem3_ref,
                mem4_ref, ytmp_ref, *, batch):
    t = pl.program_id(0)

    @pl.when(t == 0)
    def _init():
        mem1_ref[...] = jnp.zeros_like(mem1_ref)
        mem2_ref[...] = jnp.zeros_like(mem2_ref)
        mem3_ref[...] = jnp.zeros_like(mem3_ref)
        mem4_ref[...] = jnp.zeros_like(mem4_ref)
        # The module feeds the same static image every step, so conv1 + pool is
        # time-invariant: compute it once and keep it resident in VMEM.
        for b in range(batch):
            cur1_ref[b] = (_conv_pool(x_ref, b, t1_ref, 5, 60, 120, ytmp_ref)
                           + b1_ref[...])

    # -------- one timestep --------
    # Layer 1: Leaky fed by the precomputed pooled-conv1 current.
    for b in range(batch):
        spk1_ref[b] = _leaky(cur1_ref[b], mem1_ref, b)       # [30, 120]

    # Layer 2: Conv2d(4, 8, 5) + MaxPool2d(2) + Leaky.
    for b in range(batch):
        cur2 = _conv_pool(spk1_ref, b, t2_ref, 5, 26, 104, ytmp_ref) + b2_ref[...]
        spk2_ref[b] = _leaky(cur2, mem2_ref, b)              # [13, 104]

    # Layer 3: Conv2d(8, 16, 4) + MaxPool2d(2) + Leaky, then Linear(400, 10) + Leaky.
    for b in range(batch):
        cur3 = _conv_pool(spk2_ref, b, t3_ref, 4, 10, 80, ytmp_ref) + b3_ref[...]
        spk3 = _leaky(cur3, mem3_ref, b)                     # [5, 80]
        cur4 = bl_ref[...]                                   # [1, 10]
        for h in range(5):
            cur4 = cur4 + jnp.dot(spk3[h:h + 1, :], wl_ref[h],
                                  preferred_element_type=jnp.float32)
        out_ref[b:b + 1, :] = _leaky(cur4, mem4_ref, b)      # [1, 10]


# ----------------------------------------------------------------------------
# Wrapper
# ----------------------------------------------------------------------------
def snn_forward(x_nchw, kparams, num_steps=NUM_STEPS):
    """x_nchw: [B, 1, 64, 64]; kparams: prepare_params() output. Returns [T, B, 10]."""
    T1, b1r, T2, b2r, T3, b3r, WlH, blr = kparams
    B = x_nchw.shape[0]
    # NCHW with C=1  ->  [B, H, W*C] slab (pure reshape, no data movement).
    x_slab = x_nchw.astype(jnp.float32).reshape(B, 64, 64)

    kernel = functools.partial(_snn_kernel, batch=B)

    def full(a):
        return pl.BlockSpec(a.shape, lambda t, _nd=a.ndim: (0,) * _nd)

    return pl.pallas_call(
        kernel,
        out_shape=jax.ShapeDtypeStruct((num_steps, B, 10), jnp.float32),
        grid=(num_steps,),
        in_specs=[full(x_slab), full(T1), full(b1r), full(T2), full(b2r),
                  full(T3), full(b3r), full(WlH), full(blr)],
        out_specs=pl.BlockSpec((None, B, 10), lambda t: (t, 0, 0)),
        scratch_shapes=[
            pltpu.VMEM((B, 30, 120), jnp.float32),   # cur1 (pooled conv1 + bias)
            pltpu.VMEM((B, 30, 120), jnp.float32),   # mem1
            pltpu.VMEM((B, 30, 120), jnp.float32),   # spk1
            pltpu.VMEM((B, 13, 104), jnp.float32),   # mem2
            pltpu.VMEM((B, 13, 104), jnp.float32),   # spk2
            pltpu.VMEM((B, 5, 80), jnp.float32),     # mem3
            pltpu.VMEM((B, 1, 10), jnp.float32),     # mem4
            pltpu.VMEM((60, 128), jnp.float32),      # conv/pool staging buffer
        ],
        compiler_params=pltpu.CompilerParams(
            dimension_semantics=("arbitrary",)),     # membrane state carries over t
    )(x_slab, T1, b1r, T2, b2r, T3, b3r, WlH, blr)


# ----------------------------------------------------------------------------
# Host-side parameter preparation (runs once, outside the hot path)
# ----------------------------------------------------------------------------
def _banded_conv_weights(w_torch, w_in):
    """[OC,IC,KH,KW] PyTorch conv weight -> banded matrices [KH, w_in*IC, 256].

    Column layout: lanes [0,128) hold even output columns, lanes [128,256) odd
    ones, each ordered as (ow//2)*OC + oc, so a 2x2 W-pool is max of the two
    halves and the pooled result lands directly in the next layer's
    [h, w*C + c] slab layout.
    """
    w = np.asarray(w_torch, np.float32)
    oc, ic, n_kh, n_kw = w.shape
    ow = w_in - n_kw + 1
    assert ow % 2 == 0 and (ow // 2) * oc <= 128
    T = np.zeros((n_kh, w_in * ic, 256), np.float32)
    for kh in range(n_kh):
        for o in range(ow):
            col0 = (o % 2) * 128 + (o // 2) * oc
            for kw in range(n_kw):
                wi = o + kw
                for c in range(ic):
                    T[kh, wi * ic + c, col0:col0 + oc] = w[:, c, kh, kw]
    return jnp.asarray(T)


def _pooled_bias_row(bias, ow_pooled):
    return jnp.asarray(np.tile(np.asarray(bias, np.float32), ow_pooled)[None, :])


def prepare_params(params):
    """PyTorch-layout params -> kernel format (banded conv weights, permuted FC)."""
    (w1, b1), (w2, b2), (w3, b3), (wl, bl) = params
    T1 = _banded_conv_weights(w1, 64)            # [5, 64, 256]
    T2 = _banded_conv_weights(w2, 30)            # [5, 120, 256]
    T3 = _banded_conv_weights(w3, 13)            # [4, 104, 256]
    b1r = _pooled_bias_row(b1, 30)               # [1, 120]
    b2r = _pooled_bias_row(b2, 13)               # [1, 104]
    b3r = _pooled_bias_row(b3, 5)                # [1, 80]
    # nn.Flatten on NCHW flattens as (c, h, w); the spk3 slab is [h, w*16 + c].
    # Permute the Linear weight once so the kernel contracts h-row by h-row with
    # no per-step transpose (bit-identical result).
    wlt = np.asarray(wl, np.float32)             # [10, 400]
    WlH = np.zeros((5, 80, 10), np.float32)
    for h in range(5):
        for w_ in range(5):
            for c in range(16):
                WlH[h, w_ * 16 + c, :] = wlt[:, c * 25 + h * 5 + w_]
    blr = jnp.asarray(np.asarray(bl, np.float32)[None, :])   # [1, 10]
    return (T1, b1r, T2, b2r, T3, b3r, jnp.asarray(WlH), blr)


# ----------------------------------------------------------------------------
# Deterministic parameter init (synthetic, PyTorch layouts of the module)
# ----------------------------------------------------------------------------
def init_params(key):
    ks = jax.random.split(key, 8)

    def conv_w(k, oc, ic, kh, kw):
        fan_in = float(ic * kh * kw)
        return jax.random.normal(k, (oc, ic, kh, kw), jnp.float32) / float(
            np.sqrt(fan_in))

    w1 = conv_w(ks[0], 4, 1, 5, 5)
    b1 = 0.05 * jax.random.normal(ks[1], (4,), jnp.float32)
    w2 = conv_w(ks[2], 8, 4, 5, 5)
    b2 = 0.05 * jax.random.normal(ks[3], (8,), jnp.float32)
    w3 = conv_w(ks[4], 16, 8, 4, 4)
    b3 = 0.05 * jax.random.normal(ks[5], (16,), jnp.float32)
    wl = jax.random.normal(ks[6], (10, 400), jnp.float32) / float(np.sqrt(400.0))
    bl = 0.05 * jax.random.normal(ks[7], (10,), jnp.float32)
    return ((w1, b1), (w2, b2), (w3, b3), (wl, bl))


if __name__ == "__main__":
    key = jax.random.PRNGKey(0)
    k_x, k_p = jax.random.split(key)
    # Input implied by Linear(5*5*16, 10): 1-channel 64x64 images; batch=2.
    x = jax.random.uniform(k_x, (2, 1, 64, 64), dtype=jnp.float32)
    params = init_params(k_p)
    kparams = prepare_params(params)

    fwd = jax.jit(functools.partial(snn_forward, num_steps=NUM_STEPS))
    spikes = jax.block_until_ready(fwd(x, kparams))

    assert spikes.shape == (NUM_STEPS, 2, 10), spikes.shape
    assert spikes.dtype == jnp.float32
    # Output of a Leaky fire() is a 0/1 spike train.
    assert bool(jnp.all((spikes == 0.0) | (spikes == 1.0)))
    print("KERNEL_OK")
</pallas_src>

<mosaic_0001>
module attributes {stable_mosaic.version = 11 : i64} {
  func.func @_snn_kernel(%arg0: i32, %arg1: memref<2x64x64xf32, #tpu.memory_space<vmem>>, %arg2: memref<5x64x256xf32, #tpu.memory_space<vmem>>, %arg3: memref<1x120xf32, #tpu.memory_space<vmem>>, %arg4: memref<5x120x256xf32, #tpu.memory_space<vmem>>, %arg5: memref<1x104xf32, #tpu.memory_space<vmem>>, %arg6: memref<4x104x256xf32, #tpu.memory_space<vmem>>, %arg7: memref<1x80xf32, #tpu.memory_space<vmem>>, %arg8: memref<5x80x10xf32, #tpu.memory_space<vmem>>, %arg9: memref<1x10xf32, #tpu.memory_space<vmem>>, %arg10: memref<1x2x10xf32, #tpu.memory_space<vmem>>, %arg11: memref<2x30x120xf32, #tpu.memory_space<vmem>>, %arg12: memref<2x30x120xf32, #tpu.memory_space<vmem>>, %arg13: memref<2x30x120xf32, #tpu.memory_space<vmem>>, %arg14: memref<2x13x104xf32, #tpu.memory_space<vmem>>, %arg15: memref<2x13x104xf32, #tpu.memory_space<vmem>>, %arg16: memref<2x5x80xf32, #tpu.memory_space<vmem>>, %arg17: memref<2x1x10xf32, #tpu.memory_space<vmem>>, %arg18: memref<60x128xf32, #tpu.memory_space<vmem>>) attributes {dimension_semantics = [#tpu.dimension_semantics<arbitrary>], iteration_bounds = array<i64: 16>, scalar_prefetch = 0 : i64, scratch_operands = 8 : i64, tpu.core_type = #tpu.core_type<tc>, window_params = [{pipeline_mode = #tpu.pipeline_mode<synchronous>, transform_indices = @transform_0, window_bounds = array<i64: 2, 64, 64>}, {pipeline_mode = #tpu.pipeline_mode<synchronous>, transform_indices = @transform_1, window_bounds = array<i64: 5, 64, 256>}, {pipeline_mode = #tpu.pipeline_mode<synchronous>, transform_indices = @transform_2, window_bounds = array<i64: 1, 120>}, {pipeline_mode = #tpu.pipeline_mode<synchronous>, transform_indices = @transform_3, window_bounds = array<i64: 5, 120, 256>}, {pipeline_mode = #tpu.pipeline_mode<synchronous>, transform_indices = @transform_4, window_bounds = array<i64: 1, 104>}, {pipeline_mode = #tpu.pipeline_mode<synchronous>, transform_indices = @transform_5, window_bounds = array<i64: 4, 104, 256>}, {pipeline_mode = #tpu.pipeline_mode<synchronous>, transform_indices = @transform_6, window_bounds = array<i64: 1, 80>}, {pipeline_mode = #tpu.pipeline_mode<synchronous>, transform_indices = @transform_7, window_bounds = array<i64: 5, 80, 10>}, {pipeline_mode = #tpu.pipeline_mode<synchronous>, transform_indices = @transform_8, window_bounds = array<i64: 1, 10>}, {transform_indices = @transform_9, window_bounds = array<i64: 1, 2, 10>}]} {
    %c0_i32 = arith.constant 0 : i32
    %0 = arith.cmpi eq, %arg0, %c0_i32 : i32
    %1 = arith.extui %0 : i1 to i32
    %c0_i32_0 = arith.constant 0 : i32
    %2 = arith.cmpi ne, %1, %c0_i32_0 : i32
    scf.if %2 {
      %cst_301 = arith.constant 0.000000e+00 : f32
      %377 = vector.broadcast %cst_301 : f32 to vector<2x30x120xf32>
      %c0_302 = arith.constant 0 : index
      %c0_303 = arith.constant 0 : index
      %c0_304 = arith.constant 0 : index
      %378 = vector.load %arg12[%c0_302, %c0_303, %c0_304] : memref<2x30x120xf32, #tpu.memory_space<vmem>>, vector<2x30x120xf32>
      tpu.vector_store %arg12[%c0_302, %c0_303, %c0_304], %377 {strides = array<i32>} : memref<2x30x120xf32, #tpu.memory_space<vmem>>, vector<2x30x120xf32>,
      %cst_305 = arith.constant 0.000000e+00 : f32
      %379 = vector.broadcast %cst_305 : f32 to vector<2x13x104xf32>
      %c0_306 = arith.constant 0 : index
      %c0_307 = arith.constant 0 : index
      %c0_308 = arith.constant 0 : index
      %380 = vector.load %arg14[%c0_306, %c0_307, %c0_308] : memref<2x13x104xf32, #tpu.memory_space<vmem>>, vector<2x13x104xf32>
      tpu.vector_store %arg14[%c0_306, %c0_307, %c0_308], %379 {strides = array<i32>} : memref<2x13x104xf32, #tpu.memory_space<vmem>>, vector<2x13x104xf32>,
      %cst_309 = arith.constant 0.000000e+00 : f32
      %381 = vector.broadcast %cst_309 : f32 to vector<2x5x80xf32>
      %c0_310 = arith.constant 0 : index
      %c0_311 = arith.constant 0 : index
      %c0_312 = arith.constant 0 : index
      %382 = vector.load %arg16[%c0_310, %c0_311, %c0_312] : memref<2x5x80xf32, #tpu.memory_space<vmem>>, vector<2x5x80xf32>
      tpu.vector_store %arg16[%c0_310, %c0_311, %c0_312], %381 {strides = array<i32>} : memref<2x5x80xf32, #tpu.memory_space<vmem>>, vector<2x5x80xf32>,
      %cst_313 = arith.constant 0.000000e+00 : f32
      %383 = vector.broadcast %cst_313 : f32 to vector<2x1x10xf32>
      %c0_314 = arith.constant 0 : index
      %c0_315 = arith.constant 0 : index
      %c0_316 = arith.constant 0 : index
      %384 = vector.load %arg17[%c0_314, %c0_315, %c0_316] : memref<2x1x10xf32, #tpu.memory_space<vmem>>, vector<2x1x10xf32>
      tpu.vector_store %arg17[%c0_314, %c0_315, %c0_316], %383 {strides = array<i32>} : memref<2x1x10xf32, #tpu.memory_space<vmem>>, vector<2x1x10xf32>,
      %c0_317 = arith.constant 0 : index
      %c0_318 = arith.constant 0 : index
      %c0_319 = arith.constant 0 : index
      %385 = vector.load %arg1[%c0_317, %c0_318, %c0_319] : memref<2x64x64xf32, #tpu.memory_space<vmem>>, vector<1x60x64xf32>
      %386 = vector.shape_cast %385 : vector<1x60x64xf32> to vector<60x64xf32>
      %c0_320 = arith.constant 0 : index
      %c0_321 = arith.constant 0 : index
      %c0_322 = arith.constant 0 : index
      %387 = vector.load %arg2[%c0_320, %c0_321, %c0_322] : memref<5x64x256xf32, #tpu.memory_space<vmem>>, vector<1x64x256xf32>
      %388 = vector.shape_cast %387 : vector<1x64x256xf32> to vector<64x256xf32>
      %cst_323 = arith.constant dense<0.000000e+00> : vector<60x256xf32>
      %389 = tpu.matmul %386, %388, %cst_323 {dimension_numbers = #tpu.dot_dimension_numbers<[1], [0], [0], [1], [0, 0, 1, 1], [], []>} : vector<60x64xf32>, vector<64x256xf32>, vector<60x256xf32> -> vector<60x256xf32>
      %c0_324 = arith.constant 0 : index
      %c1_325 = arith.constant 1 : index
      %c0_326 = arith.constant 0 : index
      %390 = vector.load %arg1[%c0_324, %c1_325, %c0_326] : memref<2x64x64xf32, #tpu.memory_space<vmem>>, vector<1x60x64xf32>
      %391 = vector.shape_cast %390 : vector<1x60x64xf32> to vector<60x64xf32>
      %c1_327 = arith.constant 1 : index
      %c0_328 = arith.constant 0 : index
      %c0_329 = arith.constant 0 : index
      %392 = vector.load %arg2[%c1_327, %c0_328, %c0_329] : memref<5x64x256xf32, #tpu.memory_space<vmem>>, vector<1x64x256xf32>
      %393 = vector.shape_cast %392 : vector<1x64x256xf32> to vector<64x256xf32>
      %cst_330 = arith.constant dense<0.000000e+00> : vector<60x256xf32>
      %394 = tpu.matmul %391, %393, %cst_330 {dimension_numbers = #tpu.dot_dimension_numbers<[1], [0], [0], [1], [0, 0, 1, 1], [], []>} : vector<60x64xf32>, vector<64x256xf32>, vector<60x256xf32> -> vector<60x256xf32>
      %395 = arith.addf %389, %394 : vector<60x256xf32>
      %c0_331 = arith.constant 0 : index
      %c2_332 = arith.constant 2 : index
      %c0_333 = arith.constant 0 : index
      %396 = vector.load %arg1[%c0_331, %c2_332, %c0_333] : memref<2x64x64xf32, #tpu.memory_space<vmem>>, vector<1x60x64xf32>
      %397 = vector.shape_cast %396 : vector<1x60x64xf32> to vector<60x64xf32>
      %c2_334 = arith.constant 2 : index
      %c0_335 = arith.constant 0 : index
      %c0_336 = arith.constant 0 : index
      %398 = vector.load %arg2[%c2_334, %c0_335, %c0_336] : memref<5x64x256xf32, #tpu.memory_space<vmem>>, vector<1x64x256xf32>
      %399 = vector.shape_cast %398 : vector<1x64x256xf32> to vector<64x256xf32>
      %cst_337 = arith.constant dense<0.000000e+00> : vector<60x256xf32>
      %400 = tpu.matmul %397, %399, %cst_337 {dimension_numbers = #tpu.dot_dimension_numbers<[1], [0], [0], [1], [0, 0, 1, 1], [], []>} : vector<60x64xf32>, vector<64x256xf32>, vector<60x256xf32> -> vector<60x256xf32>
      %401 = arith.addf %395, %400 : vector<60x256xf32>
      %c0_338 = arith.constant 0 : index
      %c3_339 = arith.constant 3 : index
      %c0_340 = arith.constant 0 : index
      %402 = vector.load %arg1[%c0_338, %c3_339, %c0_340] : memref<2x64x64xf32, #tpu.memory_space<vmem>>, vector<1x60x64xf32>
      %403 = vector.shape_cast %402 : vector<1x60x64xf32> to vector<60x64xf32>
      %c3_341 = arith.constant 3 : index
      %c0_342 = arith.constant 0 : index
      %c0_343 = arith.constant 0 : index
      %404 = vector.load %arg2[%c3_341, %c0_342, %c0_343] : memref<5x64x256xf32, #tpu.memory_space<vmem>>, vector<1x64x256xf32>
      %405 = vector.shape_cast %404 : vector<1x64x256xf32> to vector<64x256xf32>
      %cst_344 = arith.constant dense<0.000000e+00> : vector<60x256xf32>
      %406 = tpu.matmul %403, %405, %cst_344 {dimension_numbers = #tpu.dot_dimension_numbers<[1], [0], [0], [1], [0, 0, 1, 1], [], []>} : vector<60x64xf32>, vector<64x256xf32>, vector<60x256xf32> -> vector<60x256xf32>
      %407 = arith.addf %401, %406 : vector<60x256xf32>
      %c0_345 = arith.constant 0 : index
      %c4_346 = arith.constant 4 : index
      %c0_347 = arith.constant 0 : index
      %408 = vector.load %arg1[%c0_345, %c4_346, %c0_347] : memref<2x64x64xf32, #tpu.memory_space<vmem>>, vector<1x60x64xf32>
      %409 = vector.shape_cast %408 : vector<1x60x64xf32> to vector<60x64xf32>
      %c4_348 = arith.constant 4 : index
      %c0_349 = arith.constant 0 : index
      %c0_350 = arith.constant 0 : index
      %410 = vector.load %arg2[%c4_348, %c0_349, %c0_350] : memref<5x64x256xf32, #tpu.memory_space<vmem>>, vector<1x64x256xf32>
      %411 = vector.shape_cast %410 : vector<1x64x256xf32> to vector<64x256xf32>
      %cst_351 = arith.constant dense<0.000000e+00> : vector<60x256xf32>
      %412 = tpu.matmul %409, %411, %cst_351 {dimension_numbers = #tpu.dot_dimension_numbers<[1], [0], [0], [1], [0, 0, 1, 1], [], []>} : vector<60x64xf32>, vector<64x256xf32>, vector<60x256xf32> -> vector<60x256xf32>
      %413 = arith.addf %407, %412 : vector<60x256xf32>
      %414 = vector.extract_strided_slice %413 {offsets = [0, 0], sizes = [60, 128], strides = [1, 1]} : vector<60x256xf32> to vector<60x128xf32>
      %415 = vector.extract_strided_slice %413 {offsets = [0, 128], sizes = [60, 128], strides = [1, 1]} : vector<60x256xf32> to vector<60x128xf32>
      %416 = arith.maximumf %414, %415 : vector<60x128xf32>
      %c0_352 = arith.constant 0 : index
      %c0_353 = arith.constant 0 : index
      %417 = vector.load %arg18[%c0_352, %c0_353] : memref<60x128xf32, #tpu.memory_space<vmem>>, vector<60x128xf32>
      tpu.vector_store %arg18[%c0_352, %c0_353], %416 {strides = array<i32>} : memref<60x128xf32, #tpu.memory_space<vmem>>, vector<60x128xf32>,
      %c0_354 = arith.constant 0 : index
      %c0_355 = arith.constant 0 : index
      %418 = tpu.strided_load %arg18[%c0_354, %c0_355] {strides = array<i32: 2, 1>} : memref<60x128xf32, #tpu.memory_space<vmem>>, vector<30x128xf32>
      %c1_356 = arith.constant 1 : index
      %c0_357 = arith.constant 0 : index
      %419 = tpu.strided_load %arg18[%c1_356, %c0_357] {strides = array<i32: 2, 1>} : memref<60x128xf32, #tpu.memory_space<vmem>>, vector<30x128xf32>
      %420 = arith.maximumf %418, %419 : vector<30x128xf32>
      %421 = vector.extract_strided_slice %420 {offsets = [0, 0], sizes = [30, 120], strides = [1, 1]} : vector<30x128xf32> to vector<30x120xf32>
      %c0_358 = arith.constant 0 : index
      %c0_359 = arith.constant 0 : index
      %422 = vector.load %arg3[%c0_358, %c0_359] : memref<1x120xf32, #tpu.memory_space<vmem>>, vector<1x120xf32>
      %423 = vector.broadcast %422 : vector<1x120xf32> to vector<30x120xf32>
      %424 = arith.addf %421, %423 : vector<30x120xf32>
      %c0_360 = arith.constant 0 : index
      %c0_361 = arith.constant 0 : index
      %c0_362 = arith.constant 0 : index
      %425 = vector.load %arg11[%c0_360, %c0_361, %c0_362] : memref<2x30x120xf32, #tpu.memory_space<vmem>>, vector<1x30x120xf32>
      %426 = vector.shape_cast %425 : vector<1x30x120xf32> to vector<30x120xf32>
      %427 = vector.shape_cast %424 : vector<30x120xf32> to vector<1x30x120xf32>
      tpu.vector_store %arg11[%c0_360, %c0_361, %c0_362], %427 {strides = array<i32>} : memref<2x30x120xf32, #tpu.memory_space<vmem>>, vector<1x30x120xf32>,
      %c1_363 = arith.constant 1 : index
      %c0_364 = arith.constant 0 : index
      %c0_365 = arith.constant 0 : index
      %428 = vector.load %arg1[%c1_363, %c0_364, %c0_365] : memref<2x64x64xf32, #tpu.memory_space<vmem>>, vector<1x60x64xf32>
      %429 = vector.shape_cast %428 : vector<1x60x64xf32> to vector<60x64xf32>
      %c0_366 = arith.constant 0 : index
      %c0_367 = arith.constant 0 : index
      %c0_368 = arith.constant 0 : index
      %430 = vector.load %arg2[%c0_366, %c0_367, %c0_368] : memref<5x64x256xf32, #tpu.memory_space<vmem>>, vector<1x64x256xf32>
      %431 = vector.shape_cast %430 : vector<1x64x256xf32> to vector<64x256xf32>
      %cst_369 = arith.constant dense<0.000000e+00> : vector<60x256xf32>
      %432 = tpu.matmul %429, %431, %cst_369 {dimension_numbers = #tpu.dot_dimension_numbers<[1], [0], [0], [1], [0, 0, 1, 1], [], []>} : vector<60x64xf32>, vector<64x256xf32>, vector<60x256xf32> -> vector<60x256xf32>
      %c1_370 = arith.constant 1 : index
      %c1_371 = arith.constant 1 : index
      %c0_372 = arith.constant 0 : index
      %433 = vector.load %arg1[%c1_370, %c1_371, %c0_372] : memref<2x64x64xf32, #tpu.memory_space<vmem>>, vector<1x60x64xf32>
      %434 = vector.shape_cast %433 : vector<1x60x64xf32> to vector<60x64xf32>
      %c1_373 = arith.constant 1 : index
      %c0_374 = arith.constant 0 : index
      %c0_375 = arith.constant 0 : index
      %435 = vector.load %arg2[%c1_373, %c0_374, %c0_375] : memref<5x64x256xf32, #tpu.memory_space<vmem>>, vector<1x64x256xf32>
      %436 = vector.shape_cast %435 : vector<1x64x256xf32> to vector<64x256xf32>
      %cst_376 = arith.constant dense<0.000000e+00> : vector<60x256xf32>
      %437 = tpu.matmul %434, %436, %cst_376 {dimension_numbers = #tpu.dot_dimension_numbers<[1], [0], [0], [1], [0, 0, 1, 1], [], []>} : vector<60x64xf32>, vector<64x256xf32>, vector<60x256xf32> -> vector<60x256xf32>
      %438 = arith.addf %432, %437 : vector<60x256xf32>
      %c1_377 = arith.constant 1 : index
      %c2_378 = arith.constant 2 : index
      %c0_379 = arith.constant 0 : index
      %439 = vector.load %arg1[%c1_377, %c2_378, %c0_379] : memref<2x64x64xf32, #tpu.memory_space<vmem>>, vector<1x60x64xf32>
      %440 = vector.shape_cast %439 : vector<1x60x64xf32> to vector<60x64xf32>
      %c2_380 = arith.constant 2 : index
      %c0_381 = arith.constant 0 : index
      %c0_382 = arith.constant 0 : index
      %441 = vector.load %arg2[%c2_380, %c0_381, %c0_382] : memref<5x64x256xf32, #tpu.memory_space<vmem>>, vector<1x64x256xf32>
      %442 = vector.shape_cast %441 : vector<1x64x256xf32> to vector<64x256xf32>
      %cst_383 = arith.constant dense<0.000000e+00> : vector<60x256xf32>
      %443 = tpu.matmul %440, %442, %cst_383 {dimension_numbers = #tpu.dot_dimension_numbers<[1], [0], [0], [1], [0, 0, 1, 1], [], []>} : vector<60x64xf32>, vector<64x256xf32>, vector<60x256xf32> -> vector<60x256xf32>
      %444 = arith.addf %438, %443 : vector<60x256xf32>
      %c1_384 = arith.constant 1 : index
      %c3_385 = arith.constant 3 : index
      %c0_386 = arith.constant 0 : index
      %445 = vector.load %arg1[%c1_384, %c3_385, %c0_386] : memref<2x64x64xf32, #tpu.memory_space<vmem>>, vector<1x60x64xf32>
      %446 = vector.shape_cast %445 : vector<1x60x64xf32> to vector<60x64xf32>
      %c3_387 = arith.constant 3 : index
      %c0_388 = arith.constant 0 : index
      %c0_389 = arith.constant 0 : index
      %447 = vector.load %arg2[%c3_387, %c0_388, %c0_389] : memref<5x64x256xf32, #tpu.memory_space<vmem>>, vector<1x64x256xf32>
      %448 = vector.shape_cast %447 : vector<1x64x256xf32> to vector<64x256xf32>
      %cst_390 = arith.constant dense<0.000000e+00> : vector<60x256xf32>
      %449 = tpu.matmul %446, %448, %cst_390 {dimension_numbers = #tpu.dot_dimension_numbers<[1], [0], [0], [1], [0, 0, 1, 1], [], []>} : vector<60x64xf32>, vector<64x256xf32>, vector<60x256xf32> -> vector<60x256xf32>
      %450 = arith.addf %444, %449 : vector<60x256xf32>
      %c1_391 = arith.constant 1 : index
      %c4_392 = arith.constant 4 : index
      %c0_393 = arith.constant 0 : index
      %451 = vector.load %arg1[%c1_391, %c4_392, %c0_393] : memref<2x64x64xf32, #tpu.memory_space<vmem>>, vector<1x60x64xf32>
      %452 = vector.shape_cast %451 : vector<1x60x64xf32> to vector<60x64xf32>
      %c4_394 = arith.constant 4 : index
      %c0_395 = arith.constant 0 : index
      %c0_396 = arith.constant 0 : index
      %453 = vector.load %arg2[%c4_394, %c0_395, %c0_396] : memref<5x64x256xf32, #tpu.memory_space<vmem>>, vector<1x64x256xf32>
      %454 = vector.shape_cast %453 : vector<1x64x256xf32> to vector<64x256xf32>
      %cst_397 = arith.constant dense<0.000000e+00> : vector<60x256xf32>
      %455 = tpu.matmul %452, %454, %cst_397 {dimension_numbers = #tpu.dot_dimension_numbers<[1], [0], [0], [1], [0, 0, 1, 1], [], []>} : vector<60x64xf32>, vector<64x256xf32>, vector<60x256xf32> -> vector<60x256xf32>
      %456 = arith.addf %450, %455 : vector<60x256xf32>
      %457 = vector.extract_strided_slice %456 {offsets = [0, 0], sizes = [60, 128], strides = [1, 1]} : vector<60x256xf32> to vector<60x128xf32>
      %458 = vector.extract_strided_slice %456 {offsets = [0, 128], sizes = [60, 128], strides = [1, 1]} : vector<60x256xf32> to vector<60x128xf32>
      %459 = arith.maximumf %457, %458 : vector<60x128xf32>
      %c0_398 = arith.constant 0 : index
      %c0_399 = arith.constant 0 : index
      %460 = vector.load %arg18[%c0_398, %c0_399] : memref<60x128xf32, #tpu.memory_space<vmem>>, vector<60x128xf32>
      tpu.vector_store %arg18[%c0_398, %c0_399], %459 {strides = array<i32>} : memref<60x128xf32, #tpu.memory_space<vmem>>, vector<60x128xf32>,
      %c0_400 = arith.constant 0 : index
      %c0_401 = arith.constant 0 : index
      %461 = tpu.strided_load %arg18[%c0_400, %c0_401] {strides = array<i32: 2, 1>} : memref<60x128xf32, #tpu.memory_space<vmem>>, vector<30x128xf32>
      %c1_402 = arith.constant 1 : index
      %c0_403 = arith.constant 0 : index
      %462 = tpu.strided_load %arg18[%c1_402, %c0_403] {strides = array<i32: 2, 1>} : memref<60x128xf32, #tpu.memory_space<vmem>>, vector<30x128xf32>
      %463 = arith.maximumf %461, %462 : vector<30x128xf32>
      %464 = vector.extract_strided_slice %463 {offsets = [0, 0], sizes = [30, 120], strides = [1, 1]} : vector<30x128xf32> to vector<30x120xf32>
      %c0_404 = arith.constant 0 : index
      %c0_405 = arith.constant 0 : index
      %465 = vector.load %arg3[%c0_404, %c0_405] : memref<1x120xf32, #tpu.memory_space<vmem>>, vector<1x120xf32>
      %466 = vector.broadcast %465 : vector<1x120xf32> to vector<30x120xf32>
      %467 = arith.addf %464, %466 : vector<30x120xf32>
      %c1_406 = arith.constant 1 : index
      %c0_407 = arith.constant 0 : index
      %c0_408 = arith.constant 0 : index
      %468 = vector.load %arg11[%c1_406, %c0_407, %c0_408] : memref<2x30x120xf32, #tpu.memory_space<vmem>>, vector<1x30x120xf32>
      %469 = vector.shape_cast %468 : vector<1x30x120xf32> to vector<30x120xf32>
      %470 = vector.shape_cast %467 : vector<30x120xf32> to vector<1x30x120xf32>
      tpu.vector_store %arg11[%c1_406, %c0_407, %c0_408], %470 {strides = array<i32>} : memref<2x30x120xf32, #tpu.memory_space<vmem>>, vector<1x30x120xf32>,
    } else {
    }
    %c0 = arith.constant 0 : index
    %c0_1 = arith.constant 0 : index
    %c0_2 = arith.constant 0 : index
    %3 = vector.load %arg11[%c0, %c0_1, %c0_2] : memref<2x30x120xf32, #tpu.memory_space<vmem>>, vector<1x30x120xf32>
    %4 = vector.shape_cast %3 : vector<1x30x120xf32> to vector<30x120xf32>
    %c0_3 = arith.constant 0 : index
    %c0_4 = arith.constant 0 : index
    %c0_5 = arith.constant 0 : index
    %5 = vector.load %arg12[%c0_3, %c0_4, %c0_5] : memref<2x30x120xf32, #tpu.memory_space<vmem>>, vector<1x30x120xf32>
    %6 = vector.shape_cast %5 : vector<1x30x120xf32> to vector<30x120xf32>
    %cst = arith.constant 1.000000e+00 : f32
    %7 = vector.broadcast %cst : f32 to vector<30x120xf32>
    %8 = arith.cmpf ogt, %6, %7 : vector<30x120xf32>
    %9 = arith.extui %8 : vector<30x120xi1> to vector<30x120xi32>
    %10 = arith.sitofp %9 : vector<30x120xi32> to vector<30x120xf32>
    %cst_6 = arith.constant 5.000000e-01 : f32
    %11 = vector.broadcast %cst_6 : f32 to vector<30x120xf32>
    %12 = arith.mulf %11, %6 : vector<30x120xf32>
    %13 = arith.addf %12, %4 : vector<30x120xf32>
    %cst_7 = arith.constant 1.000000e+00 : f32
    %14 = vector.broadcast %cst_7 : f32 to vector<30x120xf32>
    %15 = arith.mulf %10, %14 : vector<30x120xf32>
    %16 = arith.subf %13, %15 : vector<30x120xf32>
    %c0_8 = arith.constant 0 : index
    %c0_9 = arith.constant 0 : index
    %c0_10 = arith.constant 0 : index
    %17 = vector.load %arg12[%c0_8, %c0_9, %c0_10] : memref<2x30x120xf32, #tpu.memory_space<vmem>>, vector<1x30x120xf32>
    %18 = vector.shape_cast %17 : vector<1x30x120xf32> to vector<30x120xf32>
    %19 = vector.shape_cast %16 : vector<30x120xf32> to vector<1x30x120xf32>
    tpu.vector_store %arg12[%c0_8, %c0_9, %c0_10], %19 {strides = array<i32>} : memref<2x30x120xf32, #tpu.memory_space<vmem>>, vector<1x30x120xf32>,
    %cst_11 = arith.constant 1.000000e+00 : f32
    %20 = vector.broadcast %cst_11 : f32 to vector<30x120xf32>
    %21 = arith.cmpf ogt, %16, %20 : vector<30x120xf32>
    %22 = arith.extui %21 : vector<30x120xi1> to vector<30x120xi32>
    %23 = arith.sitofp %22 : vector<30x120xi32> to vector<30x120xf32>
    %c0_12 = arith.constant 0 : index
    %c0_13 = arith.constant 0 : index
    %c0_14 = arith.constant 0 : index
    %24 = vector.load %arg13[%c0_12, %c0_13, %c0_14] : memref<2x30x120xf32, #tpu.memory_space<vmem>>, vector<1x30x120xf32>
    %25 = vector.shape_cast %24 : vector<1x30x120xf32> to vector<30x120xf32>
    %26 = vector.shape_cast %23 : vector<30x120xf32> to vector<1x30x120xf32>
    tpu.vector_store %arg13[%c0_12, %c0_13, %c0_14], %26 {strides = array<i32>} : memref<2x30x120xf32, #tpu.memory_space<vmem>>, vector<1x30x120xf32>,
    %c1 = arith.constant 1 : index
    %c0_15 = arith.constant 0 : index
    %c0_16 = arith.constant 0 : index
    %27 = vector.load %arg11[%c1, %c0_15, %c0_16] : memref<2x30x120xf32, #tpu.memory_space<vmem>>, vector<1x30x120xf32>
    %28 = vector.shape_cast %27 : vector<1x30x120xf32> to vector<30x120xf32>
    %c1_17 = arith.constant 1 : index
    %c0_18 = arith.constant 0 : index
    %c0_19 = arith.constant 0 : index
    %29 = vector.load %arg12[%c1_17, %c0_18, %c0_19] : memref<2x30x120xf32, #tpu.memory_space<vmem>>, vector<1x30x120xf32>
    %30 = vector.shape_cast %29 : vector<1x30x120xf32> to vector<30x120xf32>
    %cst_20 = arith.constant 1.000000e+00 : f32
    %31 = vector.broadcast %cst_20 : f32 to vector<30x120xf32>
    %32 = arith.cmpf ogt, %30, %31 : vector<30x120xf32>
    %33 = arith.extui %32 : vector<30x120xi1> to vector<30x120xi32>
    %34 = arith.sitofp %33 : vector<30x120xi32> to vector<30x120xf32>
    %cst_21 = arith.constant 5.000000e-01 : f32
    %35 = vector.broadcast %cst_21 : f32 to vector<30x120xf32>
    %36 = arith.mulf %35, %30 : vector<30x120xf32>
    %37 = arith.addf %36, %28 : vector<30x120xf32>
    %cst_22 = arith.constant 1.000000e+00 : f32
    %38 = vector.broadcast %cst_22 : f32 to vector<30x120xf32>
    %39 = arith.mulf %34, %38 : vector<30x120xf32>
    %40 = arith.subf %37, %39 : vector<30x120xf32>
    %c1_23 = arith.constant 1 : index
    %c0_24 = arith.constant 0 : index
    %c0_25 = arith.constant 0 : index
    %41 = vector.load %arg12[%c1_23, %c0_24, %c0_25] : memref<2x30x120xf32, #tpu.memory_space<vmem>>, vector<1x30x120xf32>
    %42 = vector.shape_cast %41 : vector<1x30x120xf32> to vector<30x120xf32>
    %43 = vector.shape_cast %40 : vector<30x120xf32> to vector<1x30x120xf32>
    tpu.vector_store %arg12[%c1_23, %c0_24, %c0_25], %43 {strides = array<i32>} : memref<2x30x120xf32, #tpu.memory_space<vmem>>, vector<1x30x120xf32>,
    %cst_26 = arith.constant 1.000000e+00 : f32
    %44 = vector.broadcast %cst_26 : f32 to vector<30x120xf32>
    %45 = arith.cmpf ogt, %40, %44 : vector<30x120xf32>
    %46 = arith.extui %45 : vector<30x120xi1> to vector<30x120xi32>
    %47 = arith.sitofp %46 : vector<30x120xi32> to vector<30x120xf32>
    %c1_27 = arith.constant 1 : index
    %c0_28 = arith.constant 0 : index
    %c0_29 = arith.constant 0 : index
    %48 = vector.load %arg13[%c1_27, %c0_28, %c0_29] : memref<2x30x120xf32, #tpu.memory_space<vmem>>, vector<1x30x120xf32>
    %49 = vector.shape_cast %48 : vector<1x30x120xf32> to vector<30x120xf32>
    %50 = vector.shape_cast %47 : vector<30x120xf32> to vector<1x30x120xf32>
    tpu.vector_store %arg13[%c1_27, %c0_28, %c0_29], %50 {strides = array<i32>} : memref<2x30x120xf32, #tpu.memory_space<vmem>>, vector<1x30x120xf32>,
    %c0_30 = arith.constant 0 : index
    %c0_31 = arith.constant 0 : index
    %c0_32 = arith.constant 0 : index
    %51 = vector.load %arg13[%c0_30, %c0_31, %c0_32] : memref<2x30x120xf32, #tpu.memory_space<vmem>>, vector<1x26x120xf32>
    %52 = vector.shape_cast %51 : vector<1x26x120xf32> to vector<26x120xf32>
    %c0_33 = arith.constant 0 : index
    %c0_34 = arith.constant 0 : index
    %c0_35 = arith.constant 0 : index
    %53 = vector.load %arg4[%c0_33, %c0_34, %c0_35] : memref<5x120x256xf32, #tpu.memory_space<vmem>>, vector<1x120x256xf32>
    %54 = vector.shape_cast %53 : vector<1x120x256xf32> to vector<120x256xf32>
    %cst_36 = arith.constant dense<0.000000e+00> : vector<26x256xf32>
    %55 = tpu.matmul %52, %54, %cst_36 {dimension_numbers = #tpu.dot_dimension_numbers<[1], [0], [0], [1], [0, 0, 1, 1], [], []>} : vector<26x120xf32>, vector<120x256xf32>, vector<26x256xf32> -> vector<26x256xf32>
    %c0_37 = arith.constant 0 : index
    %c1_38 = arith.constant 1 : index
    %c0_39 = arith.constant 0 : index
    %56 = vector.load %arg13[%c0_37, %c1_38, %c0_39] : memref<2x30x120xf32, #tpu.memory_space<vmem>>, vector<1x26x120xf32>
    %57 = vector.shape_cast %56 : vector<1x26x120xf32> to vector<26x120xf32>
    %c1_40 = arith.constant 1 : index
    %c0_41 = arith.constant 0 : index
    %c0_42 = arith.constant 0 : index
    %58 = vector.load %arg4[%c1_40, %c0_41, %c0_42] : memref<5x120x256xf32, #tpu.memory_space<vmem>>, vector<1x120x256xf32>
    %59 = vector.shape_cast %58 : vector<1x120x256xf32> to vector<120x256xf32>
    %cst_43 = arith.constant dense<0.000000e+00> : vector<26x256xf32>
    %60 = tpu.matmul %57, %59, %cst_43 {dimension_numbers = #tpu.dot_dimension_numbers<[1], [0], [0], [1], [0, 0, 1, 1], [], []>} : vector<26x120xf32>, vector<120x256xf32>, vector<26x256xf32> -> vector<26x256xf32>
    %61 = arith.addf %55, %60 : vector<26x256xf32>
    %c0_44 = arith.constant 0 : index
    %c2 = arith.constant 2 : index
    %c0_45 = arith.constant 0 : index
    %62 = vector.load %arg13[%c0_44, %c2, %c0_45] : memref<2x30x120xf32, #tpu.memory_space<vmem>>, vector<1x26x120xf32>
    %63 = vector.shape_cast %62 : vector<1x26x120xf32> to vector<26x120xf32>
    %c2_46 = arith.constant 2 : index
    %c0_47 = arith.constant 0 : index
    %c0_48 = arith.constant 0 : index
    %64 = vector.load %arg4[%c2_46, %c0_47, %c0_48] : memref<5x120x256xf32, #tpu.memory_space<vmem>>, vector<1x120x256xf32>
    %65 = vector.shape_cast %64 : vector<1x120x256xf32> to vector<120x256xf32>
    %cst_49 = arith.constant dense<0.000000e+00> : vector<26x256xf32>
    %66 = tpu.matmul %63, %65, %cst_49 {dimension_numbers = #tpu.dot_dimension_numbers<[1], [0], [0], [1], [0, 0, 1, 1], [], []>} : vector<26x120xf32>, vector<120x256xf32>, vector<26x256xf32> -> vector<26x256xf32>
    %67 = arith.addf %61, %66 : vector<26x256xf32>
    %c0_50 = arith.constant 0 : index
    %c3 = arith.constant 3 : index
    %c0_51 = arith.constant 0 : index
    %68 = vector.load %arg13[%c0_50, %c3, %c0_51] : memref<2x30x120xf32, #tpu.memory_space<vmem>>, vector<1x26x120xf32>
    %69 = vector.shape_cast %68 : vector<1x26x120xf32> to vector<26x120xf32>
    %c3_52 = arith.constant 3 : index
    %c0_53 = arith.constant 0 : index
    %c0_54 = arith.constant 0 : index
    %70 = vector.load %arg4[%c3_52, %c0_53, %c0_54] : memref<5x120x256xf32, #tpu.memory_space<vmem>>, vector<1x120x256xf32>
    %71 = vector.shape_cast %70 : vector<1x120x256xf32> to vector<120x256xf32>
    %cst_55 = arith.constant dense<0.000000e+00> : vector<26x256xf32>
    %72 = tpu.matmul %69, %71, %cst_55 {dimension_numbers = #tpu.dot_dimension_numbers<[1], [0], [0], [1], [0, 0, 1, 1], [], []>} : vector<26x120xf32>, vector<120x256xf32>, vector<26x256xf32> -> vector<26x256xf32>
    %73 = arith.addf %67, %72 : vector<26x256xf32>
    %c0_56 = arith.constant 0 : index
    %c4 = arith.constant 4 : index
    %c0_57 = arith.constant 0 : index
    %74 = vector.load %arg13[%c0_56, %c4, %c0_57] : memref<2x30x120xf32, #tpu.memory_space<vmem>>, vector<1x26x120xf32>
    %75 = vector.shape_cast %74 : vector<1x26x120xf32> to vector<26x120xf32>
    %c4_58 = arith.constant 4 : index
    %c0_59 = arith.constant 0 : index
    %c0_60 = arith.constant 0 : index
    %76 = vector.load %arg4[%c4_58, %c0_59, %c0_60] : memref<5x120x256xf32, #tpu.memory_space<vmem>>, vector<1x120x256xf32>
    %77 = vector.shape_cast %76 : vector<1x120x256xf32> to vector<120x256xf32>
    %cst_61 = arith.constant dense<0.000000e+00> : vector<26x256xf32>
    %78 = tpu.matmul %75, %77, %cst_61 {dimension_numbers = #tpu.dot_dimension_numbers<[1], [0], [0], [1], [0, 0, 1, 1], [], []>} : vector<26x120xf32>, vector<120x256xf32>, vector<26x256xf32> -> vector<26x256xf32>
    %79 = arith.addf %73, %78 : vector<26x256xf32>
    %80 = vector.extract_strided_slice %79 {offsets = [0, 0], sizes = [26, 128], strides = [1, 1]} : vector<26x256xf32> to vector<26x128xf32>
    %81 = vector.extract_strided_slice %79 {offsets = [0, 128], sizes = [26, 128], strides = [1, 1]} : vector<26x256xf32> to vector<26x128xf32>
    %82 = arith.maximumf %80, %81 : vector<26x128xf32>
    %c0_62 = arith.constant 0 : index
    %c0_63 = arith.constant 0 : index
    %83 = vector.load %arg18[%c0_62, %c0_63] : memref<60x128xf32, #tpu.memory_space<vmem>>, vector<26x128xf32>
    tpu.vector_store %arg18[%c0_62, %c0_63], %82 {strides = array<i32>} : memref<60x128xf32, #tpu.memory_space<vmem>>, vector<26x128xf32>,
    %c0_64 = arith.constant 0 : index
    %c0_65 = arith.constant 0 : index
    %84 = tpu.strided_load %arg18[%c0_64, %c0_65] {strides = array<i32: 2, 1>} : memref<60x128xf32, #tpu.memory_space<vmem>>, vector<13x128xf32>
    %c1_66 = arith.constant 1 : index
    %c0_67 = arith.constant 0 : index
    %85 = tpu.strided_load %arg18[%c1_66, %c0_67] {strides = array<i32: 2, 1>} : memref<60x128xf32, #tpu.memory_space<vmem>>, vector<13x128xf32>
    %86 = arith.maximumf %84, %85 : vector<13x128xf32>
    %87 = vector.extract_strided_slice %86 {offsets = [0, 0], sizes = [13, 104], strides = [1, 1]} : vector<13x128xf32> to vector<13x104xf32>
    %c0_68 = arith.constant 0 : index
    %c0_69 = arith.constant 0 : index
    %88 = vector.load %arg5[%c0_68, %c0_69] : memref<1x104xf32, #tpu.memory_space<vmem>>, vector<1x104xf32>
    %89 = vector.broadcast %88 : vector<1x104xf32> to vector<13x104xf32>
    %90 = arith.addf %87, %89 : vector<13x104xf32>
    %c0_70 = arith.constant 0 : index
    %c0_71 = arith.constant 0 : index
    %c0_72 = arith.constant 0 : index
    %91 = vector.load %arg14[%c0_70, %c0_71, %c0_72] : memref<2x13x104xf32, #tpu.memory_space<vmem>>, vector<1x13x104xf32>
    %92 = vector.shape_cast %91 : vector<1x13x104xf32> to vector<13x104xf32>
    %cst_73 = arith.constant 1.000000e+00 : f32
    %93 = vector.broadcast %cst_73 : f32 to vector<13x104xf32>
    %94 = arith.cmpf ogt, %92, %93 : vector<13x104xf32>
    %95 = arith.extui %94 : vector<13x104xi1> to vector<13x104xi32>
    %96 = arith.sitofp %95 : vector<13x104xi32> to vector<13x104xf32>
    %cst_74 = arith.constant 5.000000e-01 : f32
    %97 = vector.broadcast %cst_74 : f32 to vector<13x104xf32>
    %98 = arith.mulf %97, %92 : vector<13x104xf32>
    %99 = arith.addf %98, %90 : vector<13x104xf32>
    %cst_75 = arith.constant 1.000000e+00 : f32
    %100 = vector.broadcast %cst_75 : f32 to vector<13x104xf32>
    %101 = arith.mulf %96, %100 : vector<13x104xf32>
    %102 = arith.subf %99, %101 : vector<13x104xf32>
    %c0_76 = arith.constant 0 : index
    %c0_77 = arith.constant 0 : index
    %c0_78 = arith.constant 0 : index
    %103 = vector.load %arg14[%c0_76, %c0_77, %c0_78] : memref<2x13x104xf32, #tpu.memory_space<vmem>>, vector<1x13x104xf32>
    %104 = vector.shape_cast %103 : vector<1x13x104xf32> to vector<13x104xf32>
    %105 = vector.shape_cast %102 : vector<13x104xf32> to vector<1x13x104xf32>
    tpu.vector_store %arg14[%c0_76, %c0_77, %c0_78], %105 {strides = array<i32>} : memref<2x13x104xf32, #tpu.memory_space<vmem>>, vector<1x13x104xf32>,
    %cst_79 = arith.constant 1.000000e+00 : f32
    %106 = vector.broadcast %cst_79 : f32 to vector<13x104xf32>
    %107 = arith.cmpf ogt, %102, %106 : vector<13x104xf32>
    %108 = arith.extui %107 : vector<13x104xi1> to vector<13x104xi32>
    %109 = arith.sitofp %108 : vector<13x104xi32> to vector<13x104xf32>
    %c0_80 = arith.constant 0 : index
    %c0_81 = arith.constant 0 : index
    %c0_82 = arith.constant 0 : index
    %110 = vector.load %arg15[%c0_80, %c0_81, %c0_82] : memref<2x13x104xf32, #tpu.memory_space<vmem>>, vector<1x13x104xf32>
    %111 = vector.shape_cast %110 : vector<1x13x104xf32> to vector<13x104xf32>
    %112 = vector.shape_cast %109 : vector<13x104xf32> to vector<1x13x104xf32>
    tpu.vector_store %arg15[%c0_80, %c0_81, %c0_82], %112 {strides = array<i32>} : memref<2x13x104xf32, #tpu.memory_space<vmem>>, vector<1x13x104xf32>,
    %c1_83 = arith.constant 1 : index
    %c0_84 = arith.constant 0 : index
    %c0_85 = arith.constant 0 : index
    %113 = vector.load %arg13[%c1_83, %c0_84, %c0_85] : memref<2x30x120xf32, #tpu.memory_space<vmem>>, vector<1x26x120xf32>
    %114 = vector.shape_cast %113 : vector<1x26x120xf32> to vector<26x120xf32>
    %c0_86 = arith.constant 0 : index
    %c0_87 = arith.constant 0 : index
    %c0_88 = arith.constant 0 : index
    %115 = vector.load %arg4[%c0_86, %c0_87, %c0_88] : memref<5x120x256xf32, #tpu.memory_space<vmem>>, vector<1x120x256xf32>
    %116 = vector.shape_cast %115 : vector<1x120x256xf32> to vector<120x256xf32>
    %cst_89 = arith.constant dense<0.000000e+00> : vector<26x256xf32>
    %117 = tpu.matmul %114, %116, %cst_89 {dimension_numbers = #tpu.dot_dimension_numbers<[1], [0], [0], [1], [0, 0, 1, 1], [], []>} : vector<26x120xf32>, vector<120x256xf32>, vector<26x256xf32> -> vector<26x256xf32>
    %c1_90 = arith.constant 1 : index
    %c1_91 = arith.constant 1 : index
    %c0_92 = arith.constant 0 : index
    %118 = vector.load %arg13[%c1_90, %c1_91, %c0_92] : memref<2x30x120xf32, #tpu.memory_space<vmem>>, vector<1x26x120xf32>
    %119 = vector.shape_cast %118 : vector<1x26x120xf32> to vector<26x120xf32>
    %c1_93 = arith.constant 1 : index
    %c0_94 = arith.constant 0 : index
    %c0_95 = arith.constant 0 : index
    %120 = vector.load %arg4[%c1_93, %c0_94, %c0_95] : memref<5x120x256xf32, #tpu.memory_space<vmem>>, vector<1x120x256xf32>
    %121 = vector.shape_cast %120 : vector<1x120x256xf32> to vector<120x256xf32>
    %cst_96 = arith.constant dense<0.000000e+00> : vector<26x256xf32>
    %122 = tpu.matmul %119, %121, %cst_96 {dimension_numbers = #tpu.dot_dimension_numbers<[1], [0], [0], [1], [0, 0, 1, 1], [], []>} : vector<26x120xf32>, vector<120x256xf32>, vector<26x256xf32> -> vector<26x256xf32>
    %123 = arith.addf %117, %122 : vector<26x256xf32>
    %c1_97 = arith.constant 1 : index
    %c2_98 = arith.constant 2 : index
    %c0_99 = arith.constant 0 : index
    %124 = vector.load %arg13[%c1_97, %c2_98, %c0_99] : memref<2x30x120xf32, #tpu.memory_space<vmem>>, vector<1x26x120xf32>
    %125 = vector.shape_cast %124 : vector<1x26x120xf32> to vector<26x120xf32>
    %c2_100 = arith.constant 2 : index
    %c0_101 = arith.constant 0 : index
    %c0_102 = arith.constant 0 : index
    %126 = vector.load %arg4[%c2_100, %c0_101, %c0_102] : memref<5x120x256xf32, #tpu.memory_space<vmem>>, vector<1x120x256xf32>
    %127 = vector.shape_cast %126 : vector<1x120x256xf32> to vector<120x256xf32>
    %cst_103 = arith.constant dense<0.000000e+00> : vector<26x256xf32>
    %128 = tpu.matmul %125, %127, %cst_103 {dimension_numbers = #tpu.dot_dimension_numbers<[1], [0], [0], [1], [0, 0, 1, 1], [], []>} : vector<26x120xf32>, vector<120x256xf32>, vector<26x256xf32> -> vector<26x256xf32>
    %129 = arith.addf %123, %128 : vector<26x256xf32>
    %c1_104 = arith.constant 1 : index
    %c3_105 = arith.constant 3 : index
    %c0_106 = arith.constant 0 : index
    %130 = vector.load %arg13[%c1_104, %c3_105, %c0_106] : memref<2x30x120xf32, #tpu.memory_space<vmem>>, vector<1x26x120xf32>
    %131 = vector.shape_cast %130 : vector<1x26x120xf32> to vector<26x120xf32>
    %c3_107 = arith.constant 3 : index
    %c0_108 = arith.constant 0 : index
    %c0_109 = arith.constant 0 : index
    %132 = vector.load %arg4[%c3_107, %c0_108, %c0_109] : memref<5x120x256xf32, #tpu.memory_space<vmem>>, vector<1x120x256xf32>
    %133 = vector.shape_cast %132 : vector<1x120x256xf32> to vector<120x256xf32>
    %cst_110 = arith.constant dense<0.000000e+00> : vector<26x256xf32>
    %134 = tpu.matmul %131, %133, %cst_110 {dimension_numbers = #tpu.dot_dimension_numbers<[1], [0], [0], [1], [0, 0, 1, 1], [], []>} : vector<26x120xf32>, vector<120x256xf32>, vector<26x256xf32> -> vector<26x256xf32>
    %135 = arith.addf %129, %134 : vector<26x256xf32>
    %c1_111 = arith.constant 1 : index
    %c4_112 = arith.constant 4 : index
    %c0_113 = arith.constant 0 : index
    %136 = vector.load %arg13[%c1_111, %c4_112, %c0_113] : memref<2x30x120xf32, #tpu.memory_space<vmem>>, vector<1x26x120xf32>
    %137 = vector.shape_cast %136 : vector<1x26x120xf32> to vector<26x120xf32>
    %c4_114 = arith.constant 4 : index
    %c0_115 = arith.constant 0 : index
    %c0_116 = arith.constant 0 : index
    %138 = vector.load %arg4[%c4_114, %c0_115, %c0_116] : memref<5x120x256xf32, #tpu.memory_space<vmem>>, vector<1x120x256xf32>
    %139 = vector.shape_cast %138 : vector<1x120x256xf32> to vector<120x256xf32>
    %cst_117 = arith.constant dense<0.000000e+00> : vector<26x256xf32>
    %140 = tpu.matmul %137, %139, %cst_117 {dimension_numbers = #tpu.dot_dimension_numbers<[1], [0], [0], [1], [0, 0, 1, 1], [], []>} : vector<26x120xf32>, vector<120x256xf32>, vector<26x256xf32> -> vector<26x256xf32>
    %141 = arith.addf %135, %140 : vector<26x256xf32>
    %142 = vector.extract_strided_slice %141 {offsets = [0, 0], sizes = [26, 128], strides = [1, 1]} : vector<26x256xf32> to vector<26x128xf32>
    %143 = vector.extract_strided_slice %141 {offsets = [0, 128], sizes = [26, 128], strides = [1, 1]} : vector<26x256xf32> to vector<26x128xf32>
    %144 = arith.maximumf %142, %143 : vector<26x128xf32>
    %c0_118 = arith.constant 0 : index
    %c0_119 = arith.constant 0 : index
    %145 = vector.load %arg18[%c0_118, %c0_119] : memref<60x128xf32, #tpu.memory_space<vmem>>, vector<26x128xf32>
    tpu.vector_store %arg18[%c0_118, %c0_119], %144 {strides = array<i32>} : memref<60x128xf32, #tpu.memory_space<vmem>>, vector<26x128xf32>,
    %c0_120 = arith.constant 0 : index
    %c0_121 = arith.constant 0 : index
    %146 = tpu.strided_load %arg18[%c0_120, %c0_121] {strides = array<i32: 2, 1>} : memref<60x128xf32, #tpu.memory_space<vmem>>, vector<13x128xf32>
    %c1_122 = arith.constant 1 : index
    %c0_123 = arith.constant 0 : index
    %147 = tpu.strided_load %arg18[%c1_122, %c0_123] {strides = array<i32: 2, 1>} : memref<60x128xf32, #tpu.memory_space<vmem>>, vector<13x128xf32>
    %148 = arith.maximumf %146, %147 : vector<13x128xf32>
    %149 = vector.extract_strided_slice %148 {offsets = [0, 0], sizes = [13, 104], strides = [1, 1]} : vector<13x128xf32> to vector<13x104xf32>
    %c0_124 = arith.constant 0 : index
    %c0_125 = arith.constant 0 : index
    %150 = vector.load %arg5[%c0_124, %c0_125] : memref<1x104xf32, #tpu.memory_space<vmem>>, vector<1x104xf32>
    %151 = vector.broadcast %150 : vector<1x104xf32> to vector<13x104xf32>
    %152 = arith.addf %149, %151 : vector<13x104xf32>
    %c1_126 = arith.constant 1 : index
    %c0_127 = arith.constant 0 : index
    %c0_128 = arith.constant 0 : index
    %153 = vector.load %arg14[%c1_126, %c0_127, %c0_128] : memref<2x13x104xf32, #tpu.memory_space<vmem>>, vector<1x13x104xf32>
    %154 = vector.shape_cast %153 : vector<1x13x104xf32> to vector<13x104xf32>
    %cst_129 = arith.constant 1.000000e+00 : f32
    %155 = vector.broadcast %cst_129 : f32 to vector<13x104xf32>
    %156 = arith.cmpf ogt, %154, %155 : vector<13x104xf32>
    %157 = arith.extui %156 : vector<13x104xi1> to vector<13x104xi32>
    %158 = arith.sitofp %157 : vector<13x104xi32> to vector<13x104xf32>
    %cst_130 = arith.constant 5.000000e-01 : f32
    %159 = vector.broadcast %cst_130 : f32 to vector<13x104xf32>
    %160 = arith.mulf %159, %154 : vector<13x104xf32>
    %161 = arith.addf %160, %152 : vector<13x104xf32>
    %cst_131 = arith.constant 1.000000e+00 : f32
    %162 = vector.broadcast %cst_131 : f32 to vector<13x104xf32>
    %163 = arith.mulf %158, %162 : vector<13x104xf32>
    %164 = arith.subf %161, %163 : vector<13x104xf32>
    %c1_132 = arith.constant 1 : index
    %c0_133 = arith.constant 0 : index
    %c0_134 = arith.constant 0 : index
    %165 = vector.load %arg14[%c1_132, %c0_133, %c0_134] : memref<2x13x104xf32, #tpu.memory_space<vmem>>, vector<1x13x104xf32>
    %166 = vector.shape_cast %165 : vector<1x13x104xf32> to vector<13x104xf32>
    %167 = vector.shape_cast %164 : vector<13x104xf32> to vector<1x13x104xf32>
    tpu.vector_store %arg14[%c1_132, %c0_133, %c0_134], %167 {strides = array<i32>} : memref<2x13x104xf32, #tpu.memory_space<vmem>>, vector<1x13x104xf32>,
    %cst_135 = arith.constant 1.000000e+00 : f32
    %168 = vector.broadcast %cst_135 : f32 to vector<13x104xf32>
    %169 = arith.cmpf ogt, %164, %168 : vector<13x104xf32>
    %170 = arith.extui %169 : vector<13x104xi1> to vector<13x104xi32>
    %171 = arith.sitofp %170 : vector<13x104xi32> to vector<13x104xf32>
    %c1_136 = arith.constant 1 : index
    %c0_137 = arith.constant 0 : index
    %c0_138 = arith.constant 0 : index
    %172 = vector.load %arg15[%c1_136, %c0_137, %c0_138] : memref<2x13x104xf32, #tpu.memory_space<vmem>>, vector<1x13x104xf32>
    %173 = vector.shape_cast %172 : vector<1x13x104xf32> to vector<13x104xf32>
    %174 = vector.shape_cast %171 : vector<13x104xf32> to vector<1x13x104xf32>
    tpu.vector_store %arg15[%c1_136, %c0_137, %c0_138], %174 {strides = array<i32>} : memref<2x13x104xf32, #tpu.memory_space<vmem>>, vector<1x13x104xf32>,
    %c0_139 = arith.constant 0 : index
    %c0_140 = arith.constant 0 : index
    %c0_141 = arith.constant 0 : index
    %175 = vector.load %arg15[%c0_139, %c0_140, %c0_141] : memref<2x13x104xf32, #tpu.memory_space<vmem>>, vector<1x10x104xf32>
    %176 = vector.shape_cast %175 : vector<1x10x104xf32> to vector<10x104xf32>
    %c0_142 = arith.constant 0 : index
    %c0_143 = arith.constant 0 : index
    %c0_144 = arith.constant 0 : index
    %177 = vector.load %arg6[%c0_142, %c0_143, %c0_144] : memref<4x104x256xf32, #tpu.memory_space<vmem>>, vector<1x104x256xf32>
    %178 = vector.shape_cast %177 : vector<1x104x256xf32> to vector<104x256xf32>
    %cst_145 = arith.constant dense<0.000000e+00> : vector<10x256xf32>
    %179 = tpu.matmul %176, %178, %cst_145 {dimension_numbers = #tpu.dot_dimension_numbers<[1], [0], [0], [1], [0, 0, 1, 1], [], []>} : vector<10x104xf32>, vector<104x256xf32>, vector<10x256xf32> -> vector<10x256xf32>
    %c0_146 = arith.constant 0 : index
    %c1_147 = arith.constant 1 : index
    %c0_148 = arith.constant 0 : index
    %180 = vector.load %arg15[%c0_146, %c1_147, %c0_148] : memref<2x13x104xf32, #tpu.memory_space<vmem>>, vector<1x10x104xf32>
    %181 = vector.shape_cast %180 : vector<1x10x104xf32> to vector<10x104xf32>
    %c1_149 = arith.constant 1 : index
    %c0_150 = arith.constant 0 : index
    %c0_151 = arith.constant 0 : index
    %182 = vector.load %arg6[%c1_149, %c0_150, %c0_151] : memref<4x104x256xf32, #tpu.memory_space<vmem>>, vector<1x104x256xf32>
    %183 = vector.shape_cast %182 : vector<1x104x256xf32> to vector<104x256xf32>
    %cst_152 = arith.constant dense<0.000000e+00> : vector<10x256xf32>
    %184 = tpu.matmul %181, %183, %cst_152 {dimension_numbers = #tpu.dot_dimension_numbers<[1], [0], [0], [1], [0, 0, 1, 1], [], []>} : vector<10x104xf32>, vector<104x256xf32>, vector<10x256xf32> -> vector<10x256xf32>
    %185 = arith.addf %179, %184 : vector<10x256xf32>
    %c0_153 = arith.constant 0 : index
    %c2_154 = arith.constant 2 : index
    %c0_155 = arith.constant 0 : index
    %186 = vector.load %arg15[%c0_153, %c2_154, %c0_155] : memref<2x13x104xf32, #tpu.memory_space<vmem>>, vector<1x10x104xf32>
    %187 = vector.shape_cast %186 : vector<1x10x104xf32> to vector<10x104xf32>
    %c2_156 = arith.constant 2 : index
    %c0_157 = arith.constant 0 : index
    %c0_158 = arith.constant 0 : index
    %188 = vector.load %arg6[%c2_156, %c0_157, %c0_158] : memref<4x104x256xf32, #tpu.memory_space<vmem>>, vector<1x104x256xf32>
    %189 = vector.shape_cast %188 : vector<1x104x256xf32> to vector<104x256xf32>
    %cst_159 = arith.constant dense<0.000000e+00> : vector<10x256xf32>
    %190 = tpu.matmul %187, %189, %cst_159 {dimension_numbers = #tpu.dot_dimension_numbers<[1], [0], [0], [1], [0, 0, 1, 1], [], []>} : vector<10x104xf32>, vector<104x256xf32>, vector<10x256xf32> -> vector<10x256xf32>
    %191 = arith.addf %185, %190 : vector<10x256xf32>
    %c0_160 = arith.constant 0 : index
    %c3_161 = arith.constant 3 : index
    %c0_162 = arith.constant 0 : index
    %192 = vector.load %arg15[%c0_160, %c3_161, %c0_162] : memref<2x13x104xf32, #tpu.memory_space<vmem>>, vector<1x10x104xf32>
    %193 = vector.shape_cast %192 : vector<1x10x104xf32> to vector<10x104xf32>
    %c3_163 = arith.constant 3 : index
    %c0_164 = arith.constant 0 : index
    %c0_165 = arith.constant 0 : index
    %194 = vector.load %arg6[%c3_163, %c0_164, %c0_165] : memref<4x104x256xf32, #tpu.memory_space<vmem>>, vector<1x104x256xf32>
    %195 = vector.shape_cast %194 : vector<1x104x256xf32> to vector<104x256xf32>
    %cst_166 = arith.constant dense<0.000000e+00> : vector<10x256xf32>
    %196 = tpu.matmul %193, %195, %cst_166 {dimension_numbers = #tpu.dot_dimension_numbers<[1], [0], [0], [1], [0, 0, 1, 1], [], []>} : vector<10x104xf32>, vector<104x256xf32>, vector<10x256xf32> -> vector<10x256xf32>
    %197 = arith.addf %191, %196 : vector<10x256xf32>
    %198 = vector.extract_strided_slice %197 {offsets = [0, 0], sizes = [10, 128], strides = [1, 1]} : vector<10x256xf32> to vector<10x128xf32>
    %199 = vector.extract_strided_slice %197 {offsets = [0, 128], sizes = [10, 128], strides = [1, 1]} : vector<10x256xf32> to vector<10x128xf32>
    %200 = arith.maximumf %198, %199 : vector<10x128xf32>
    %c0_167 = arith.constant 0 : index
    %c0_168 = arith.constant 0 : index
    %201 = vector.load %arg18[%c0_167, %c0_168] : memref<60x128xf32, #tpu.memory_space<vmem>>, vector<10x128xf32>
    tpu.vector_store %arg18[%c0_167, %c0_168], %200 {strides = array<i32>} : memref<60x128xf32, #tpu.memory_space<vmem>>, vector<10x128xf32>,
    %c0_169 = arith.constant 0 : index
    %c0_170 = arith.constant 0 : index
    %202 = tpu.strided_load %arg18[%c0_169, %c0_170] {strides = array<i32: 2, 1>} : memref<60x128xf32, #tpu.memory_space<vmem>>, vector<5x128xf32>
    %c1_171 = arith.constant 1 : index
    %c0_172 = arith.constant 0 : index
    %203 = tpu.strided_load %arg18[%c1_171, %c0_172] {strides = array<i32: 2, 1>} : memref<60x128xf32, #tpu.memory_space<vmem>>, vector<5x128xf32>
    %204 = arith.maximumf %202, %203 : vector<5x128xf32>
    %205 = vector.extract_strided_slice %204 {offsets = [0, 0], sizes = [5, 80], strides = [1, 1]} : vector<5x128xf32> to vector<5x80xf32>
    %c0_173 = arith.constant 0 : index
    %c0_174 = arith.constant 0 : index
    %206 = vector.load %arg7[%c0_173, %c0_174] : memref<1x80xf32, #tpu.memory_space<vmem>>, vector<1x80xf32>
    %207 = vector.broadcast %206 : vector<1x80xf32> to vector<5x80xf32>
    %208 = arith.addf %205, %207 : vector<5x80xf32>
    %c0_175 = arith.constant 0 : index
    %c0_176 = arith.constant 0 : index
    %c0_177 = arith.constant 0 : index
    %209 = vector.load %arg16[%c0_175, %c0_176, %c0_177] : memref<2x5x80xf32, #tpu.memory_space<vmem>>, vector<1x5x80xf32>
    %210 = vector.shape_cast %209 : vector<1x5x80xf32> to vector<5x80xf32>
    %cst_178 = arith.constant 1.000000e+00 : f32
    %211 = vector.broadcast %cst_178 : f32 to vector<5x80xf32>
    %212 = arith.cmpf ogt, %210, %211 : vector<5x80xf32>
    %213 = arith.extui %212 : vector<5x80xi1> to vector<5x80xi32>
    %214 = arith.sitofp %213 : vector<5x80xi32> to vector<5x80xf32>
    %cst_179 = arith.constant 5.000000e-01 : f32
    %215 = vector.broadcast %cst_179 : f32 to vector<5x80xf32>
    %216 = arith.mulf %215, %210 : vector<5x80xf32>
    %217 = arith.addf %216, %208 : vector<5x80xf32>
    %cst_180 = arith.constant 1.000000e+00 : f32
    %218 = vector.broadcast %cst_180 : f32 to vector<5x80xf32>
    %219 = arith.mulf %214, %218 : vector<5x80xf32>
    %220 = arith.subf %217, %219 : vector<5x80xf32>
    %c0_181 = arith.constant 0 : index
    %c0_182 = arith.constant 0 : index
    %c0_183 = arith.constant 0 : index
    %221 = vector.load %arg16[%c0_181, %c0_182, %c0_183] : memref<2x5x80xf32, #tpu.memory_space<vmem>>, vector<1x5x80xf32>
    %222 = vector.shape_cast %221 : vector<1x5x80xf32> to vector<5x80xf32>
    %223 = vector.shape_cast %220 : vector<5x80xf32> to vector<1x5x80xf32>
    tpu.vector_store %arg16[%c0_181, %c0_182, %c0_183], %223 {strides = array<i32>} : memref<2x5x80xf32, #tpu.memory_space<vmem>>, vector<1x5x80xf32>,
    %cst_184 = arith.constant 1.000000e+00 : f32
    %224 = vector.broadcast %cst_184 : f32 to vector<5x80xf32>
    %225 = arith.cmpf ogt, %220, %224 : vector<5x80xf32>
    %226 = arith.extui %225 : vector<5x80xi1> to vector<5x80xi32>
    %227 = arith.sitofp %226 : vector<5x80xi32> to vector<5x80xf32>
    %c0_185 = arith.constant 0 : index
    %c0_186 = arith.constant 0 : index
    %228 = vector.load %arg9[%c0_185, %c0_186] : memref<1x10xf32, #tpu.memory_space<vmem>>, vector<1x10xf32>
    %229 = vector.extract_strided_slice %227 {offsets = [0, 0], sizes = [1, 80], strides = [1, 1]} : vector<5x80xf32> to vector<1x80xf32>
    %c0_187 = arith.constant 0 : index
    %c0_188 = arith.constant 0 : index
    %c0_189 = arith.constant 0 : index
    %230 = vector.load %arg8[%c0_187, %c0_188, %c0_189] : memref<5x80x10xf32, #tpu.memory_space<vmem>>, vector<1x80x10xf32>
    %231 = vector.shape_cast %230 : vector<1x80x10xf32> to vector<80x10xf32>
    %cst_190 = arith.constant dense<0.000000e+00> : vector<1x10xf32>
    %232 = tpu.matmul %229, %231, %cst_190 {dimension_numbers = #tpu.dot_dimension_numbers<[1], [0], [0], [1], [0, 0, 1, 1], [], []>} : vector<1x80xf32>, vector<80x10xf32>, vector<1x10xf32> -> vector<1x10xf32>
    %233 = arith.addf %228, %232 : vector<1x10xf32>
    %234 = vector.extract_strided_slice %227 {offsets = [1, 0], sizes = [1, 80], strides = [1, 1]} : vector<5x80xf32> to vector<1x80xf32>
    %c1_191 = arith.constant 1 : index
    %c0_192 = arith.constant 0 : index
    %c0_193 = arith.constant 0 : index
    %235 = vector.load %arg8[%c1_191, %c0_192, %c0_193] : memref<5x80x10xf32, #tpu.memory_space<vmem>>, vector<1x80x10xf32>
    %236 = vector.shape_cast %235 : vector<1x80x10xf32> to vector<80x10xf32>
    %cst_194 = arith.constant dense<0.000000e+00> : vector<1x10xf32>
    %237 = tpu.matmul %234, %236, %cst_194 {dimension_numbers = #tpu.dot_dimension_numbers<[1], [0], [0], [1], [0, 0, 1, 1], [], []>} : vector<1x80xf32>, vector<80x10xf32>, vector<1x10xf32> -> vector<1x10xf32>
    %238 = arith.addf %233, %237 : vector<1x10xf32>
    %239 = vector.extract_strided_slice %227 {offsets = [2, 0], sizes = [1, 80], strides = [1, 1]} : vector<5x80xf32> to vector<1x80xf32>
    %c2_195 = arith.constant 2 : index
    %c0_196 = arith.constant 0 : index
    %c0_197 = arith.constant 0 : index
    %240 = vector.load %arg8[%c2_195, %c0_196, %c0_197] : memref<5x80x10xf32, #tpu.memory_space<vmem>>, vector<1x80x10xf32>
    %241 = vector.shape_cast %240 : vector<1x80x10xf32> to vector<80x10xf32>
    %cst_198 = arith.constant dense<0.000000e+00> : vector<1x10xf32>
    %242 = tpu.matmul %239, %241, %cst_198 {dimension_numbers = #tpu.dot_dimension_numbers<[1], [0], [0], [1], [0, 0, 1, 1], [], []>} : vector<1x80xf32>, vector<80x10xf32>, vector<1x10xf32> -> vector<1x10xf32>
    %243 = arith.addf %238, %242 : vector<1x10xf32>
    %244 = vector.extract_strided_slice %227 {offsets = [3, 0], sizes = [1, 80], strides = [1, 1]} : vector<5x80xf32> to vector<1x80xf32>
    %c3_199 = arith.constant 3 : index
    %c0_200 = arith.constant 0 : index
    %c0_201 = arith.constant 0 : index
    %245 = vector.load %arg8[%c3_199, %c0_200, %c0_201] : memref<5x80x10xf32, #tpu.memory_space<vmem>>, vector<1x80x10xf32>
    %246 = vector.shape_cast %245 : vector<1x80x10xf32> to vector<80x10xf32>
    %cst_202 = arith.constant dense<0.000000e+00> : vector<1x10xf32>
    %247 = tpu.matmul %244, %246, %cst_202 {dimension_numbers = #tpu.dot_dimension_numbers<[1], [0], [0], [1], [0, 0, 1, 1], [], []>} : vector<1x80xf32>, vector<80x10xf32>, vector<1x10xf32> -> vector<1x10xf32>
    %248 = arith.addf %243, %247 : vector<1x10xf32>
    %249 = vector.extract_strided_slice %227 {offsets = [4, 0], sizes = [1, 80], strides = [1, 1]} : vector<5x80xf32> to vector<1x80xf32>
    %c4_203 = arith.constant 4 : index
    %c0_204 = arith.constant 0 : index
    %c0_205 = arith.constant 0 : index
    %250 = vector.load %arg8[%c4_203, %c0_204, %c0_205] : memref<5x80x10xf32, #tpu.memory_space<vmem>>, vector<1x80x10xf32>
    %251 = vector.shape_cast %250 : vector<1x80x10xf32> to vector<80x10xf32>
    %cst_206 = arith.constant dense<0.000000e+00> : vector<1x10xf32>
    %252 = tpu.matmul %249, %251, %cst_206 {dimension_numbers = #tpu.dot_dimension_numbers<[1], [0], [0], [1], [0, 0, 1, 1], [], []>} : vector<1x80xf32>, vector<80x10xf32>, vector<1x10xf32> -> vector<1x10xf32>
    %253 = arith.addf %248, %252 : vector<1x10xf32>
    %c0_207 = arith.constant 0 : index
    %c0_208 = arith.constant 0 : index
    %c0_209 = arith.constant 0 : index
    %254 = vector.load %arg17[%c0_207, %c0_208, %c0_209] : memref<2x1x10xf32, #tpu.memory_space<vmem>>, vector<1x1x10xf32>
    %255 = vector.shape_cast %254 : vector<1x1x10xf32> to vector<1x10xf32>
    %cst_210 = arith.constant 1.000000e+00 : f32
    %256 = vector.broadcast %cst_210 : f32 to vector<1x10xf32>
    %257 = arith.cmpf ogt, %255, %256 : vector<1x10xf32>
    %258 = arith.extui %257 : vector<1x10xi1> to vector<1x10xi32>
    %259 = arith.sitofp %258 : vector<1x10xi32> to vector<1x10xf32>
    %cst_211 = arith.constant 5.000000e-01 : f32
    %260 = vector.broadcast %cst_211 : f32 to vector<1x10xf32>
    %261 = arith.mulf %260, %255 : vector<1x10xf32>
    %262 = arith.addf %261, %253 : vector<1x10xf32>
    %cst_212 = arith.constant 1.000000e+00 : f32
    %263 = vector.broadcast %cst_212 : f32 to vector<1x10xf32>
    %264 = arith.mulf %259, %263 : vector<1x10xf32>
    %265 = arith.subf %262, %264 : vector<1x10xf32>
    %c0_213 = arith.constant 0 : index
    %c0_214 = arith.constant 0 : index
    %c0_215 = arith.constant 0 : index
    %266 = vector.load %arg17[%c0_213, %c0_214, %c0_215] : memref<2x1x10xf32, #tpu.memory_space<vmem>>, vector<1x1x10xf32>
    %267 = vector.shape_cast %266 : vector<1x1x10xf32> to vector<1x10xf32>
    %268 = vector.shape_cast %265 : vector<1x10xf32> to vector<1x1x10xf32>
    tpu.vector_store %arg17[%c0_213, %c0_214, %c0_215], %268 {strides = array<i32>} : memref<2x1x10xf32, #tpu.memory_space<vmem>>, vector<1x1x10xf32>,
    %cst_216 = arith.constant 1.000000e+00 : f32
    %269 = vector.broadcast %cst_216 : f32 to vector<1x10xf32>
    %270 = arith.cmpf ogt, %265, %269 : vector<1x10xf32>
    %271 = arith.extui %270 : vector<1x10xi1> to vector<1x10xi32>
    %272 = arith.sitofp %271 : vector<1x10xi32> to vector<1x10xf32>
    %c0_217 = arith.constant 0 : index
    %c0_218 = arith.constant 0 : index
    %c0_219 = arith.constant 0 : index
    %273 = vector.load %arg10[%c0_217, %c0_218, %c0_219] : memref<1x2x10xf32, #tpu.memory_space<vmem>>, vector<1x1x10xf32>
    %274 = vector.shape_cast %273 : vector<1x1x10xf32> to vector<1x10xf32>
    %275 = vector.shape_cast %272 : vector<1x10xf32> to vector<1x1x10xf32>
    tpu.vector_store %arg10[%c0_217, %c0_218, %c0_219], %275 {strides = array<i32>} : memref<1x2x10xf32, #tpu.memory_space<vmem>>, vector<1x1x10xf32>,
    %c1_220 = arith.constant 1 : index
    %c0_221 = arith.constant 0 : index
    %c0_222 = arith.constant 0 : index
    %276 = vector.load %arg15[%c1_220, %c0_221, %c0_222] : memref<2x13x104xf32, #tpu.memory_space<vmem>>, vector<1x10x104xf32>
    %277 = vector.shape_cast %276 : vector<1x10x104xf32> to vector<10x104xf32>
    %c0_223 = arith.constant 0 : index
    %c0_224 = arith.constant 0 : index
    %c0_225 = arith.constant 0 : index
    %278 = vector.load %arg6[%c0_223, %c0_224, %c0_225] : memref<4x104x256xf32, #tpu.memory_space<vmem>>, vector<1x104x256xf32>
    %279 = vector.shape_cast %278 : vector<1x104x256xf32> to vector<104x256xf32>
    %cst_226 = arith.constant dense<0.000000e+00> : vector<10x256xf32>
    %280 = tpu.matmul %277, %279, %cst_226 {dimension_numbers = #tpu.dot_dimension_numbers<[1], [0], [0], [1], [0, 0, 1, 1], [], []>} : vector<10x104xf32>, vector<104x256xf32>, vector<10x256xf32> -> vector<10x256xf32>
    %c1_227 = arith.constant 1 : index
    %c1_228 = arith.constant 1 : index
    %c0_229 = arith.constant 0 : index
    %281 = vector.load %arg15[%c1_227, %c1_228, %c0_229] : memref<2x13x104xf32, #tpu.memory_space<vmem>>, vector<1x10x104xf32>
    %282 = vector.shape_cast %281 : vector<1x10x104xf32> to vector<10x104xf32>
    %c1_230 = arith.constant 1 : index
    %c0_231 = arith.constant 0 : index
    %c0_232 = arith.constant 0 : index
    %283 = vector.load %arg6[%c1_230, %c0_231, %c0_232] : memref<4x104x256xf32, #tpu.memory_space<vmem>>, vector<1x104x256xf32>
    %284 = vector.shape_cast %283 : vector<1x104x256xf32> to vector<104x256xf32>
    %cst_233 = arith.constant dense<0.000000e+00> : vector<10x256xf32>
    %285 = tpu.matmul %282, %284, %cst_233 {dimension_numbers = #tpu.dot_dimension_numbers<[1], [0], [0], [1], [0, 0, 1, 1], [], []>} : vector<10x104xf32>, vector<104x256xf32>, vector<10x256xf32> -> vector<10x256xf32>
    %286 = arith.addf %280, %285 : vector<10x256xf32>
    %c1_234 = arith.constant 1 : index
    %c2_235 = arith.constant 2 : index
    %c0_236 = arith.constant 0 : index
    %287 = vector.load %arg15[%c1_234, %c2_235, %c0_236] : memref<2x13x104xf32, #tpu.memory_space<vmem>>, vector<1x10x104xf32>
    %288 = vector.shape_cast %287 : vector<1x10x104xf32> to vector<10x104xf32>
    %c2_237 = arith.constant 2 : index
    %c0_238 = arith.constant 0 : index
    %c0_239 = arith.constant 0 : index
    %289 = vector.load %arg6[%c2_237, %c0_238, %c0_239] : memref<4x104x256xf32, #tpu.memory_space<vmem>>, vector<1x104x256xf32>
    %290 = vector.shape_cast %289 : vector<1x104x256xf32> to vector<104x256xf32>
    %cst_240 = arith.constant dense<0.000000e+00> : vector<10x256xf32>
    %291 = tpu.matmul %288, %290, %cst_240 {dimension_numbers = #tpu.dot_dimension_numbers<[1], [0], [0], [1], [0, 0, 1, 1], [], []>} : vector<10x104xf32>, vector<104x256xf32>, vector<10x256xf32> -> vector<10x256xf32>
    %292 = arith.addf %286, %291 : vector<10x256xf32>
    %c1_241 = arith.constant 1 : index
    %c3_242 = arith.constant 3 : index
    %c0_243 = arith.constant 0 : index
    %293 = vector.load %arg15[%c1_241, %c3_242, %c0_243] : memref<2x13x104xf32, #tpu.memory_space<vmem>>, vector<1x10x104xf32>
    %294 = vector.shape_cast %293 : vector<1x10x104xf32> to vector<10x104xf32>
    %c3_244 = arith.constant 3 : index
    %c0_245 = arith.constant 0 : index
    %c0_246 = arith.constant 0 : index
    %295 = vector.load %arg6[%c3_244, %c0_245, %c0_246] : memref<4x104x256xf32, #tpu.memory_space<vmem>>, vector<1x104x256xf32>
    %296 = vector.shape_cast %295 : vector<1x104x256xf32> to vector<104x256xf32>
    %cst_247 = arith.constant dense<0.000000e+00> : vector<10x256xf32>
    %297 = tpu.matmul %294, %296, %cst_247 {dimension_numbers = #tpu.dot_dimension_numbers<[1], [0], [0], [1], [0, 0, 1, 1], [], []>} : vector<10x104xf32>, vector<104x256xf32>, vector<10x256xf32> -> vector<10x256xf32>
    %298 = arith.addf %292, %297 : vector<10x256xf32>
    %299 = vector.extract_strided_slice %298 {offsets = [0, 0], sizes = [10, 128], strides = [1, 1]} : vector<10x256xf32> to vector<10x128xf32>
    %300 = vector.extract_strided_slice %298 {offsets = [0, 128], sizes = [10, 128], strides = [1, 1]} : vector<10x256xf32> to vector<10x128xf32>
    %301 = arith.maximumf %299, %300 : vector<10x128xf32>
    %c0_248 = arith.constant 0 : index
    %c0_249 = arith.constant 0 : index
    %302 = vector.load %arg18[%c0_248, %c0_249] : memref<60x128xf32, #tpu.memory_space<vmem>>, vector<10x128xf32>
    tpu.vector_store %arg18[%c0_248, %c0_249], %301 {strides = array<i32>} : memref<60x128xf32, #tpu.memory_space<vmem>>, vector<10x128xf32>,
    %c0_250 = arith.constant 0 : index
    %c0_251 = arith.constant 0 : index
    %303 = tpu.strided_load %arg18[%c0_250, %c0_251] {strides = array<i32: 2, 1>} : memref<60x128xf32, #tpu.memory_space<vmem>>, vector<5x128xf32>
    %c1_252 = arith.constant 1 : index
    %c0_253 = arith.constant 0 : index
    %304 = tpu.strided_load %arg18[%c1_252, %c0_253] {strides = array<i32: 2, 1>} : memref<60x128xf32, #tpu.memory_space<vmem>>, vector<5x128xf32>
    %305 = arith.maximumf %303, %304 : vector<5x128xf32>
    %306 = vector.extract_strided_slice %305 {offsets = [0, 0], sizes = [5, 80], strides = [1, 1]} : vector<5x128xf32> to vector<5x80xf32>
    %c0_254 = arith.constant 0 : index
    %c0_255 = arith.constant 0 : index
    %307 = vector.load %arg7[%c0_254, %c0_255] : memref<1x80xf32, #tpu.memory_space<vmem>>, vector<1x80xf32>
    %308 = vector.broadcast %307 : vector<1x80xf32> to vector<5x80xf32>
    %309 = arith.addf %306, %308 : vector<5x80xf32>
    %c1_256 = arith.constant 1 : index
    %c0_257 = arith.constant 0 : index
    %c0_258 = arith.constant 0 : index
    %310 = vector.load %arg16[%c1_256, %c0_257, %c0_258] : memref<2x5x80xf32, #tpu.memory_space<vmem>>, vector<1x5x80xf32>
    %311 = vector.shape_cast %310 : vector<1x5x80xf32> to vector<5x80xf32>
    %cst_259 = arith.constant 1.000000e+00 : f32
    %312 = vector.broadcast %cst_259 : f32 to vector<5x80xf32>
    %313 = arith.cmpf ogt, %311, %312 : vector<5x80xf32>
    %314 = arith.extui %313 : vector<5x80xi1> to vector<5x80xi32>
    %315 = arith.sitofp %314 : vector<5x80xi32> to vector<5x80xf32>
    %cst_260 = arith.constant 5.000000e-01 : f32
    %316 = vector.broadcast %cst_260 : f32 to vector<5x80xf32>
    %317 = arith.mulf %316, %311 : vector<5x80xf32>
    %318 = arith.addf %317, %309 : vector<5x80xf32>
    %cst_261 = arith.constant 1.000000e+00 : f32
    %319 = vector.broadcast %cst_261 : f32 to vector<5x80xf32>
    %320 = arith.mulf %315, %319 : vector<5x80xf32>
    %321 = arith.subf %318, %320 : vector<5x80xf32>
    %c1_262 = arith.constant 1 : index
    %c0_263 = arith.constant 0 : index
    %c0_264 = arith.constant 0 : index
    %322 = vector.load %arg16[%c1_262, %c0_263, %c0_264] : memref<2x5x80xf32, #tpu.memory_space<vmem>>, vector<1x5x80xf32>
    %323 = vector.shape_cast %322 : vector<1x5x80xf32> to vector<5x80xf32>
    %324 = vector.shape_cast %321 : vector<5x80xf32> to vector<1x5x80xf32>
    tpu.vector_store %arg16[%c1_262, %c0_263, %c0_264], %324 {strides = array<i32>} : memref<2x5x80xf32, #tpu.memory_space<vmem>>, vector<1x5x80xf32>,
    %cst_265 = arith.constant 1.000000e+00 : f32
    %325 = vector.broadcast %cst_265 : f32 to vector<5x80xf32>
    %326 = arith.cmpf ogt, %321, %325 : vector<5x80xf32>
    %327 = arith.extui %326 : vector<5x80xi1> to vector<5x80xi32>
    %328 = arith.sitofp %327 : vector<5x80xi32> to vector<5x80xf32>
    %c0_266 = arith.constant 0 : index
    %c0_267 = arith.constant 0 : index
    %329 = vector.load %arg9[%c0_266, %c0_267] : memref<1x10xf32, #tpu.memory_space<vmem>>, vector<1x10xf32>
    %330 = vector.extract_strided_slice %328 {offsets = [0, 0], sizes = [1, 80], strides = [1, 1]} : vector<5x80xf32> to vector<1x80xf32>
    %c0_268 = arith.constant 0 : index
    %c0_269 = arith.constant 0 : index
    %c0_270 = arith.constant 0 : index
    %331 = vector.load %arg8[%c0_268, %c0_269, %c0_270] : memref<5x80x10xf32, #tpu.memory_space<vmem>>, vector<1x80x10xf32>
    %332 = vector.shape_cast %331 : vector<1x80x10xf32> to vector<80x10xf32>
    %cst_271 = arith.constant dense<0.000000e+00> : vector<1x10xf32>
    %333 = tpu.matmul %330, %332, %cst_271 {dimension_numbers = #tpu.dot_dimension_numbers<[1], [0], [0], [1], [0, 0, 1, 1], [], []>} : vector<1x80xf32>, vector<80x10xf32>, vector<1x10xf32> -> vector<1x10xf32>
    %334 = arith.addf %329, %333 : vector<1x10xf32>
    %335 = vector.extract_strided_slice %328 {offsets = [1, 0], sizes = [1, 80], strides = [1, 1]} : vector<5x80xf32> to vector<1x80xf32>
    %c1_272 = arith.constant 1 : index
    %c0_273 = arith.constant 0 : index
    %c0_274 = arith.constant 0 : index
    %336 = vector.load %arg8[%c1_272, %c0_273, %c0_274] : memref<5x80x10xf32, #tpu.memory_space<vmem>>, vector<1x80x10xf32>
    %337 = vector.shape_cast %336 : vector<1x80x10xf32> to vector<80x10xf32>
    %cst_275 = arith.constant dense<0.000000e+00> : vector<1x10xf32>
    %338 = tpu.matmul %335, %337, %cst_275 {dimension_numbers = #tpu.dot_dimension_numbers<[1], [0], [0], [1], [0, 0, 1, 1], [], []>} : vector<1x80xf32>, vector<80x10xf32>, vector<1x10xf32> -> vector<1x10xf32>
    %339 = arith.addf %334, %338 : vector<1x10xf32>
    %340 = vector.extract_strided_slice %328 {offsets = [2, 0], sizes = [1, 80], strides = [1, 1]} : vector<5x80xf32> to vector<1x80xf32>
    %c2_276 = arith.constant 2 : index
    %c0_277 = arith.constant 0 : index
    %c0_278 = arith.constant 0 : index
    %341 = vector.load %arg8[%c2_276, %c0_277, %c0_278] : memref<5x80x10xf32, #tpu.memory_space<vmem>>, vector<1x80x10xf32>
    %342 = vector.shape_cast %341 : vector<1x80x10xf32> to vector<80x10xf32>
    %cst_279 = arith.constant dense<0.000000e+00> : vector<1x10xf32>
    %343 = tpu.matmul %340, %342, %cst_279 {dimension_numbers = #tpu.dot_dimension_numbers<[1], [0], [0], [1], [0, 0, 1, 1], [], []>} : vector<1x80xf32>, vector<80x10xf32>, vector<1x10xf32> -> vector<1x10xf32>
    %344 = arith.addf %339, %343 : vector<1x10xf32>
    %345 = vector.extract_strided_slice %328 {offsets = [3, 0], sizes = [1, 80], strides = [1, 1]} : vector<5x80xf32> to vector<1x80xf32>
    %c3_280 = arith.constant 3 : index
    %c0_281 = arith.constant 0 : index
    %c0_282 = arith.constant 0 : index
    %346 = vector.load %arg8[%c3_280, %c0_281, %c0_282] : memref<5x80x10xf32, #tpu.memory_space<vmem>>, vector<1x80x10xf32>
    %347 = vector.shape_cast %346 : vector<1x80x10xf32> to vector<80x10xf32>
    %cst_283 = arith.constant dense<0.000000e+00> : vector<1x10xf32>
    %348 = tpu.matmul %345, %347, %cst_283 {dimension_numbers = #tpu.dot_dimension_numbers<[1], [0], [0], [1], [0, 0, 1, 1], [], []>} : vector<1x80xf32>, vector<80x10xf32>, vector<1x10xf32> -> vector<1x10xf32>
    %349 = arith.addf %344, %348 : vector<1x10xf32>
    %350 = vector.extract_strided_slice %328 {offsets = [4, 0], sizes = [1, 80], strides = [1, 1]} : vector<5x80xf32> to vector<1x80xf32>
    %c4_284 = arith.constant 4 : index
    %c0_285 = arith.constant 0 : index
    %c0_286 = arith.constant 0 : index
    %351 = vector.load %arg8[%c4_284, %c0_285, %c0_286] : memref<5x80x10xf32, #tpu.memory_space<vmem>>, vector<1x80x10xf32>
    %352 = vector.shape_cast %351 : vector<1x80x10xf32> to vector<80x10xf32>
    %cst_287 = arith.constant dense<0.000000e+00> : vector<1x10xf32>
    %353 = tpu.matmul %350, %352, %cst_287 {dimension_numbers = #tpu.dot_dimension_numbers<[1], [0], [0], [1], [0, 0, 1, 1], [], []>} : vector<1x80xf32>, vector<80x10xf32>, vector<1x10xf32> -> vector<1x10xf32>
    %354 = arith.addf %349, %353 : vector<1x10xf32>
    %c1_288 = arith.constant 1 : index
    %c0_289 = arith.constant 0 : index
    %c0_290 = arith.constant 0 : index
    %355 = vector.load %arg17[%c1_288, %c0_289, %c0_290] : memref<2x1x10xf32, #tpu.memory_space<vmem>>, vector<1x1x10xf32>
    %356 = vector.shape_cast %355 : vector<1x1x10xf32> to vector<1x10xf32>
    %cst_291 = arith.constant 1.000000e+00 : f32
    %357 = vector.broadcast %cst_291 : f32 to vector<1x10xf32>
    %358 = arith.cmpf ogt, %356, %357 : vector<1x10xf32>
    %359 = arith.extui %358 : vector<1x10xi1> to vector<1x10xi32>
    %360 = arith.sitofp %359 : vector<1x10xi32> to vector<1x10xf32>
    %cst_292 = arith.constant 5.000000e-01 : f32
    %361 = vector.broadcast %cst_292 : f32 to vector<1x10xf32>
    %362 = arith.mulf %361, %356 : vector<1x10xf32>
    %363 = arith.addf %362, %354 : vector<1x10xf32>
    %cst_293 = arith.constant 1.000000e+00 : f32
    %364 = vector.broadcast %cst_293 : f32 to vector<1x10xf32>
    %365 = arith.mulf %360, %364 : vector<1x10xf32>
    %366 = arith.subf %363, %365 : vector<1x10xf32>
    %c1_294 = arith.constant 1 : index
    %c0_295 = arith.constant 0 : index
    %c0_296 = arith.constant 0 : index
    %367 = vector.load %arg17[%c1_294, %c0_295, %c0_296] : memref<2x1x10xf32, #tpu.memory_space<vmem>>, vector<1x1x10xf32>
    %368 = vector.shape_cast %367 : vector<1x1x10xf32> to vector<1x10xf32>
    %369 = vector.shape_cast %366 : vector<1x10xf32> to vector<1x1x10xf32>
    tpu.vector_store %arg17[%c1_294, %c0_295, %c0_296], %369 {strides = array<i32>} : memref<2x1x10xf32, #tpu.memory_space<vmem>>, vector<1x1x10xf32>,
    %cst_297 = arith.constant 1.000000e+00 : f32
    %370 = vector.broadcast %cst_297 : f32 to vector<1x10xf32>
    %371 = arith.cmpf ogt, %366, %370 : vector<1x10xf32>
    %372 = arith.extui %371 : vector<1x10xi1> to vector<1x10xi32>
    %373 = arith.sitofp %372 : vector<1x10xi32> to vector<1x10xf32>
    %c0_298 = arith.constant 0 : index
    %c1_299 = arith.constant 1 : index
    %c0_300 = arith.constant 0 : index
    %374 = vector.load %arg10[%c0_298, %c1_299, %c0_300] : memref<1x2x10xf32, #tpu.memory_space<vmem>>, vector<1x1x10xf32>
    %375 = vector.shape_cast %374 : vector<1x1x10xf32> to vector<1x10xf32>
    %376 = vector.shape_cast %373 : vector<1x10xf32> to vector<1x1x10xf32>
    tpu.vector_store %arg10[%c0_298, %c1_299, %c0_300], %376 {strides = array<i32>} : memref<1x2x10xf32, #tpu.memory_space<vmem>>, vector<1x1x10xf32>,
    return
  }
  func.func @transform_0(%arg0: i32) -> (i32, i32, i32) {
    %c0_i32 = arith.constant 0 : i32
    %c0_i32_0 = arith.constant 0 : i32
    %c0_i32_1 = arith.constant 0 : i32
    %c0_i32_2 = arith.constant 0 : i32
    return %c0_i32, %c0_i32_0, %c0_i32_1 : i32, i32, i32
  }
  func.func @transform_1(%arg0: i32) -> (i32, i32, i32) {
    %c0_i32 = arith.constant 0 : i32
    %c0_i32_0 = arith.constant 0 : i32
    %c0_i32_1 = arith.constant 0 : i32
    %c0_i32_2 = arith.constant 0 : i32
    return %c0_i32, %c0_i32_0, %c0_i32_1 : i32, i32, i32
  }
  func.func @transform_2(%arg0: i32) -> (i32, i32) {
    %c0_i32 = arith.constant 0 : i32
    %c0_i32_0 = arith.constant 0 : i32
    %c0_i32_1 = arith.constant 0 : i32
    return %c0_i32, %c0_i32_0 : i32, i32
  }
  func.func @transform_3(%arg0: i32) -> (i32, i32, i32) {
    %c0_i32 = arith.constant 0 : i32
    %c0_i32_0 = arith.constant 0 : i32
    %c0_i32_1 = arith.constant 0 : i32
    %c0_i32_2 = arith.constant 0 : i32
    return %c0_i32, %c0_i32_0, %c0_i32_1 : i32, i32, i32
  }
  func.func @transform_4(%arg0: i32) -> (i32, i32) {
    %c0_i32 = arith.constant 0 : i32
    %c0_i32_0 = arith.constant 0 : i32
    %c0_i32_1 = arith.constant 0 : i32
    return %c0_i32, %c0_i32_0 : i32, i32
  }
  func.func @transform_5(%arg0: i32) -> (i32, i32, i32) {
    %c0_i32 = arith.constant 0 : i32
    %c0_i32_0 = arith.constant 0 : i32
    %c0_i32_1 = arith.constant 0 : i32
    %c0_i32_2 = arith.constant 0 : i32
    return %c0_i32, %c0_i32_0, %c0_i32_1 : i32, i32, i32
  }
  func.func @transform_6(%arg0: i32) -> (i32, i32) {
    %c0_i32 = arith.constant 0 : i32
    %c0_i32_0 = arith.constant 0 : i32
    %c0_i32_1 = arith.constant 0 : i32
    return %c0_i32, %c0_i32_0 : i32, i32
  }
  func.func @transform_7(%arg0: i32) -> (i32, i32, i32) {
    %c0_i32 = arith.constant 0 : i32
    %c0_i32_0 = arith.constant 0 : i32
    %c0_i32_1 = arith.constant 0 : i32
    %c0_i32_2 = arith.constant 0 : i32
    return %c0_i32, %c0_i32_0, %c0_i32_1 : i32, i32, i32
  }
  func.func @transform_8(%arg0: i32) -> (i32, i32) {
    %c0_i32 = arith.constant 0 : i32
    %c0_i32_0 = arith.constant 0 : i32
    %c0_i32_1 = arith.constant 0 : i32
    return %c0_i32, %c0_i32_0 : i32, i32
  }
  func.func @transform_9(%arg0: i32) -> (i32, i32, i32) {
    %c0_i32 = arith.constant 0 : i32
    %c0_i32_0 = arith.constant 0 : i32
    %c0_i32_1 = arith.constant 0 : i32
    return %arg0, %c0_i32, %c0_i32_0 : i32, i32, i32
  }
}

</mosaic_0001>

<bundles_post_ra>
// kernel: snn_forward.1
= control target key start
LH: loop header
LB: loop body
LE: loop exit
PB: predicated region body
PF: predicated region fallthrough
CT: control target
= control target key end

     0   :  { %14 = vsyncpa [#allocation11], 0  ;;  %s7578_s0 = inlined_call_operand.vmem [shape: f32[2,64,64], index: 0, kind: input, shape index: {}]   ;;  %s7579_s1 = inlined_call_operand.hbm [shape: f32[5,64,256], index: 1, kind: input, shape index: {}]   ;;  %s7580_s2 = inlined_call_operand.vmem [shape: f32[1,120], index: 2, kind: input, shape index: {}]   ;;  %s7581_s3 = inlined_call_operand.hbm [shape: f32[5,120,256], index: 3, kind: input, shape index: {}]   ;;  %s7582_s4 = inlined_call_operand.vmem [shape: f32[1,104], index: 4, kind: input, shape index: {}]   ;;  %s7583_s5 = inlined_call_operand.hbm [shape: f32[4,104,256], index: 5, kind: input, shape index: {}]   ;;  %s7584_s6 = inlined_call_operand.vmem [shape: f32[1,80], index: 6, kind: input, shape index: {}]   ;;  %s7585_s7 = inlined_call_operand.vmem [shape: f32[5,80,10], index: 7, kind: input, shape index: {}]   ;;  %s7586_s8 = inlined_call_operand.vmem [shape: f32[1,10], index: 8, kind: input, shape index: {}]   ;;  %s7587_s9 = inlined_call_operand.vmem [shape: f32[16,2,10], index: 9, kind: output, shape index: {}]  }
   0x1   :  { %15 = vsyncpa [#allocation13], 0  ;;  %s4987_s30 = smov 0  }
   0x2 LB: > { %s4993_s10 = sadd.s32 4294967295, %s4928_s30   ;;  %p4327_p0 = scmp.ge.s32.totalorder %s4928_s30, 1  ;;  %s4928_s30 = sphi %s4987_s30, %s21_s30  }
   0x3   : > { %p241_p1 = scmp.lt.s32.totalorder %s4928_s30, 17  ;;  %p4328_p2 = scmp.ne.s32.totalorder %s4993_s10, 0 }
   0x4   : > { %p4795_p3 = scmp.eq.s32.totalorder %s4993_s10, 0  ;;  %s272_s13 = sshll.u32 %s7581_s3, 4  ;;  %s273_s13 = int_to_ptr.hbm [resolvable:$true] %s272_s13 }
   0x5   : > { %p5002_p4 = pnand %p4327_p0, %p241_p1  ;;  %s255_s17 = sshll.u32 %s7579_s1, 4  ;;  %s256_s17 = int_to_ptr.hbm [resolvable:$true] %s255_s17 }
   0x6   : > { %s4930_s18 = smov [#allocation12]   ;;  %s4931_s20 = smov [#allocation10]  }
   0x7   : > { %p4785_p5 = pneg %p5002_p4  ;;  %s274_s19 = sshll.u32 %s4930_s18, 4  ;;  %s275_s19 = int_to_ptr.vmem [resolvable:$true] %s274_s19 }
   0x8   : > { %s257_s21 = sshll.u32 %s4931_s20, 4  ;;  %s289_s24 = sshll.u32 %s7583_s5, 4  ;;  %s258_s21 = int_to_ptr.vmem [resolvable:$true] %s257_s21  ;;  %s290_s24 = int_to_ptr.hbm [resolvable:$true] %s289_s24 }
   0x9   : > { %p4786_p6 = pnand %p4795_p3, %p4785_p5  ;;  %s4932_s25 = smov 256  }
   0xa   : > { %s4933_s26 = smov 16   ;;  %s4934_s27 = smov [#allocation14]  }
   0xb   : > { %4791 = dma.hbm_to_vmem [thread:$0]  (!%p4786_p6), %s273_s13, 19200, %s275_s19, [#allocation13], %s4932_s25, %s4932_s25, %s4933_s26  }
   0xc   : > { %4788 = dma.hbm_to_vmem [thread:$0]  (!%p4786_p6), %s256_s17, 10240, %s258_s21, [#allocation11], %s4932_s25, %s4932_s25, %s4933_s26  }
   0xd   : > { %s291_s28 = sshll.u32 %s4934_s27, 4  ;;  %316 = sbr.rel (%p5002_p4) target bundleno = 1347 (0x543), region = 56  ;;  %s292_s28 = int_to_ptr.vmem [resolvable:$true] %s291_s28 }
   0xe   : > { %4794 = dma.hbm_to_vmem [thread:$0]  (!%p4786_p6), %s290_s24, 13312, %s292_s28, [#allocation13], %s4932_s25, %s4932_s25, %s4933_s26  }
  0x12   : > { %4919 = dma.done.wait (%p4795_p3), [#allocation11], 10240  }
  0x13   : > { %4921 = vsyncadd (%p4795_p3), [#allocation11], 4294957056 }
  0x14   : > { %4923 = dma.done.wait (%p4795_p3), [#allocation13], 32512  }
  0x15   : > { %4925 = vsyncadd (%p4795_p3), [#allocation13], 4294934784  ;;  %p357_p7 = scmp.lt.s32.totalorder %s4993_s10, 15 }
  0x16   : > { %364 = sbr.rel (%p4328_p2) target bundleno = 506 (0x1fa), region = 72 }
  0x17   : > { %s358_s29 = scalar_select %p357_p7, %s4993_s10, 15 }
  0x19   : > { %s4335_s11 = sshll.u32 %s358_s29, 1 }
  0x1a   : > { %s5031_s14 = scalar_lea.vmem %s7587_s9, %s4335_s11 }
  0x1b   : > { %v5035_v0 = vld [vmem:[#allocation10 + $0xf0] sm:$0xff]  ;;  %v5037_v1 = vld [vmem:[#allocation10 + $0xf8] sm:$0xff]  ;;  %v5045_v4 = vld [vmem:[#allocation10 + $0xe0] sm:$0xff]  ;;  %vm436_vm0 = vcmask 523264   ;;  %vm365_vm1 = vcmask 982016   ;;  %vm369_vm2 = vcmask 979968  }
  0x1c   : > { %v5039_v2 = vld [vmem:[#allocation10 + $0x70] sm:$0xff]  ;;  %469 = vmatpush.msra.mxu0 %v5035_v0  ;;  %510 = vmatpush.msra.mxu1 %v5037_v1  ;;  %v5043_v3 = vld [vmem:[#allocation10 + $0x78] sm:$0xff]  ;;  %v5047_v5 = vld [vmem:[#allocation10 + $0xe8] sm:$0xff]  ;;  %vm375_vm3 = vcmask 850944   ;;  %vm377_vm4 = vcmask 847872   ;;  %vm381_vm5 = vcmask 651264  }
  0x1d   : > { %575 = vmatpush.msra.mxu2 %v5039_v2  ;;  %616 = vmatpush.msra.mxu3 %v5043_v3  ;;  %v5051_v6 = vld [vmem:[#allocation10 + $0x60] sm:$0xff]  ;;  %v5053_v7 = vld [vmem:[#allocation10 + $0x68] sm:$0xff]  ;;  %v5055_v8 = vld [vmem:[#allocation10 + $0xd0] sm:$0xff]  ;;  %vm384_vm6 = vcmask 73728  }
  0x1e   : > { %470 = vmatpush.msra.mxu0 %v5045_v4  ;;  %511 = vmatpush.msra.mxu1 %v5047_v5  ;;  %v5059_v9 = vld [vmem:[#allocation10 + $0xd8] sm:$0xff]  ;;  %v5061_v10 = vld [vmem:[#allocation10 + $0x50] sm:$0xff]  ;;  %v5067_v12 = vld [vmem:[#allocation10 + $0xc0] sm:$0xff] }
  0x1f   : > { %v5063_v11 = vld [vmem:[#allocation10 + $0x58] sm:$0xff]  ;;  %576 = vmatpush.msra.mxu2 %v5051_v6  ;;  %617 = vmatpush.msra.mxu3 %v5053_v7  ;;  %v5069_v13 = vld [vmem:[#allocation10 + $0xc8] sm:$0xff]  ;;  %v5073_v14 = vld [vmem:[#allocation10 + $0x40] sm:$0xff] }
  0x20   : > { %471 = vmatpush.msra.mxu0 %v5055_v8  ;;  %512 = vmatpush.msra.mxu1 %v5059_v9  ;;  %v5075_v15 = vld [vmem:[#allocation10 + $0x48] sm:$0xff]  ;;  %v5079_v16 = vld [vmem:[#allocation10 + $0xb0] sm:$0xff]  ;;  %v5081_v17 = vld [vmem:[#allocation10 + $0xb8] sm:$0xff] }
  0x21   : > { %577 = vmatpush.msra.mxu2 %v5061_v10  ;;  %618 = vmatpush.msra.mxu3 %v5063_v11  ;;  %v5085_v18 = vld [vmem:[#allocation10 + $0x30] sm:$0xff]  ;;  %v5087_v19 = vld [vmem:[#allocation10 + $0x38] sm:$0xff]  ;;  %v5091_v20 = vld [vmem:[#allocation10 + $0xa0] sm:$0xff] }
  0x22   : > { %472 = vmatpush.msra.mxu0 %v5067_v12  ;;  %513 = vmatpush.msra.mxu1 %v5069_v13  ;;  %v5093_v21 = vld [vmem:[#allocation10 + $0xa8] sm:$0xff]  ;;  %v5097_v22 = vld [vmem:[#allocation10 + $0x20] sm:$0xff]  ;;  %v5103_v24 = vld [vmem:[#allocation10 + $0x90] sm:$0xff] }
  0x23   : > { %578 = vmatpush.msra.mxu2 %v5073_v14  ;;  %619 = vmatpush.msra.mxu3 %v5075_v15  ;;  %v5099_v23 = vld [vmem:[#allocation10 + $0x28] sm:$0xff]  ;;  %v5105_v25 = vld [vmem:[#allocation10 + $0x98] sm:$0xff]  ;;  %v5109_v26 = vld [vmem:[#allocation10 + $0x10] sm:$0xff] }
  0x24   : > { %473 = vmatpush.msra.mxu0 %v5079_v16  ;;  %514 = vmatpush.msra.mxu1 %v5081_v17  ;;  %v5111_v27 = vld [vmem:[#allocation10 + $0x18] sm:$0xff]  ;;  %v5115_v28 = vld [vmem:[#allocation10 + $0x80] sm:$0xff]  ;;  %v5117_v29 = vld [vmem:[#allocation10 + $0x88] sm:$0xff] }
  0x25   : > { %579 = vmatpush.msra.mxu2 %v5085_v18  ;;  %620 = vmatpush.msra.mxu3 %v5087_v19  ;;  %v5121_v30 = vld [vmem:[#allocation10] sm:$0xff]  ;;  %v5123_v31 = vld [vmem:[#allocation10 + $0x8] sm:$0xff]  ;;  %v5137_v34 = vld [vmem:[#allocation10 + $0x1f0] sm:$0xff] }
  0x26   : > { %474 = vmatpush.msra.mxu0 %v5091_v20  ;;  %515 = vmatpush.msra.mxu1 %v5093_v21  ;;  %v411_v32 = vld [vmem:[%s7578_s0 + $0x1] sm:$0xff]  ;;  %v5139_v35 = vld [vmem:[#allocation10 + $0x1f8] sm:$0xff]  ;;  %v5149_v38 = vld [vmem:[#allocation10 + $0x1e0] sm:$0xff] }
  0x27   : > { %580 = vmatpush.msra.mxu2 %v5097_v22  ;;  %621 = vmatpush.msra.mxu3 %v5099_v23  ;;  %v387_v33 = vld [vmem:[%s7578_s0] sm:$0xff]  ;;  %v5145_v37 = vld [vmem:[#allocation10 + $0x178] sm:$0xff]  ;;  %v5155_v40 = vld [vmem:[#allocation10 + $0x160] sm:$0xff] }
  0x28   : > { %475 = vmatpush.msra.mxu0 %v5103_v24  ;;  %516 = vmatpush.msra.mxu1 %v5105_v25  ;;  %v5143_v36 = vld [vmem:[#allocation10 + $0x170] sm:$0xff]  ;;  %v5151_v39 = vld [vmem:[#allocation10 + $0x1e8] sm:$0xff]  ;;  %v5163_v43 = vld [vmem:[#allocation10 + $0x1d8] sm:$0xff] }
  0x29   : > { %581 = vmatpush.msra.mxu2 %v5109_v26  ;;  %622 = vmatpush.msra.mxu3 %v5111_v27  ;;  %v5157_v41 = vld [vmem:[#allocation10 + $0x168] sm:$0xff]  ;;  %v5161_v42 = vld [vmem:[#allocation10 + $0x1d0] sm:$0xff]  ;;  %v5169_v45 = vld [vmem:[#allocation10 + $0x158] sm:$0xff] }
  0x2a   : > { %476 = vmatpush.msra.mxu0 %v5115_v28  ;;  %517 = vmatpush.msra.mxu1 %v5117_v29  ;;  %v5165_v44 = vld [vmem:[#allocation10 + $0x150] sm:$0xff]  ;;  %v5183_v48 = vld [vmem:[#allocation10 + $0x1c0] sm:$0xff]  ;;  %v5185_v49 = vld [vmem:[#allocation10 + $0x1c8] sm:$0xff] }
  0x2b   : > { %582 = vmatpush.msra.mxu2 %v5121_v30  ;;  %623 = vmatpush.msra.mxu3 %v5123_v31  ;;  %v412_v46 = vld [vmem:[%s7578_s0 + $0x9] sm:$0xff]  ;;  %v5189_v50 = vld [vmem:[#allocation10 + $0x140] sm:$0xff]  ;;  %v5191_v51 = vld [vmem:[#allocation10 + $0x148] sm:$0xff] }
  0x2c   : > { %4337 = vmatmul.msk.f32.vlgmr.msra.gmra.mxu0 %vm436_vm0, %v411_v32  ;;  %4345 = vmatmul.msk.f32.vlgmr.msra.gmra.mxu1 %vm436_vm0, %v411_v32  ;;  %v388_v47 = vld [vmem:[%s7578_s0 + $0x8] sm:$0xff]  ;;  %v5207_v56 = vld [vmem:[#allocation10 + $0x1a0] sm:$0xff]  ;;  %v5209_v57 = vld [vmem:[#allocation10 + $0x1a8] sm:$0xff] }
  0x2d   : > { %4353 = vmatmul.msk.f32.vlgmr.msra.gmra.mxu2 %vm436_vm0, %v387_v33  ;;  %4361 = vmatmul.msk.f32.vlgmr.msra.gmra.mxu3 %vm436_vm0, %v387_v33  ;;  %v5195_v52 = vld [vmem:[#allocation10 + $0x1b0] sm:$0xff]  ;;  %v5197_v53 = vld [vmem:[#allocation10 + $0x1b8] sm:$0xff]  ;;  %v5213_v58 = vld [vmem:[#allocation10 + $0x120] sm:$0xff] }
  0x2e   : > { %853 = vmatpush.msrb.mxu2 %v5137_v34  ;;  %894 = vmatpush.msrb.mxu3 %v5139_v35  ;;  %v5201_v54 = vld [vmem:[#allocation10 + $0x130] sm:$0xff]  ;;  %v5203_v55 = vld [vmem:[#allocation10 + $0x138] sm:$0xff]  ;;  %v5215_v59 = vld [vmem:[#allocation10 + $0x128] sm:$0xff] }
  0x2f   : > { %706 = vmatpush.msrb.mxu0 %v5143_v36  ;;  %747 = vmatpush.msrb.mxu1 %v5145_v37  ;;  %v413_v60 = vld [vmem:[%s7578_s0 + $0x11] sm:$0xff]  ;;  %v5233_v62 = vld [vmem:[#allocation10 + $0x190] sm:$0xff] }
  0x30   : > { %854 = vmatpush.msrb.mxu2 %v5149_v38  ;;  %895 = vmatpush.msrb.mxu3 %v5151_v39  ;;  %v389_v61 = vld [vmem:[%s7578_s0 + $0x10] sm:$0xff]  ;;  %7704 = vst [vmem:[#allocation17_spill] sm:$0xff] %v5233_v62  ;;  %v5237_v32 = vld [vmem:[#allocation10 + $0x110] sm:$0xff] }
  0x31   : > { %707 = vmatpush.msrb.mxu0 %v5155_v40  ;;  %748 = vmatpush.msrb.mxu1 %v5157_v41  ;;  %v5235_v63 = vld [vmem:[#allocation10 + $0x198] sm:$0xff] }
  0x32   : > { %855 = vmatpush.msrb.mxu2 %v5161_v42  ;;  %896 = vmatpush.msrb.mxu3 %v5163_v43  ;;  %7705 = vst [vmem:[#allocation18_spill] sm:$0xff] %v5235_v63  ;;  %v5241_v33 = vld [vmem:[#allocation10 + $0x118] sm:$0xff] }
  0x33   : > { %708 = vmatpush.msrb.mxu0 %v5165_v44  ;;  %749 = vmatpush.msrb.mxu1 %v5169_v45 }
  0x34   : > { %4338 = vmatmul.msk.f32.gmra.mxu0 %vm436_vm0, %v412_v46  ;;  %4346 = vmatmul.msk.f32.gmra.mxu1 %vm436_vm0, %v412_v46  ;;  %v414_v46 = vld [vmem:[%s7578_s0 + $0x19] sm:$0xff] }
  0x35   : > { %4354 = vmatmul.msk.f32.gmra.mxu2 %vm436_vm0, %v388_v47  ;;  %4362 = vmatmul.msk.f32.gmra.mxu3 %vm436_vm0, %v388_v47  ;;  %v390_v47 = vld [vmem:[%s7578_s0 + $0x18] sm:$0xff] }
  0x36   : > { %856 = vmatpush.msrb.mxu2 %v5183_v48  ;;  %897 = vmatpush.msrb.mxu3 %v5185_v49 }
  0x37   : > { %709 = vmatpush.msrb.mxu0 %v5189_v50  ;;  %750 = vmatpush.msrb.mxu1 %v5191_v51 }
  0x38   : > { %857 = vmatpush.msrb.mxu2 %v5195_v52  ;;  %898 = vmatpush.msrb.mxu3 %v5197_v53 }
  0x39   : > { %710 = vmatpush.msrb.mxu0 %v5201_v54  ;;  %751 = vmatpush.msrb.mxu1 %v5203_v55 }
  0x3a   : > { %858 = vmatpush.msrb.mxu2 %v5207_v56  ;;  %899 = vmatpush.msrb.mxu3 %v5209_v57 }
  0x3b   : > { %711 = vmatpush.msrb.mxu0 %v5213_v58  ;;  %752 = vmatpush.msrb.mxu1 %v5215_v59 }
  0x3c   : > { %4339 = vmatmul.msk.f32.gmra.mxu0 %vm436_vm0, %v413_v60  ;;  %4347 = vmatmul.msk.f32.gmra.mxu1 %vm436_vm0, %v413_v60  ;;  %v5255_v60 = vld [vmem:[#allocation10 + $0x180] sm:$0xff] }
  0x3d   : > { %4355 = vmatmul.msk.f32.gmra.mxu2 %vm436_vm0, %v389_v61  ;;  %4363 = vmatmul.msk.f32.gmra.mxu3 %vm436_vm0, %v389_v61  ;;  %v5257_v61 = vld [vmem:[#allocation10 + $0x188] sm:$0xff] }
  0x3e   : > { %859 = vmatpush.msrb.mxu2 %v5233_v62  ;;  %900 = vmatpush.msrb.mxu3 %v5235_v63  ;;  %v5259_v63 = vld [vmem:[#allocation10 + $0x100] sm:$0xff]  ;;  %v5263_v62 = vld [vmem:[#allocation10 + $0x108] sm:$0xff] }
  0x3f   : > { %712 = vmatpush.msrb.mxu0 %v5237_v32  ;;  %753 = vmatpush.msrb.mxu1 %v5241_v33 }
  0x40   : > { %860 = vmatpush.msrb.mxu2 %v5255_v60  ;;  %901 = vmatpush.msrb.mxu3 %v5257_v61 }
  0x41   : > { %713 = vmatpush.msrb.mxu0 %v5259_v63  ;;  %754 = vmatpush.msrb.mxu1 %v5263_v62 }
  0x42   : > { %1218 = vmatpush.msra.mxu2 %v5035_v0  ;;  %1259 = vmatpush.msra.mxu3 %v5037_v1  ;;  %v5281_v0 = vld [vmem:[#allocation10 + $0x270] sm:$0xff]  ;;  %v5283_v1 = vld [vmem:[#allocation10 + $0x278] sm:$0xff] }
  0x43   : > { %1000 = vmatpush.msra.mxu0 %v5281_v0  ;;  %1041 = vmatpush.msra.mxu1 %v5283_v1 }
  0x44   : > { %4340 = vmatmul.msk.f32.gmra.mxu0 %vm436_vm0, %v414_v46  ;;  %4348 = vmatmul.msk.f32.gmra.mxu1 %vm436_vm0, %v414_v46  ;;  %v415_v46 = vld [vmem:[%s7578_s0 + $0x21] sm:$0xff] }
  0x45   : > { %4356 = vmatmul.msk.f32.gmra.mxu2 %vm436_vm0, %v390_v47  ;;  %4364 = vmatmul.msk.f32.gmra.mxu3 %vm436_vm0, %v390_v47  ;;  %v391_v47 = vld [vmem:[%s7578_s0 + $0x20] sm:$0xff] }
  0x46   : > { %1219 = vmatpush.msra.mxu2 %v5045_v4  ;;  %1260 = vmatpush.msra.mxu3 %v5047_v5  ;;  %v416_v4 = vld [vmem:[%s7578_s0 + $0x29] sm:$0xff] }
  0x47   : > { %v392_v5 = vld [vmem:[%s7578_s0 + $0x28] sm:$0xff] }
  0x48   : > { %1220 = vmatpush.msra.mxu2 %v5055_v8  ;;  %1261 = vmatpush.msra.mxu3 %v5059_v9  ;;  %v5303_v8 = vld [vmem:[#allocation10 + $0x260] sm:$0xff]  ;;  %v5305_v9 = vld [vmem:[#allocation10 + $0x268] sm:$0xff] }
  0x49   : > { %1001 = vmatpush.msra.mxu0 %v5303_v8  ;;  %1042 = vmatpush.msra.mxu1 %v5305_v9 }
  0x4a   : > { %1221 = vmatpush.msra.mxu2 %v5067_v12  ;;  %1262 = vmatpush.msra.mxu3 %v5069_v13  ;;  %v417_v12 = vld [vmem:[%s7578_s0 + $0x31] sm:$0xff] }
  0x4b   : > { %v393_v13 = vld [vmem:[%s7578_s0 + $0x30] sm:$0xff] }
  0x4c   : > { %4341 = vmatmul.msk.f32.gmra.mxu0 %vm436_vm0, %v415_v46  ;;  %4349 = vmatmul.msk.f32.gmra.mxu1 %vm436_vm0, %v415_v46  ;;  %v5357_v46 = vld [vmem:[#allocation10 + $0x230] sm:$0xff] }
  0x4d   : > { %4357 = vmatmul.msk.f32.gmra.mxu2 %vm436_vm0, %v391_v47  ;;  %4365 = vmatmul.msk.f32.gmra.mxu3 %vm436_vm0, %v391_v47  ;;  %v5359_v47 = vld [vmem:[#allocation10 + $0x238] sm:$0xff] }
  0x4e   : > { %1222 = vmatpush.msra.mxu2 %v5079_v16  ;;  %1263 = vmatpush.msra.mxu3 %v5081_v17  ;;  %v5325_v16 = vld [vmem:[#allocation10 + $0x250] sm:$0xff]  ;;  %v5327_v17 = vld [vmem:[#allocation10 + $0x258] sm:$0xff] }
  0x4f   : > { %1002 = vmatpush.msra.mxu0 %v5325_v16  ;;  %1043 = vmatpush.msra.mxu1 %v5327_v17 }
  0x50   : > { %1223 = vmatpush.msra.mxu2 %v5091_v20  ;;  %1264 = vmatpush.msra.mxu3 %v5093_v21  ;;  %v418_v20 = vld [vmem:[%s7578_s0 + $0x39] sm:$0xf] }
  0x51   : > { %v394_v21 = vld [vmem:[%s7578_s0 + $0x38] sm:$0xf] }
  0x52   : > { %1224 = vmatpush.msra.mxu2 %v5103_v24  ;;  %1265 = vmatpush.msra.mxu3 %v5105_v25  ;;  %v5341_v24 = vld [vmem:[#allocation10 + $0x240] sm:$0xff]  ;;  %v5343_v25 = vld [vmem:[#allocation10 + $0x248] sm:$0xff] }
  0x53   : > { %1003 = vmatpush.msra.mxu0 %v5341_v24  ;;  %1044 = vmatpush.msra.mxu1 %v5343_v25 }
  0x54   : > { %4342 = vmatmul.msk.f32.gmra.mxu0 %vm436_vm0, %v416_v4  ;;  %4350 = vmatmul.msk.f32.gmra.mxu1 %vm436_vm0, %v416_v4  ;;  %v650_v4 = vld [vmem:[%s7578_s0 + $0xa] sm:$0xff] }
  0x55   : > { %4358 = vmatmul.msk.f32.gmra.mxu2 %vm436_vm0, %v392_v5  ;;  %4366 = vmatmul.msk.f32.gmra.mxu3 %vm436_vm0, %v392_v5  ;;  %v797_v5 = vld [vmem:[%s7578_s0 + $0xb] sm:$0xff] }
  0x56   : > { %1225 = vmatpush.msra.mxu2 %v5115_v28  ;;  %1266 = vmatpush.msra.mxu3 %v5117_v29  ;;  %v649_v28 = vld [vmem:[%s7578_s0 + $0x2] sm:$0xff] }
  0x57   : > { %v796_v29 = vld [vmem:[%s7578_s0 + $0x3] sm:$0xff]  ;;  %1004 = vmatpush.msra.mxu0 %v5357_v46  ;;  %1045 = vmatpush.msra.mxu1 %v5359_v47 }
  0x5c   : > { %4343 = vmatmul.msk.f32.gmra.mxu0 %vm436_vm0, %v417_v12  ;;  %4351 = vmatmul.msk.f32.gmra.mxu1 %vm436_vm0, %v417_v12 }
  0x5d   : > { %4359 = vmatmul.msk.f32.gmra.mxu2 %vm436_vm0, %v393_v13  ;;  %4367 = vmatmul.msk.f32.gmra.mxu3 %vm436_vm0, %v393_v13 }
  0x64   : > { %4344 = vmatmul.msk.f32.gmra.mxu0 %vm436_vm0, %v418_v20  ;;  %4352 = vmatmul.msk.f32.gmra.mxu1 %vm436_vm0, %v418_v20  ;;  %v947_v20 = vld [vmem:[%s7578_s0 + $0x24] sm:$0xff] }
  0x65   : > { %4360 = vmatmul.msk.f32.gmra.mxu2 %vm436_vm0, %v394_v21  ;;  %4368 = vmatmul.msk.f32.gmra.mxu3 %vm436_vm0, %v394_v21  ;;  %v4429_v21 = vld [vmem:[%s7578_s0 + $0x61] sm:$0xff] }
  0x6c   : > { %4369 = vmatmul.msk.f32.vlgmr.msrb.gmra.mxu0 %vm436_vm0, %v649_v28  ;;  %4377 = vmatmul.msk.f32.vlgmr.msrb.gmra.mxu1 %vm436_vm0, %v649_v28 }
  0x6d   : > { %4385 = vmatmul.msk.f32.vlgmr.msrb.gmra.mxu2 %vm436_vm0, %v796_v29  ;;  %4393 = vmatmul.msk.f32.vlgmr.msrb.gmra.mxu3 %vm436_vm0, %v796_v29 }
  0x6e   : > { %1454 = vmatpush.msrb.mxu2 %v5143_v36  ;;  %1495 = vmatpush.msrb.mxu3 %v5145_v37  ;;  %v5379_v36 = vld [vmem:[#allocation10 + $0x220] sm:$0xff]  ;;  %v5381_v37 = vld [vmem:[#allocation10 + $0x228] sm:$0xff] }
  0x6f   : > { %1005 = vmatpush.msra.mxu0 %v5379_v36  ;;  %1046 = vmatpush.msra.mxu1 %v5381_v37 }
  0x70   : > { %1455 = vmatpush.msrb.mxu2 %v5155_v40  ;;  %1496 = vmatpush.msrb.mxu3 %v5157_v41  ;;  %v651_v40 = vld [vmem:[%s7578_s0 + $0x12] sm:$0xff] }
  0x71   : > { %v798_v41 = vld [vmem:[%s7578_s0 + $0x13] sm:$0xff] }
  0x72   : > { %1456 = vmatpush.msrb.mxu2 %v5165_v44  ;;  %1497 = vmatpush.msrb.mxu3 %v5169_v45  ;;  %v5401_v44 = vld [vmem:[#allocation10 + $0x210] sm:$0xff]  ;;  %v5403_v45 = vld [vmem:[#allocation10 + $0x218] sm:$0xff] }
  0x73   : > { %1006 = vmatpush.msra.mxu0 %v5401_v44  ;;  %1047 = vmatpush.msra.mxu1 %v5403_v45 }
  0x74   : > { %4370 = vmatmul.msk.f32.gmra.mxu0 %vm436_vm0, %v650_v4  ;;  %4378 = vmatmul.msk.f32.gmra.mxu1 %vm436_vm0, %v650_v4  ;;  %v948_v4 = vld [vmem:[%s7578_s0 + $0x2c] sm:$0xff] }
  0x75   : > { %4386 = vmatmul.msk.f32.gmra.mxu2 %vm436_vm0, %v797_v5  ;;  %4394 = vmatmul.msk.f32.gmra.mxu3 %vm436_vm0, %v797_v5  ;;  %v4430_v5 = vld [vmem:[%s7578_s0 + $0x69] sm:$0xff] }
  0x76   : > { %1457 = vmatpush.msrb.mxu2 %v5189_v50  ;;  %1498 = vmatpush.msrb.mxu3 %v5191_v51  ;;  %v652_v50 = vld [vmem:[%s7578_s0 + $0x1a] sm:$0xff] }
  0x77   : > { %v799_v51 = vld [vmem:[%s7578_s0 + $0x1b] sm:$0xff] }
  0x78   : > { %1458 = vmatpush.msrb.mxu2 %v5201_v54  ;;  %1499 = vmatpush.msrb.mxu3 %v5203_v55  ;;  %v5421_v54 = vld [vmem:[#allocation10 + $0x200] sm:$0xff]  ;;  %v5423_v55 = vld [vmem:[#allocation10 + $0x208] sm:$0xff] }
  0x79   : > { %1007 = vmatpush.msra.mxu0 %v5421_v54  ;;  %1048 = vmatpush.msra.mxu1 %v5423_v55 }
  0x7a   : > { %1459 = vmatpush.msrb.mxu2 %v5213_v58  ;;  %1500 = vmatpush.msrb.mxu3 %v5215_v59  ;;  %v653_v58 = vld [vmem:[%s7578_s0 + $0x22] sm:$0xff] }
  0x7b   : > { %1324 = vmatpush.msrb.mxu0 %v5039_v2  ;;  %1365 = vmatpush.msrb.mxu1 %v5043_v3  ;;  %v800_v59 = vld [vmem:[%s7578_s0 + $0x23] sm:$0xff]  ;;  %v801_v3 = vld [vmem:[%s7578_s0 + $0x2b] sm:$0xff] }
  0x7c   : > { %4371 = vmatmul.msk.f32.gmra.mxu0 %vm436_vm0, %v651_v40  ;;  %4379 = vmatmul.msk.f32.gmra.mxu1 %vm436_vm0, %v651_v40  ;;  %v654_v2 = vld [vmem:[%s7578_s0 + $0x2a] sm:$0xff] }
  0x7d   : > { %4387 = vmatmul.msk.f32.gmra.mxu2 %vm436_vm0, %v798_v41  ;;  %4395 = vmatmul.msk.f32.gmra.mxu3 %vm436_vm0, %v798_v41 }
  0x7e   : > { %1460 = vmatpush.msrb.mxu2 %v5237_v32  ;;  %1501 = vmatpush.msrb.mxu3 %v5241_v33  ;;  %v945_v32 = vld [vmem:[%s7578_s0 + $0x14] sm:$0xff] }
  0x7f   : > { %1325 = vmatpush.msrb.mxu0 %v5051_v6  ;;  %1366 = vmatpush.msrb.mxu1 %v5053_v7  ;;  %v655_v6 = vld [vmem:[%s7578_s0 + $0x32] sm:$0xff] }
  0x80   : > { %1461 = vmatpush.msrb.mxu2 %v5259_v63  ;;  %1502 = vmatpush.msrb.mxu3 %v5263_v62  ;;  %v802_v7 = vld [vmem:[%s7578_s0 + $0x33] sm:$0xff] }
  0x81   : > { %1326 = vmatpush.msrb.mxu0 %v5061_v10  ;;  %1367 = vmatpush.msrb.mxu1 %v5063_v11  ;;  %v656_v10 = vld [vmem:[%s7578_s0 + $0x3a] sm:$0xf]  ;;  %v944_v62 = vld [vmem:[%s7578_s0 + $0xc] sm:$0xff] }
  0x82   : > { %v803_v11 = vld [vmem:[%s7578_s0 + $0x3b] sm:$0xf] }
  0x83   : > { %1327 = vmatpush.msrb.mxu0 %v5073_v14  ;;  %1368 = vmatpush.msrb.mxu1 %v5075_v15 }
  0x84   : > { %4372 = vmatmul.msk.f32.gmra.mxu0 %vm436_vm0, %v652_v50  ;;  %4380 = vmatmul.msk.f32.gmra.mxu1 %vm436_vm0, %v652_v50  ;;  %v949_v50 = vld [vmem:[%s7578_s0 + $0x34] sm:$0xff] }
  0x85   : > { %4388 = vmatmul.msk.f32.gmra.mxu2 %vm436_vm0, %v799_v51  ;;  %4396 = vmatmul.msk.f32.gmra.mxu3 %vm436_vm0, %v799_v51  ;;  %v4431_v51 = vld [vmem:[%s7578_s0 + $0x71] sm:$0xff] }
  0x86   : > { %1328 = vmatpush.msrb.mxu0 %v5085_v18  ;;  %1369 = vmatpush.msrb.mxu1 %v5087_v19  ;;  %v943_v18 = vld [vmem:[%s7578_s0 + $0x4] sm:$0xff] }
  0x87   : > { %v4425_v19 = vld [vmem:[%s7578_s0 + $0x41] sm:$0xff] }
  0x88   : > { %1329 = vmatpush.msrb.mxu0 %v5097_v22  ;;  %1370 = vmatpush.msrb.mxu1 %v5099_v23 }
  0x8a   : > { %1330 = vmatpush.msrb.mxu0 %v5109_v26  ;;  %1371 = vmatpush.msrb.mxu1 %v5111_v27 }
  0x8c   : > { %4373 = vmatmul.msk.f32.gmra.mxu0 %vm436_vm0, %v653_v58  ;;  %4381 = vmatmul.msk.f32.gmra.mxu1 %vm436_vm0, %v653_v58 }
  0x8d   : > { %4389 = vmatmul.msk.f32.gmra.mxu2 %vm436_vm0, %v800_v59  ;;  %4397 = vmatmul.msk.f32.gmra.mxu3 %vm436_vm0, %v800_v59 }
  0x8e   : > { %1331 = vmatpush.msrb.mxu0 %v5121_v30  ;;  %1372 = vmatpush.msrb.mxu1 %v5123_v31 }
  0x94   : > { %4374 = vmatmul.msk.f32.gmra.mxu0 %vm436_vm0, %v654_v2  ;;  %4382 = vmatmul.msk.f32.gmra.mxu1 %vm436_vm0, %v654_v2 }
  0x95   : > { %4390 = vmatmul.msk.f32.gmra.mxu2 %vm436_vm0, %v801_v3  ;;  %4398 = vmatmul.msk.f32.gmra.mxu3 %vm436_vm0, %v801_v3 }
  0x9c   : > { %4375 = vmatmul.msk.f32.gmra.mxu0 %vm436_vm0, %v655_v6  ;;  %4383 = vmatmul.msk.f32.gmra.mxu1 %vm436_vm0, %v655_v6  ;;  %v950_v6 = vld [vmem:[%s7578_s0 + $0x3c] sm:$0xf] }
  0x9d   : > { %4391 = vmatmul.msk.f32.gmra.mxu2 %vm436_vm0, %v802_v7  ;;  %4399 = vmatmul.msk.f32.gmra.mxu3 %vm436_vm0, %v802_v7  ;;  %v4432_v7 = vld [vmem:[%s7578_s0 + $0x79] sm:$0xf] }
  0xa4   : > { %4376 = vmatmul.msk.f32.gmra.mxu0 %vm436_vm0, %v656_v10  ;;  %4384 = vmatmul.msk.f32.gmra.mxu1 %vm436_vm0, %v656_v10 }
  0xa5   : > { %4392 = vmatmul.msk.f32.gmra.mxu2 %vm436_vm0, %v803_v11  ;;  %4400 = vmatmul.msk.f32.gmra.mxu3 %vm436_vm0, %v803_v11 }
  0xa9   : > { %v478_v14 = vpop.f32.mrf.mxu0  ;;  %v519_v15 = vpop.f32.mrf.mxu1 }
  0xac   : > { %4401 = vmatmul.msk.f32.vlgmr.msra.gmra.mxu0 %vm436_vm0, %v943_v18  ;;  %4409 = vmatmul.msk.f32.vlgmr.msra.gmra.mxu1 %vm436_vm0, %v943_v18 }
  0xad   : > { %4433 = vmatmul.msk.f32.vlgmr.msra.gmra.mxu2 %vm436_vm0, %v4425_v19  ;;  %4441 = vmatmul.msk.f32.vlgmr.msra.gmra.mxu3 %vm436_vm0, %v4425_v19 }
  0xae   : > { %1746 = vmatpush.msra.mxu2 %v5281_v0  ;;  %1787 = vmatpush.msra.mxu3 %v5283_v1 }
  0xaf   : > { %1600 = vmatpush.msra.mxu0 %v5137_v34  ;;  %1641 = vmatpush.msra.mxu1 %v5139_v35  ;;  %v4426_v34 = vld [vmem:[%s7578_s0 + $0x49] sm:$0xff] }
  0xb0   : > { %v584_v22 = vpop.f32.mrf.mxu2  ;;  %v625_v23 = vpop.f32.mrf.mxu3  ;;  %1747 = vmatpush.msra.mxu2 %v5303_v8  ;;  %1788 = vmatpush.msra.mxu3 %v5305_v9  ;;  %v946_v8 = vld [vmem:[%s7578_s0 + $0x1c] sm:$0xff] }
  0xb1   : > { %v5499_v26 = vadd.f32 %v584_v22, %v478_v14  ;;  %v5501_v27 = vadd.f32 %v625_v23, %v519_v15  ;;  %v481_v30 = vpop.f32.mrf.mxu0  ;;  %v522_v31 = vpop.f32.mrf.mxu1  ;;  %1601 = vmatpush.msra.mxu0 %v5149_v38  ;;  %1642 = vmatpush.msra.mxu1 %v5151_v39  ;;  %v4428_v9 = vld [vmem:[%s7578_s0 + $0x59] sm:$0xff]  ;;  %v4465_v23 = vld [vmem:[%s7578_s0 + $0x42] sm:$0xff] }
  0xb2   : > { %1748 = vmatpush.msra.mxu2 %v5325_v16  ;;  %1789 = vmatpush.msra.mxu3 %v5327_v17  ;;  %v4417_v22 = vld [vmem:[%s7578_s0 + $0x40] sm:$0xff] }
  0xb3   : > { %1602 = vmatpush.msra.mxu0 %v5161_v42  ;;  %1643 = vmatpush.msra.mxu1 %v5163_v43 }
  0xb4   : > { %4402 = vmatmul.msk.f32.gmra.mxu0 %vm436_vm0, %v944_v62  ;;  %4410 = vmatmul.msk.f32.gmra.mxu1 %vm436_vm0, %v944_v62 }
  0xb5   : > { %4434 = vmatmul.msk.f32.gmra.mxu2 %vm436_vm0, %v4426_v34  ;;  %4442 = vmatmul.msk.f32.gmra.mxu3 %vm436_vm0, %v4426_v34 }
  0xb6   : > { %1749 = vmatpush.msra.mxu2 %v5341_v24  ;;  %1790 = vmatpush.msra.mxu3 %v5343_v25 }
  0xb7   : > { %1603 = vmatpush.msra.mxu0 %v5183_v48  ;;  %1644 = vmatpush.msra.mxu1 %v5185_v49  ;;  %v4427_v48 = vld [vmem:[%s7578_s0 + $0x51] sm:$0xff] }
  0xb8   : > { %v587_v35 = vpop.f32.mrf.mxu2  ;;  %v628_v38 = vpop.f32.mrf.mxu3  ;;  %1750 = vmatpush.msra.mxu2 %v5357_v46  ;;  %1791 = vmatpush.msra.mxu3 %v5359_v47  ;;  %v7706_v49 = vld [vmem:[#allocation17_spill] sm:$0xff] }
  0xb9   : > { %v5525_v39 = vadd.f32 %v587_v35, %v481_v30  ;;  %v5527_v42 = vadd.f32 %v628_v38, %v522_v31  ;;  %v484_v43 = vpop.f32.mrf.mxu0  ;;  %v525_v63 = vpop.f32.mrf.mxu1  ;;  %1604 = vmatpush.msra.mxu0 %v5195_v52  ;;  %1645 = vmatpush.msra.mxu1 %v5197_v53  ;;  %v7707_v52 = vld [vmem:[#allocation18_spill] sm:$0xff]  ;;  %v4418_v35 = vld [vmem:[%s7578_s0 + $0x48] sm:$0xff] }
  0xba   : > { %1751 = vmatpush.msra.mxu2 %v5379_v36  ;;  %1792 = vmatpush.msra.mxu3 %v5381_v37  ;;  %v4466_v38 = vld [vmem:[%s7578_s0 + $0x4a] sm:$0xff] }
  0xbb   : > { %1605 = vmatpush.msra.mxu0 %v5207_v56  ;;  %1646 = vmatpush.msra.mxu1 %v5209_v57 }
  0xbc   : > { %4403 = vmatmul.msk.f32.gmra.mxu0 %vm436_vm0, %v945_v32  ;;  %4411 = vmatmul.msk.f32.gmra.mxu1 %vm436_vm0, %v945_v32 }
  0xbd   : > { %4435 = vmatmul.msk.f32.gmra.mxu2 %vm436_vm0, %v4427_v48  ;;  %4443 = vmatmul.msk.f32.gmra.mxu3 %vm436_vm0, %v4427_v48 }
  0xbe   : > { %1752 = vmatpush.msra.mxu2 %v5401_v44  ;;  %1793 = vmatpush.msra.mxu3 %v5403_v45 }
  0xbf   : > { %1606 = vmatpush.msra.mxu0 %v7706_v49  ;;  %1647 = vmatpush.msra.mxu1 %v7707_v52  ;;  %v4419_v49 = vld [vmem:[%s7578_s0 + $0x50] sm:$0xff] }
  0xc0   : > { %v590_v53 = vpop.f32.mrf.mxu2  ;;  %v631_v56 = vpop.f32.mrf.mxu3  ;;  %1753 = vmatpush.msra.mxu2 %v5421_v54  ;;  %1794 = vmatpush.msra.mxu3 %v5423_v55  ;;  %v4467_v52 = vld [vmem:[%s7578_s0 + $0x52] sm:$0xff] }
  0xc1   : > { %v5551_v57 = vadd.f32 %v590_v53, %v484_v43  ;;  %v5553_v33 = vadd.f32 %v631_v56, %v525_v63  ;;  %v487_v0 = vpop.f32.mrf.mxu0  ;;  %v528_v1 = vpop.f32.mrf.mxu1  ;;  %1607 = vmatpush.msra.mxu0 %v5255_v60  ;;  %1648 = vmatpush.msra.mxu1 %v5257_v61 }
  0xc4   : > { %4404 = vmatmul.msk.f32.gmra.mxu0 %vm436_vm0, %v946_v8  ;;  %4412 = vmatmul.msk.f32.gmra.mxu1 %vm436_vm0, %v946_v8  ;;  %v4420_v8 = vld [vmem:[%s7578_s0 + $0x58] sm:$0xff] }
  0xc5   : > { %4436 = vmatmul.msk.f32.gmra.mxu2 %vm436_vm0, %v4428_v9  ;;  %4444 = vmatmul.msk.f32.gmra.mxu3 %vm436_vm0, %v4428_v9  ;;  %v4468_v9 = vld [vmem:[%s7578_s0 + $0x5a] sm:$0xff] }
  0xc8   : > { %v593_v12 = vpop.f32.mrf.mxu2  ;;  %v634_v13 = vpop.f32.mrf.mxu3 }
  0xc9   : > { %v5567_v16 = vadd.f32 %v593_v12, %v487_v0  ;;  %v5569_v17 = vadd.f32 %v634_v13, %v528_v1  ;;  %v490_v60 = vpop.f32.mrf.mxu0  ;;  %v531_v61 = vpop.f32.mrf.mxu1 }
  0xcc   : > { %4405 = vmatmul.msk.f32.gmra.mxu0 %vm436_vm0, %v947_v20  ;;  %4413 = vmatmul.msk.f32.gmra.mxu1 %vm436_vm0, %v947_v20  ;;  %v4421_v20 = vld [vmem:[%s7578_s0 + $0x60] sm:$0xff] }
  0xcd   : > { %4437 = vmatmul.msk.f32.gmra.mxu2 %vm436_vm0, %v4429_v21  ;;  %4445 = vmatmul.msk.f32.gmra.mxu3 %vm436_vm0, %v4429_v21  ;;  %v4469_v21 = vld [vmem:[%s7578_s0 + $0x62] sm:$0xff] }
  0xd0   : > { %v596_v24 = vpop.f32.mrf.mxu2  ;;  %v637_v25 = vpop.f32.mrf.mxu3 }
  0xd1   : > { %v5581_v28 = vadd.f32 %v596_v24, %v490_v60  ;;  %v5583_v29 = vadd.f32 %v637_v25, %v531_v61  ;;  %v493_v46 = vpop.f32.mrf.mxu0  ;;  %v534_v47 = vpop.f32.mrf.mxu1 }
  0xd4   : > { %4406 = vmatmul.msk.f32.gmra.mxu0 %vm436_vm0, %v948_v4  ;;  %4414 = vmatmul.msk.f32.gmra.mxu1 %vm436_vm0, %v948_v4  ;;  %v4422_v4 = vld [vmem:[%s7578_s0 + $0x68] sm:$0xff] }
  0xd5   : > { %4438 = vmatmul.msk.f32.gmra.mxu2 %vm436_vm0, %v4430_v5  ;;  %4446 = vmatmul.msk.f32.gmra.mxu3 %vm436_vm0, %v4430_v5  ;;  %v4470_v5 = vld [vmem:[%s7578_s0 + $0x6a] sm:$0xff] }
  0xd8   : > { %v599_v36 = vpop.f32.mrf.mxu2  ;;  %v640_v37 = vpop.f32.mrf.mxu3 }
  0xd9   : > { %v5595_v40 = vadd.f32 %v599_v36, %v493_v46  ;;  %v5597_v41 = vadd.f32 %v640_v37, %v534_v47  ;;  %v496_v44 = vpop.f32.mrf.mxu0  ;;  %v537_v45 = vpop.f32.mrf.mxu1 }
  0xdc   : > { %4407 = vmatmul.msk.f32.gmra.mxu0 %vm436_vm0, %v949_v50  ;;  %4415 = vmatmul.msk.f32.gmra.mxu1 %vm436_vm0, %v949_v50  ;;  %v4423_v50 = vld [vmem:[%s7578_s0 + $0x70] sm:$0xff] }
  0xdd   : > { %4439 = vmatmul.msk.f32.gmra.mxu2 %vm436_vm0, %v4431_v51  ;;  %4447 = vmatmul.msk.f32.gmra.mxu3 %vm436_vm0, %v4431_v51  ;;  %v4471_v51 = vld [vmem:[%s7578_s0 + $0x72] sm:$0xff] }
  0xe0   : > { %v602_v54 = vpop.f32.mrf.mxu2  ;;  %v643_v55 = vpop.f32.mrf.mxu3 }
  0xe1   : > { %v5609_v58 = vadd.f32 %v602_v54, %v496_v44  ;;  %v5611_v59 = vadd.f32 %v643_v55, %v537_v45  ;;  %v499_v2 = vpop.f32.mrf.mxu0  ;;  %v540_v3 = vpop.f32.mrf.mxu1 }
  0xe4   : > { %4408 = vmatmul.msk.f32.gmra.mxu0 %vm436_vm0, %v950_v6  ;;  %4416 = vmatmul.msk.f32.gmra.mxu1 %vm436_vm0, %v950_v6  ;;  %v4424_v6 = vld [vmem:[%s7578_s0 + $0x78] sm:$0xf] }
  0xe5   : > { %4440 = vmatmul.msk.f32.gmra.mxu2 %vm436_vm0, %v4432_v7  ;;  %4448 = vmatmul.msk.f32.gmra.mxu3 %vm436_vm0, %v4432_v7  ;;  %v4472_v7 = vld [vmem:[%s7578_s0 + $0x7a] sm:$0xf] }
  0xe8   : > { %v605_v10 = vpop.f32.mrf.mxu2  ;;  %v646_v11 = vpop.f32.mrf.mxu3 }
  0xe9   : > { %v5623_v14 = vadd.f32 %v605_v10, %v499_v2  ;;  %v5625_v15 = vadd.f32 %v646_v11, %v540_v3  ;;  %v5627_v18 = vpop.f32.mrf.mxu0  ;;  %v5629_v19 = vpop.f32.mrf.mxu1 }
  0xea   : > { %v780_v10 = vadd.f32 %v5627_v18, %v5499_v26  ;;  %v781_v11 = vadd.f32 %v5629_v19, %v5501_v27  ;;  %v4513_v26 = vld [vmem:[%s7578_s0 + $0x44] sm:$0xff] }
  0xec   : > { %4449 = vmatmul.msk.f32.vlgmr.msrb.gmra.mxu0 %vm436_vm0, %v4417_v22  ;;  %4457 = vmatmul.msk.f32.vlgmr.msrb.gmra.mxu1 %vm436_vm0, %v4417_v22 }
  0xed   : > { %4473 = vmatmul.msk.f32.vlgmr.msrb.gmra.mxu2 %vm436_vm0, %v4465_v23  ;;  %4481 = vmatmul.msk.f32.vlgmr.msrb.gmra.mxu3 %vm436_vm0, %v4465_v23 }
  0xf0   : > { %v5641_v30 = vpop.f32.mrf.mxu2  ;;  %v5643_v31 = vpop.f32.mrf.mxu3 }
  0xf1   : > { %v5645_v62 = vpop.f32.mrf.mxu0  ;;  %v5647_v34 = vpop.f32.mrf.mxu1  ;;  %v927_v22 = vadd.f32 %v5641_v30, %v780_v10  ;;  %v928_v23 = vadd.f32 %v5643_v31, %v781_v11 }
  0xf2   : > { %v782_v18 = vadd.f32 %v5645_v62, %v5525_v39  ;;  %v783_v19 = vadd.f32 %v5647_v34, %v5527_v42  ;;  %v4514_v42 = vld [vmem:[%s7578_s0 + $0x4c] sm:$0xff] }
  0xf4   : > { %4450 = vmatmul.msk.f32.gmra.mxu0 %vm436_vm0, %v4418_v35  ;;  %4458 = vmatmul.msk.f32.gmra.mxu1 %vm436_vm0, %v4418_v35 }
  0xf5   : > { %4474 = vmatmul.msk.f32.gmra.mxu2 %vm436_vm0, %v4466_v38  ;;  %4482 = vmatmul.msk.f32.gmra.mxu3 %vm436_vm0, %v4466_v38 }
  0xf8   : > { %v5659_v43 = vpop.f32.mrf.mxu2  ;;  %v5661_v63 = vpop.f32.mrf.mxu3 }
  0xf9   : > { %v5663_v32 = vpop.f32.mrf.mxu0  ;;  %v5665_v48 = vpop.f32.mrf.mxu1  ;;  %v929_v30 = vadd.f32 %v5659_v43, %v782_v18  ;;  %v930_v31 = vadd.f32 %v5661_v63, %v783_v19 }
  0xfa   : > { %v784_v34 = vadd.f32 %v5663_v32, %v5551_v57  ;;  %v785_v43 = vadd.f32 %v5665_v48, %v5553_v33  ;;  %v4515_v33 = vld [vmem:[%s7578_s0 + $0x54] sm:$0xff]  ;;  %v5828_v48 = vld [vmem:[%s7580_s2] ss:$0 sm:$0xff] }
  0xfc   : > { %4451 = vmatmul.msk.f32.gmra.mxu0 %vm436_vm0, %v4419_v49  ;;  %4459 = vmatmul.msk.f32.gmra.mxu1 %vm436_vm0, %v4419_v49 }
  0xfd   : > { %4475 = vmatmul.msk.f32.gmra.mxu2 %vm436_vm0, %v4467_v52  ;;  %4483 = vmatmul.msk.f32.gmra.mxu3 %vm436_vm0, %v4467_v52 }
 0x100   : > { %v5677_v53 = vpop.f32.mrf.mxu2  ;;  %v5679_v56 = vpop.f32.mrf.mxu3 }
 0x101   : > { %v5681_v0 = vpop.f32.mrf.mxu0  ;;  %v5683_v1 = vpop.f32.mrf.mxu1  ;;  %v931_v63 = vadd.f32 %v5677_v53, %v784_v34 }
 0x104   : > { %4452 = vmatmul.msk.f32.gmra.mxu0 %vm436_vm0, %v4420_v8  ;;  %4460 = vmatmul.msk.f32.gmra.mxu1 %vm436_vm0, %v4420_v8  ;;  %v4489_v8 = vld [vmem:[%s7578_s0 + $0x43] sm:$0xff] }
 0x105   : > { %4476 = vmatmul.msk.f32.gmra.mxu2 %vm436_vm0, %v4468_v9  ;;  %4484 = vmatmul.msk.f32.gmra.mxu3 %vm436_vm0, %v4468_v9 }
 0x108   : > { %v5695_v12 = vpop.f32.mrf.mxu2  ;;  %v5697_v13 = vpop.f32.mrf.mxu3 }
 0x109   : > { %v5699_v60 = vpop.f32.mrf.mxu0  ;;  %v5701_v61 = vpop.f32.mrf.mxu1 }
 0x10c   : > { %4453 = vmatmul.msk.f32.gmra.mxu0 %vm436_vm0, %v4421_v20  ;;  %4461 = vmatmul.msk.f32.gmra.mxu1 %vm436_vm0, %v4421_v20 }
 0x10d   : > { %4477 = vmatmul.msk.f32.gmra.mxu2 %vm436_vm0, %v4469_v21  ;;  %4485 = vmatmul.msk.f32.gmra.mxu3 %vm436_vm0, %v4469_v21 }
 0x110   : > { %v5713_v24 = vpop.f32.mrf.mxu2  ;;  %v5715_v25 = vpop.f32.mrf.mxu3 }
 0x111   : > { %v5717_v46 = vpop.f32.mrf.mxu0  ;;  %v5719_v47 = vpop.f32.mrf.mxu1 }
 0x114   : > { %4454 = vmatmul.msk.f32.gmra.mxu0 %vm436_vm0, %v4422_v4  ;;  %4462 = vmatmul.msk.f32.gmra.mxu1 %vm436_vm0, %v4422_v4 }
 0x115   : > { %4478 = vmatmul.msk.f32.gmra.mxu2 %vm436_vm0, %v4470_v5  ;;  %4486 = vmatmul.msk.f32.gmra.mxu3 %vm436_vm0, %v4470_v5 }
 0x118   : > { %v5731_v36 = vpop.f32.mrf.mxu2  ;;  %v5733_v37 = vpop.f32.mrf.mxu3 }
 0x119   : > { %v5735_v44 = vpop.f32.mrf.mxu0  ;;  %v5737_v45 = vpop.f32.mrf.mxu1 }
 0x11c   : > { %4455 = vmatmul.msk.f32.gmra.mxu0 %vm436_vm0, %v4423_v50  ;;  %4463 = vmatmul.msk.f32.gmra.mxu1 %vm436_vm0, %v4423_v50 }
 0x11d   : > { %4479 = vmatmul.msk.f32.gmra.mxu2 %vm436_vm0, %v4471_v51  ;;  %4487 = vmatmul.msk.f32.gmra.mxu3 %vm436_vm0, %v4471_v51  ;;  %v4490_v51 = vld [vmem:[%s7578_s0 + $0x4b] sm:$0xff] }
 0x120   : > { %v5749_v54 = vpop.f32.mrf.mxu2  ;;  %v5751_v55 = vpop.f32.mrf.mxu3 }
 0x121   : > { %v5753_v2 = vpop.f32.mrf.mxu0  ;;  %v5755_v3 = vpop.f32.mrf.mxu1 }
 0x124   : > { %4456 = vmatmul.msk.f32.gmra.mxu0 %vm436_vm0, %v4424_v6  ;;  %4464 = vmatmul.msk.f32.gmra.mxu1 %vm436_vm0, %v4424_v6 }
 0x125   : > { %4480 = vmatmul.msk.f32.gmra.mxu2 %vm436_vm0, %v4472_v7  ;;  %4488 = vmatmul.msk.f32.gmra.mxu3 %vm436_vm0, %v4472_v7  ;;  %v932_v7 = vadd.f32 %v5679_v56, %v785_v43  ;;  %v4493_v43 = vld [vmem:[%s7578_s0 + $0x63] sm:$0xff] }
 0x128   : > { %v5773_v35 = vpop.f32.mrf.mxu2  ;;  %v5775_v38 = vpop.f32.mrf.mxu3 }
 0x129   : > { %v1009_v49 = vpop.f32.mrf.mxu0  ;;  %v1050_v52 = vpop.f32.mrf.mxu1 }
 0x12a   : > { %v1074_v9 = vadd.f32 %v1009_v49, %v927_v22  ;;  %v1075_v20 = vadd.f32 %v1050_v52, %v928_v23  ;;  %v4491_v49 = vld [vmem:[%s7578_s0 + $0x53] sm:$0xff] }
 0x12c   : > { %v1090_v27 = vmax.f32 %v1074_v9, %v1075_v20  ;;  %4497 = vmatmul.msk.f32.vlgmr.msra.gmra.mxu0 %vm436_vm0, %v4489_v8  ;;  %4505 = vmatmul.msk.f32.vlgmr.msra.gmra.mxu1 %vm436_vm0, %v4489_v8  ;;  %v786_v8 = vadd.f32 %v5681_v0, %v5567_v16  ;;  %v787_v9 = vadd.f32 %v5683_v1, %v5569_v17  ;;  %v4492_v16 = vld [vmem:[%s7578_s0 + $0x5b] sm:$0xff] }
 0x12d   : > { %4521 = vmatmul.msk.f32.vlgmr.msra.gmra.mxu2 %vm436_vm0, %v4513_v26  ;;  %4529 = vmatmul.msk.f32.vlgmr.msra.gmra.mxu3 %vm436_vm0, %v4513_v26  ;;  %v4516_v1 = vld [vmem:[%s7578_s0 + $0x5c] sm:$0xff] }
 0x12e   : > { %1098 = vst [vmem:[#allocation9] sm:$0xff] %v1090_v27  ;;  %v933_v26 = vadd.f32 %v5695_v12, %v786_v8  ;;  %v934_v27 = vadd.f32 %v5697_v13, %v787_v9  ;;  %v788_v13 = vadd.f32 %v5699_v60, %v5581_v28 }
 0x130   : > { %v5793_v21 = vpop.f32.mrf.mxu2  ;;  %v5795_v4 = vpop.f32.mrf.mxu3 }
 0x131   : > { %v1012_v5 = vpop.f32.mrf.mxu0  ;;  %v1053_v50 = vpop.f32.mrf.mxu1 }
 0x132   : > { %v1076_v6 = vadd.f32 %v1012_v5, %v929_v30  ;;  %v1077_v39 = vadd.f32 %v1053_v50, %v930_v31  ;;  %v789_v50 = vadd.f32 %v5701_v61, %v5583_v29  ;;  %v4517_v29 = vld [vmem:[%s7578_s0 + $0x64] sm:$0xff] }
 0x134   : > { %v1091_v62 = vmax.f32 %v1076_v6, %v1077_v39  ;;  %4498 = vmatmul.msk.f32.gmra.mxu0 %vm436_vm0, %v4490_v51  ;;  %4506 = vmatmul.msk.f32.gmra.mxu1 %vm436_vm0, %v4490_v51  ;;  %v935_v51 = vadd.f32 %v5713_v24, %v788_v13  ;;  %v936_v6 = vadd.f32 %v5715_v25, %v789_v50 }
 0x135   : > { %4522 = vmatmul.msk.f32.gmra.mxu2 %vm436_vm0, %v4514_v42  ;;  %4530 = vmatmul.msk.f32.gmra.mxu3 %vm436_vm0, %v4514_v42  ;;  %v790_v25 = vadd.f32 %v5717_v46, %v5595_v40  ;;  %v4494_v40 = vld [vmem:[%s7578_s0 + $0x6b] sm:$0xff] }
 0x136   : > { %1099 = vst [vmem:[#allocation9 + $0x8] sm:$0xff] %v1091_v62 }
 0x138   : > { %v5813_v10 = vpop.f32.mrf.mxu2  ;;  %v5815_v11 = vpop.f32.mrf.mxu3 }
 0x139   : > { %v1015_v22 = vpop.f32.mrf.mxu0  ;;  %v1056_v23 = vpop.f32.mrf.mxu1 }
 0x13a   : > { %v1078_v52 = vadd.f32 %v1015_v22, %v931_v63  ;;  %v1079_v57 = vadd.f32 %v1056_v23, %v932_v7  ;;  %v791_v7 = vadd.f32 %v5719_v47, %v5597_v41  ;;  %v937_v23 = vadd.f32 %v5731_v36, %v790_v25  ;;  %v4518_v47 = vld [vmem:[%s7578_s0 + $0x6c] sm:$0xff] }
 0x13c   : > { %v1092_v32 = vmax.f32 %v1078_v52, %v1079_v57  ;;  %4499 = vmatmul.msk.f32.gmra.mxu0 %vm436_vm0, %v4491_v49  ;;  %4507 = vmatmul.msk.f32.gmra.mxu1 %vm436_vm0, %v4491_v49  ;;  %v938_v49 = vadd.f32 %v5733_v37, %v791_v7  ;;  %v792_v37 = vadd.f32 %v5735_v44, %v5609_v58 }
 0x13d   : > { %4523 = vmatmul.msk.f32.gmra.mxu2 %vm436_vm0, %v4515_v33  ;;  %4531 = vmatmul.msk.f32.gmra.mxu3 %vm436_vm0, %v4515_v33  ;;  %v1106_v53 = vld [vmem:[#allocation9] ss:$2 sm:$0xff]  ;;  %v1114_v56 = vld [vmem:[#allocation9 + $0x1] ss:$2 sm:$0xff] }
 0x13e   : > { %1100 = vst [vmem:[#allocation9 + $0x10] sm:$0xff] %v1092_v32  ;;  %v1121_v20 = vmax.f32 %v1106_v53, %v1114_v56  ;;  %v793_v56 = vadd.f32 %v5737_v45, %v5611_v59  ;;  %v939_v8 = vadd.f32 %v5749_v54, %v792_v37  ;;  %v4519_v59 = vld [vmem:[%s7578_s0 + $0x74] sm:$0xff] }
 0x140   : > { %v5838_v18 = vpop.f32.mrf.mxu2  ;;  %v5840_v19 = vpop.f32.mrf.mxu3  ;;  %v1129_v30 = vadd.f32 %v5828_v48, %v1121_v20  ;;  %v940_v9 = vadd.f32 %v5751_v55, %v793_v56  ;;  %v794_v55 = vadd.f32 %v5753_v2, %v5623_v14  ;;  %v4496_v14 = vld [vmem:[%s7578_s0 + $0x7b] sm:$0xf] }
 0x141   : > { %v1018_v31 = vpop.f32.mrf.mxu0  ;;  %v1059_v5 = vpop.f32.mrf.mxu1 }
 0x142   : > { %v1080_v17 = vadd.f32 %v1018_v31, %v933_v26  ;;  %v1081_v0 = vadd.f32 %v1059_v5, %v934_v27  ;;  %1133 = vst.msk [vmem:[#allocation2] sm:$0xff] %vm365_vm1, %v1129_v30  ;;  %v4495_v31 = vld [vmem:[%s7578_s0 + $0x73] sm:$0xff] }
 0x144   : > { %v1093_v12 = vmax.f32 %v1080_v17, %v1081_v0  ;;  %4500 = vmatmul.msk.f32.gmra.mxu0 %vm436_vm0, %v4492_v16  ;;  %4508 = vmatmul.msk.f32.gmra.mxu1 %vm436_vm0, %v4492_v16  ;;  %v795_v16 = vadd.f32 %v5755_v3, %v5625_v15  ;;  %v941_v0 = vadd.f32 %v5773_v35, %v794_v55  ;;  %v4520_v3 = vld [vmem:[%s7578_s0 + $0x7c] sm:$0xf] }
 0x145   : > { %4524 = vmatmul.msk.f32.gmra.mxu2 %vm436_vm0, %v4516_v1  ;;  %4532 = vmatmul.msk.f32.gmra.mxu3 %vm436_vm0, %v4516_v1 }
 0x146   : > { %1101 = vst [vmem:[#allocation9 + $0x18] sm:$0xff] %v1093_v12  ;;  %v942_v1 = vadd.f32 %v5775_v38, %v795_v16 }
 0x148   : > { %v5860_v39 = vpop.f32.mrf.mxu2  ;;  %v5862_v42 = vpop.f32.mrf.mxu3 }
 0x149   : > { %v1021_v62 = vpop.f32.mrf.mxu0  ;;  %v1062_v34 = vpop.f32.mrf.mxu1 }
 0x14a   : > { %v1082_v63 = vadd.f32 %v1021_v62, %v935_v51  ;;  %v1083_v28 = vadd.f32 %v1062_v34, %v936_v6 }
 0x14c   : > { %v1094_v60 = vmax.f32 %v1082_v63, %v1083_v28  ;;  %4501 = vmatmul.msk.f32.gmra.mxu0 %vm436_vm0, %v4493_v43  ;;  %4509 = vmatmul.msk.f32.gmra.mxu1 %vm436_vm0, %v4493_v43 }
 0x14d   : > { %4525 = vmatmul.msk.f32.gmra.mxu2 %vm436_vm0, %v4517_v29  ;;  %4533 = vmatmul.msk.f32.gmra.mxu3 %vm436_vm0, %v4517_v29  ;;  %v1108_v61 = vld [vmem:[#allocation9 + $0x10] ss:$2 sm:$0xff]  ;;  %v1116_v24 = vld [vmem:[#allocation9 + $0x11] ss:$2 sm:$0xff] }
 0x14e   : > { %1102 = vst [vmem:[#allocation9 + $0x20] sm:$0xff] %v1094_v60  ;;  %v1122_v22 = vmax.f32 %v1108_v61, %v1116_v24 }
 0x150   : > { %v5880_v52 = vpop.f32.mrf.mxu2  ;;  %v5882_v57 = vpop.f32.mrf.mxu3  ;;  %v1130_v33 = vadd.f32 %v5828_v48, %v1122_v22 }
 0x151   : > { %v1024_v32 = vpop.f32.mrf.mxu0  ;;  %v1065_v53 = vpop.f32.mrf.mxu1 }
 0x152   : > { %v1084_v46 = vadd.f32 %v1024_v32, %v937_v23  ;;  %v1085_v41 = vadd.f32 %v1065_v53, %v938_v49  ;;  %1134 = vst.msk [vmem:[#allocation2 + $0x8] sm:$0xff] %vm365_vm1, %v1130_v33 }
 0x154   : > { %v1095_v36 = vmax.f32 %v1084_v46, %v1085_v41  ;;  %4502 = vmatmul.msk.f32.gmra.mxu0 %vm436_vm0, %v4494_v40  ;;  %4510 = vmatmul.msk.f32.gmra.mxu1 %vm436_vm0, %v4494_v40 }
 0x155   : > { %4526 = vmatmul.msk.f32.gmra.mxu2 %vm436_vm0, %v4518_v47  ;;  %4534 = vmatmul.msk.f32.gmra.mxu3 %vm436_vm0, %v4518_v47 }
 0x156   : > { %1103 = vst [vmem:[#allocation9 + $0x28] sm:$0xff] %v1095_v36 }
 0x158   : > { %v5902_v20 = vpop.f32.mrf.mxu2  ;;  %v5904_v26 = vpop.f32.mrf.mxu3 }
 0x159   : > { %v1027_v27 = vpop.f32.mrf.mxu0  ;;  %v1068_v30 = vpop.f32.mrf.mxu1 }
 0x15a   : > { %v1086_v5 = vadd.f32 %v1027_v27, %v939_v8  ;;  %v1087_v58 = vadd.f32 %v1068_v30, %v940_v9  ;;  %v4935_v27 = vmov 0.0  }
 0x15b   : > { %366 = vst.msk [vmem:[#allocation3] sm:$0xff] %vm365_vm1, %v4935_v27 }
 0x15c   : > { %v1096_v44 = vmax.f32 %v1086_v5, %v1087_v58  ;;  %4503 = vmatmul.msk.f32.gmra.mxu0 %vm436_vm0, %v4495_v31  ;;  %4511 = vmatmul.msk.f32.gmra.mxu1 %vm436_vm0, %v4495_v31  ;;  %367 = vst.msk [vmem:[#allocation3 + $0x8] sm:$0xff] %vm365_vm1, %v4935_v27 }
 0x15d   : > { %4527 = vmatmul.msk.f32.gmra.mxu2 %vm436_vm0, %v4519_v59  ;;  %4535 = vmatmul.msk.f32.gmra.mxu3 %vm436_vm0, %v4519_v59  ;;  %v1110_v45 = vld [vmem:[#allocation9 + $0x20] ss:$2 sm:$0xff]  ;;  %v1118_v54 = vld [vmem:[#allocation9 + $0x21] ss:$2 sm:$0xff]  ;;  %368 = vst.msk [vmem:[#allocation3 + $0x10] sm:$0xff] %vm365_vm1, %v4935_v27 }
 0x15e   : > { %1104 = vst [vmem:[#allocation9 + $0x30] sm:$0xff] %v1096_v44  ;;  %v1123_v17 = vmax.f32 %v1110_v45, %v1118_v54 }
 0x15f   : > { %371 = vst.msk [vmem:[#allocation3 + $0x20] sm:$0xff] %vm365_vm1, %v4935_v27 }
 0x160   : > { %v5922_v12 = vpop.f32.mrf.mxu2  ;;  %v5924_v13 = vpop.f32.mrf.mxu3  ;;  %v1131_v50 = vadd.f32 %v5828_v48, %v1123_v17  ;;  %372 = vst.msk [vmem:[#allocation3 + $0x28] sm:$0xff] %vm365_vm1, %v4935_v27 }
 0x161   : > { %v1030_v51 = vpop.f32.mrf.mxu0  ;;  %v1071_v6 = vpop.f32.mrf.mxu1  ;;  %373 = vst.msk [vmem:[#allocation3 + $0x30] sm:$0xff] %vm365_vm1, %v4935_v27 }
 0x162   : > { %v1088_v2 = vadd.f32 %v1030_v51, %v941_v0  ;;  %v1089_v15 = vadd.f32 %v1071_v6, %v942_v1  ;;  %1135 = vst.msk [vmem:[#allocation2 + $0x10] sm:$0xff] %vm365_vm1, %v1131_v50 }
 0x163   : > { %376 = vst.msk [vmem:[#allocation5] sm:$0xff] %vm375_vm3, %v4935_v27 }
 0x164   : > { %v1097_v35 = vmax.f32 %v1088_v2, %v1089_v15  ;;  %4504 = vmatmul.msk.f32.gmra.mxu0 %vm436_vm0, %v4496_v14  ;;  %4512 = vmatmul.msk.f32.gmra.mxu1 %vm436_vm0, %v4496_v14  ;;  %378 = vst.msk [vmem:[#allocation5 + $0x8] sm:$0x1f] %vm377_vm4, %v4935_v27 }
 0x165   : > { %4528 = vmatmul.msk.f32.gmra.mxu2 %vm436_vm0, %v4520_v3  ;;  %4536 = vmatmul.msk.f32.gmra.mxu3 %vm436_vm0, %v4520_v3  ;;  %379 = vst.msk [vmem:[#allocation5 + $0x10] sm:$0xff] %vm375_vm3, %v4935_v27 }
 0x166   : > { %1105 = vst [vmem:[#allocation9 + $0x38] sm:$0xf] %v1097_v35 }
 0x167   : > { %380 = vst.msk [vmem:[#allocation5 + $0x18] sm:$0x1f] %vm377_vm4, %v4935_v27 }
 0x168   : > { %v5938_v38 = vpop.f32.mrf.mxu2  ;;  %v5940_v62 = vpop.f32.mrf.mxu3  ;;  %382 = vst.msk [vmem:[#allocation7] sm:$0x1f] %vm381_vm5, %v4935_v27 }
 0x169   : > { %v1333_v34 = vpop.f32.mrf.mxu0  ;;  %v1374_v43 = vpop.f32.mrf.mxu1  ;;  %383 = vst.msk [vmem:[#allocation7 + $0x8] sm:$0x1f] %vm381_vm5, %v4935_v27 }
 0x16a   : > { %385 = vst.msk [vmem:[#allocation8] sm:$0x1] %vm384_vm6, %v4935_v27  ;;  %v1334_v1 = vadd.f32 %v1333_v34, %v5793_v21  ;;  %v1375_v50 = vadd.f32 %v1374_v43, %v5795_v4 }
 0x16b   : > { %386 = vst.msk [vmem:[#allocation8 + $0x1] sm:$0x1] %vm384_vm6, %v4935_v27 }
 0x16c   : > { %370 = vst.msk [vmem:[#allocation3 + $0x18] sm:$0x3f] %vm369_vm2, %v4935_v27 }
 0x16d   : > { %v1112_v63 = vld [vmem:[#allocation9 + $0x30] ss:$2 sm:$0x3f]  ;;  %v1120_v28 = vld [vmem:[#allocation9 + $0x31] ss:$2 sm:$0x3f] }
 0x16e   : > { %v1124_v29 = vmax.f32 %v1112_v63, %v1120_v28  ;;  %374 = vst.msk [vmem:[#allocation3 + $0x38] sm:$0x3f] %vm369_vm2, %v4935_v27 }
 0x170   : > { %v1463_v60 = vpop.f32.mrf.mxu2  ;;  %v1504_v61 = vpop.f32.mrf.mxu3  ;;  %v1132_v24 = vadd.f32 %v5828_v48, %v1124_v29 }
 0x171   : > { %v5943_v25 = vpop.f32.mrf.mxu0  ;;  %v5945_v7 = vpop.f32.mrf.mxu1  ;;  %v1528_v51 = vadd.f32 %v1463_v60, %v1334_v1  ;;  %v1529_v6 = vadd.f32 %v1504_v61, %v1375_v50 }
 0x172   : > { %1136 = vst.msk [vmem:[#allocation2 + $0x18] sm:$0x3f] %vm369_vm2, %v1132_v24  ;;  %v1337_v24 = vadd.f32 %v5943_v25, %v5813_v10  ;;  %v1378_v27 = vadd.f32 %v5945_v7, %v5815_v11 }
 0x178   : > { %v5948_v22 = vpop.f32.mrf.mxu2  ;;  %v5950_v23 = vpop.f32.mrf.mxu3 }
 0x179   : > { %v5952_v49 = vpop.f32.mrf.mxu0  ;;  %v5954_v33 = vpop.f32.mrf.mxu1  ;;  %v1530_v21 = vadd.f32 %v5948_v22, %v1337_v24  ;;  %v1531_v4 = vadd.f32 %v5950_v23, %v1378_v27 }
 0x17a   : > { %v1340_v10 = vadd.f32 %v5952_v49, %v5838_v18  ;;  %v1381_v11 = vadd.f32 %v5954_v33, %v5840_v19  ;;  %v6029_v49 = vld [vmem:[%s7580_s2] ss:$0 sm:$0xff] }
 0x180   : > { %v5956_v32 = vpop.f32.mrf.mxu2  ;;  %v5958_v53 = vpop.f32.mrf.mxu3 }
 0x181   : > { %v5960_v40 = vpop.f32.mrf.mxu0  ;;  %v5962_v48 = vpop.f32.mrf.mxu1  ;;  %v1532_v7 = vadd.f32 %v5956_v32, %v1340_v10  ;;  %v1533_v22 = vadd.f32 %v5958_v53, %v1381_v11 }
 0x182   : > { %v1343_v18 = vadd.f32 %v5960_v40, %v5860_v39  ;;  %v1384_v19 = vadd.f32 %v5962_v48, %v5862_v42 }
 0x188   : > { %v5964_v46 = vpop.f32.mrf.mxu2  ;;  %v5966_v41 = vpop.f32.mrf.mxu3 }
 0x189   : > { %v5968_v47 = vpop.f32.mrf.mxu0  ;;  %v5970_v36 = vpop.f32.mrf.mxu1 }
 0x190   : > { %v5972_v37 = vpop.f32.mrf.mxu2  ;;  %v5974_v56 = vpop.f32.mrf.mxu3 }
 0x191   : > { %v5976_v8 = vpop.f32.mrf.mxu0  ;;  %v5978_v9 = vpop.f32.mrf.mxu1 }
 0x198   : > { %v5986_v30 = vpop.f32.mrf.mxu2  ;;  %v5988_v31 = vpop.f32.mrf.mxu3 }
 0x199   : > { %v5990_v5 = vpop.f32.mrf.mxu0  ;;  %v5992_v58 = vpop.f32.mrf.mxu1 }
 0x1a0   : > { %v5994_v59 = vpop.f32.mrf.mxu2  ;;  %v5996_v44 = vpop.f32.mrf.mxu3 }
 0x1a1   : > { %v5999_v45 = vpop.f32.mrf.mxu0  ;;  %v6001_v54 = vpop.f32.mrf.mxu1 }
 0x1a8   : > { %v6004_v55 = vpop.f32.mrf.mxu2  ;;  %v6006_v16 = vpop.f32.mrf.mxu3 }
 0x1a9   : > { %7708 = vst [vmem:[#allocation17_spill] sm:$0xff] %v6006_v16  ;;  %v1609_v17 = vpop.f32.mrf.mxu0  ;;  %v1650_v0 = vpop.f32.mrf.mxu1 }
 0x1aa   : > { %v1674_v14 = vadd.f32 %v1609_v17, %v1528_v51  ;;  %v1675_v2 = vadd.f32 %v1650_v0, %v1529_v6 }
 0x1b0   : > { %v1755_v15 = vpop.f32.mrf.mxu2  ;;  %v1796_v3 = vpop.f32.mrf.mxu3 }
 0x1b1   : > { %v1820_v35 = vadd.f32 %v1755_v15, %v1674_v14  ;;  %v1821_v63 = vadd.f32 %v1796_v3, %v1675_v2  ;;  %v1612_v28 = vpop.f32.mrf.mxu0  ;;  %v1653_v29 = vpop.f32.mrf.mxu1 }
 0x1b2   : > { %v1676_v34 = vadd.f32 %v1612_v28, %v1530_v21  ;;  %v1677_v43 = vadd.f32 %v1653_v29, %v1531_v4 }
 0x1b3   : > { %v1836_v16 = vmax.f32 %v1820_v35, %v1821_v63  ;;  %v1534_v35 = vadd.f32 %v5964_v46, %v1343_v18  ;;  %v1535_v63 = vadd.f32 %v5966_v41, %v1384_v19  ;;  %v1387_v46 = vadd.f32 %v5970_v36, %v5882_v57 }
 0x1b4   : > { %v1390_v57 = vadd.f32 %v5978_v9, %v5904_v26 }
 0x1b5   : > { %1844 = vst [vmem:[#allocation9] sm:$0xff] %v1836_v16 }
 0x1b8   : > { %v1758_v60 = vpop.f32.mrf.mxu2  ;;  %v1799_v61 = vpop.f32.mrf.mxu3 }
 0x1b9   : > { %v1822_v17 = vadd.f32 %v1758_v60, %v1676_v34  ;;  %v1823_v0 = vadd.f32 %v1799_v61, %v1677_v43  ;;  %v1615_v1 = vpop.f32.mrf.mxu0  ;;  %v1656_v50 = vpop.f32.mrf.mxu1  ;;  %v1346_v34 = vadd.f32 %v5968_v47, %v5880_v52  ;;  %v1537_v60 = vadd.f32 %v5974_v56, %v1387_v46 }
 0x1ba   : > { %v1678_v23 = vadd.f32 %v1615_v1, %v1532_v7  ;;  %v1679_v16 = vadd.f32 %v1656_v50, %v1533_v22  ;;  %v1349_v52 = vadd.f32 %v5976_v8, %v5902_v20  ;;  %v1539_v7 = vadd.f32 %v5988_v31, %v1390_v57 }
 0x1bb   : > { %v1837_v25 = vmax.f32 %v1822_v17, %v1823_v0  ;;  %v1536_v43 = vadd.f32 %v5972_v37, %v1346_v34 }
 0x1bc   : > { %v1538_v56 = vadd.f32 %v5986_v30, %v1349_v52  ;;  %v1393_v30 = vadd.f32 %v5992_v58, %v5924_v13 }
 0x1bd   : > { %1845 = vst [vmem:[#allocation9 + $0x8] sm:$0xff] %v1837_v25 }
 0x1c0   : > { %v1761_v51 = vpop.f32.mrf.mxu2  ;;  %v1802_v6 = vpop.f32.mrf.mxu3 }
 0x1c1   : > { %v1824_v14 = vadd.f32 %v1761_v51, %v1678_v23  ;;  %v1825_v2 = vadd.f32 %v1802_v6, %v1679_v16  ;;  %v1618_v15 = vpop.f32.mrf.mxu0  ;;  %v1659_v3 = vpop.f32.mrf.mxu1 }
 0x1c2   : > { %v1680_v39 = vadd.f32 %v1618_v15, %v1534_v35  ;;  %v1681_v40 = vadd.f32 %v1659_v3, %v1535_v63  ;;  %v1541_v3 = vadd.f32 %v5996_v44, %v1393_v30  ;;  %v1355_v63 = vadd.f32 %v5999_v45, %v5938_v38 }
 0x1c3   : > { %v1838_v33 = vmax.f32 %v1824_v14, %v1825_v2  ;;  %v1352_v2 = vadd.f32 %v5990_v5, %v5922_v12  ;;  %v1396_v12 = vadd.f32 %v6001_v54, %v5940_v62 }
 0x1c4   : > { %v1852_v32 = vld [vmem:[#allocation9] ss:$2 sm:$0xff]  ;;  %v1856_v53 = vld [vmem:[#allocation9 + $0x1] ss:$2 sm:$0xff]  ;;  %v1542_v44 = vadd.f32 %v6004_v55, %v1355_v63 }
 0x1c5   : > { %v1860_v28 = vmax.f32 %v1852_v32, %v1856_v53  ;;  %1846 = vst [vmem:[#allocation9 + $0x10] sm:$0xff] %v1838_v33  ;;  %v1540_v15 = vadd.f32 %v5994_v59, %v1352_v2 }
 0x1c7   : > { %v1868_v29 = vadd.f32 %v6029_v49, %v1860_v28 }
 0x1c8   : > { %v1764_v24 = vpop.f32.mrf.mxu2  ;;  %v1805_v42 = vpop.f32.mrf.mxu3 }
 0x1c9   : > { %1873 = vst.msk [vmem:[#allocation2 + $0x20] sm:$0xff] %vm365_vm1, %v1868_v29  ;;  %v1826_v48 = vadd.f32 %v1764_v24, %v1680_v39  ;;  %v1827_v27 = vadd.f32 %v1805_v42, %v1681_v40  ;;  %v1621_v21 = vpop.f32.mrf.mxu0  ;;  %v1662_v4 = vpop.f32.mrf.mxu1  ;;  %v7709_v29 = vld [vmem:[#allocation17_spill] sm:$0xff] }
 0x1ca   : > { %v1682_v61 = vadd.f32 %v1621_v21, %v1536_v43  ;;  %v1683_v17 = vadd.f32 %v1662_v4, %v1537_v60  ;;  %v1543_v39 = vadd.f32 %v7709_v29, %v1396_v12 }
 0x1cb   : > { %v1839_v41 = vmax.f32 %v1826_v48, %v1827_v27 }
 0x1cd   : > { %1847 = vst [vmem:[#allocation9 + $0x18] sm:$0xff] %v1839_v41 }
 0x1d0   : > { %v1767_v0 = vpop.f32.mrf.mxu2  ;;  %v1808_v1 = vpop.f32.mrf.mxu3 }
 0x1d1   : > { %v1828_v50 = vadd.f32 %v1767_v0, %v1682_v61  ;;  %v1829_v10 = vadd.f32 %v1808_v1, %v1683_v17  ;;  %v1624_v11 = vpop.f32.mrf.mxu0  ;;  %v1665_v25 = vpop.f32.mrf.mxu1 }
 0x1d2   : > { %v1684_v16 = vadd.f32 %v1624_v11, %v1538_v56  ;;  %v1685_v51 = vadd.f32 %v1665_v25, %v1539_v7 }
 0x1d3   : > { %v1840_v47 = vmax.f32 %v1828_v50, %v1829_v10 }
 0x1d4   : > { %v1853_v36 = vld [vmem:[#allocation9 + $0x10] ss:$2 sm:$0xff]  ;;  %v1857_v37 = vld [vmem:[#allocation9 + $0x11] ss:$2 sm:$0xff] }
 0x1d5   : > { %v1861_v22 = vmax.f32 %v1853_v36, %v1857_v37  ;;  %1848 = vst [vmem:[#allocation9 + $0x20] sm:$0xff] %v1840_v47 }
 0x1d7   : > { %v1869_v23 = vadd.f32 %v6029_v49, %v1861_v22 }
 0x1d8   : > { %v1770_v6 = vpop.f32.mrf.mxu2  ;;  %v1811_v14 = vpop.f32.mrf.mxu3 }
 0x1d9   : > { %1874 = vst.msk [vmem:[#allocation2 + $0x28] sm:$0xff] %vm365_vm1, %v1869_v23  ;;  %v1830_v20 = vadd.f32 %v1770_v6, %v1684_v16  ;;  %v1831_v8 = vadd.f32 %v1811_v14, %v1685_v51  ;;  %v1627_v26 = vpop.f32.mrf.mxu0  ;;  %v1668_v9 = vpop.f32.mrf.mxu1 }
 0x1da   : > { %v1686_v18 = vadd.f32 %v1627_v26, %v1540_v15  ;;  %v1687_v19 = vadd.f32 %v1668_v9, %v1541_v3 }
 0x1db   : > { %v1841_v31 = vmax.f32 %v1830_v20, %v1831_v8 }
 0x1dd   : > { %1849 = vst [vmem:[#allocation9 + $0x28] sm:$0xff] %v1841_v31 }
 0x1e0   : > { %v1773_v33 = vpop.f32.mrf.mxu2  ;;  %v1814_v32 = vpop.f32.mrf.mxu3 }
 0x1e1   : > { %v1832_v53 = vadd.f32 %v1773_v33, %v1686_v18  ;;  %v1833_v35 = vadd.f32 %v1814_v32, %v1687_v19  ;;  %v1630_v28 = vpop.f32.mrf.mxu0  ;;  %v1671_v59 = vpop.f32.mrf.mxu1 }
 0x1e2   : > { %v1688_v42 = vadd.f32 %v1630_v28, %v1542_v44  ;;  %v1689_v48 = vadd.f32 %v1671_v59, %v1543_v39 }
 0x1e3   : > { %v1842_v5 = vmax.f32 %v1832_v53, %v1833_v35 }
 0x1e4   : > { %v1854_v13 = vld [vmem:[#allocation9 + $0x20] ss:$2 sm:$0xff]  ;;  %v1858_v58 = vld [vmem:[#allocation9 + $0x21] ss:$2 sm:$0xff] }
 0x1e5   : > { %v1862_v40 = vmax.f32 %v1854_v13, %v1858_v58  ;;  %1850 = vst [vmem:[#allocation9 + $0x30] sm:$0xff] %v1842_v5 }
 0x1e7   : > { %v1870_v24 = vadd.f32 %v6029_v49, %v1862_v40 }
 0x1e8   : > { %v1776_v27 = vpop.f32.mrf.mxu2  ;;  %v1817_v38 = vpop.f32.mrf.mxu3 }
 0x1e9   : > { %1875 = vst.msk [vmem:[#allocation2 + $0x30] sm:$0xff] %vm365_vm1, %v1870_v24  ;;  %v1834_v62 = vadd.f32 %v1776_v27, %v1688_v42  ;;  %v1835_v45 = vadd.f32 %v1817_v38, %v1689_v48 }
 0x1eb   : > { %v1843_v54 = vmax.f32 %v1834_v62, %v1835_v45 }
 0x1ed   : > { %1851 = vst [vmem:[#allocation9 + $0x38] sm:$0xf] %v1843_v54 }
 0x1f4   : > { %v1855_v21 = vld [vmem:[#allocation9 + $0x30] ss:$2 sm:$0x3f]  ;;  %v1859_v4 = vld [vmem:[#allocation9 + $0x31] ss:$2 sm:$0x3f] }
 0x1f5   : > { %v1863_v34 = vmax.f32 %v1855_v21, %v1859_v4 }
 0x1f7   : > { %v1871_v55 = vadd.f32 %v6029_v49, %v1863_v34 }
 0x1f9   : > { %1876 = vst.msk [vmem:[#allocation2 + $0x38] sm:$0x3f] %vm369_vm2, %v1871_v55 }
 0x1fa PF: > { %v6065_v46 = vld [vmem:[#allocation12 + $0x1d0] sm:$0xff]  ;;  %v6067_v41 = vld [vmem:[#allocation12 + $0x1d8] sm:$0xff]  ;;  %v6069_v43 = vld [vmem:[#allocation12 + $0xe0] sm:$0xff]  ;;  %v7593_v27 = vmov 0.0   ;;  %vm1909_vm9 = vcmask 982016   ;;  %vm1913_vm15 = vcmask 979968  }
 0x1fb   : > { %2068 = vmatpush.msra.mxu0 %v6065_v46  ;;  %2097 = vmatpush.msra.mxu1 %v6067_v41  ;;  %v6073_v60 = vld [vmem:[#allocation12 + $0xe8] sm:$0xff]  ;;  %v6075_v61 = vld [vmem:[#allocation12 + $0x1c0] sm:$0xff]  ;;  %v6081_v49 = vld [vmem:[#allocation12 + $0xd0] sm:$0xff] }
 0x1fc   : > { %v6077_v17 = vld [vmem:[#allocation12 + $0x1c8] sm:$0xff]  ;;  %2138 = vmatpush.msra.mxu2 %v6069_v43  ;;  %2167 = vmatpush.msra.mxu3 %v6073_v60  ;;  %v6083_v0 = vld [vmem:[#allocation12 + $0xd8] sm:$0xff]  ;;  %v6085_v1 = vld [vmem:[#allocation12 + $0x1b0] sm:$0xff] }
 0x1fd   : > { %2069 = vmatpush.msra.mxu0 %v6075_v61  ;;  %2098 = vmatpush.msra.mxu1 %v6077_v17  ;;  %v6089_v50 = vld [vmem:[#allocation12 + $0x1b8] sm:$0xff]  ;;  %v6091_v10 = vld [vmem:[#allocation12 + $0xc0] sm:$0xff]  ;;  %v6093_v11 = vld [vmem:[#allocation12 + $0xc8] sm:$0xff] }
 0x1fe   : > { %2139 = vmatpush.msra.mxu2 %v6081_v49  ;;  %2168 = vmatpush.msra.mxu3 %v6083_v0  ;;  %v6097_v25 = vld [vmem:[#allocation12 + $0x1a0] sm:$0xff]  ;;  %v6099_v52 = vld [vmem:[#allocation12 + $0x1a8] sm:$0xff]  ;;  %v6103_v57 = vld [vmem:[#allocation12 + $0xb0] sm:$0xff] }
 0x1ff   : > { %2070 = vmatpush.msra.mxu0 %v6085_v1  ;;  %2099 = vmatpush.msra.mxu1 %v6089_v50  ;;  %v6105_v47 = vld [vmem:[#allocation12 + $0xb8] sm:$0xff]  ;;  %v6109_v36 = vld [vmem:[#allocation12 + $0x190] sm:$0xff]  ;;  %v6115_v56 = vld [vmem:[#allocation12 + $0xa0] sm:$0xff] }
 0x200   : > { %2140 = vmatpush.msra.mxu2 %v6091_v10  ;;  %2169 = vmatpush.msra.mxu3 %v6093_v11  ;;  %v6111_v37 = vld [vmem:[#allocation12 + $0x198] sm:$0xff]  ;;  %7710 = vst [vmem:[#allocation19_spill] sm:$0xff] %v6115_v56  ;;  %v6117_v7 = vld [vmem:[#allocation12 + $0xa8] sm:$0xff]  ;;  %v6121_v22 = vld [vmem:[#allocation12 + $0x180] sm:$0xff] }
 0x201   : > { %2071 = vmatpush.msra.mxu0 %v6097_v25  ;;  %2100 = vmatpush.msra.mxu1 %v6099_v52  ;;  %7711 = vst [vmem:[#allocation20_spill] sm:$0xff] %v6117_v7  ;;  %v6123_v23 = vld [vmem:[#allocation12 + $0x188] sm:$0xff]  ;;  %v2008_v16 = vld [vmem:[#allocation12 + $0x90] sm:$0xff]  ;;  %v2009_v51 = vld [vmem:[#allocation12 + $0x98] sm:$0xff] }
 0x202   : > { %2141 = vmatpush.msra.mxu2 %v6103_v57  ;;  %2170 = vmatpush.msra.mxu3 %v6105_v47  ;;  %v6129_v6 = vld [vmem:[#allocation12 + $0x170] sm:$0xff]  ;;  %v6131_v14 = vld [vmem:[#allocation12 + $0x178] sm:$0xff]  ;;  %v2006_v20 = vld [vmem:[#allocation12 + $0x80] sm:$0xff] }
 0x203   : > { %2072 = vmatpush.msra.mxu0 %v6109_v36  ;;  %2101 = vmatpush.msra.mxu1 %v6111_v37  ;;  %v2007_v8 = vld [vmem:[#allocation12 + $0x88] sm:$0xff]  ;;  %v6135_v26 = vld [vmem:[#allocation12 + $0x160] sm:$0xff]  ;;  %v2004_v2 = vld [vmem:[#allocation12 + $0x70] sm:$0xff] }
 0x204   : > { %2142 = vmatpush.msra.mxu2 %v6115_v56  ;;  %2171 = vmatpush.msra.mxu3 %v6117_v7  ;;  %v6137_v9 = vld [vmem:[#allocation12 + $0x168] sm:$0xff]  ;;  %v2005_v30 = vld [vmem:[#allocation12 + $0x78] sm:$0xff]  ;;  %v6141_v31 = vld [vmem:[#allocation12 + $0x150] sm:$0xff] }
 0x205   : > { %2073 = vmatpush.msra.mxu0 %v6121_v22  ;;  %2102 = vmatpush.msra.mxu1 %v6123_v23  ;;  %v6143_v15 = vld [vmem:[#allocation12 + $0x158] sm:$0xff]  ;;  %v2002_v3 = vld [vmem:[#allocation12 + $0x60] sm:$0xff]  ;;  %v2003_v18 = vld [vmem:[#allocation12 + $0x68] sm:$0xff] }
 0x206   : > { %2143 = vmatpush.msra.mxu2 %v2008_v16  ;;  %2172 = vmatpush.msra.mxu3 %v2009_v51  ;;  %v6147_v19 = vld [vmem:[#allocation12 + $0x140] sm:$0xff]  ;;  %v6149_v33 = vld [vmem:[#allocation12 + $0x148] sm:$0xff]  ;;  %v2000_v32 = vld [vmem:[#allocation12 + $0x50] sm:$0xff] }
 0x207   : > { %2074 = vmatpush.msra.mxu0 %v6129_v6  ;;  %2103 = vmatpush.msra.mxu1 %v6131_v14  ;;  %v2001_v53 = vld [vmem:[#allocation12 + $0x58] sm:$0xff]  ;;  %v6153_v35 = vld [vmem:[#allocation12 + $0x130] sm:$0xff]  ;;  %v1998_v12 = vld [vmem:[#allocation12 + $0x40] sm:$0xff] }
 0x208   : > { %2144 = vmatpush.msra.mxu2 %v2006_v20  ;;  %2173 = vmatpush.msra.mxu3 %v2007_v8  ;;  %v6155_v63 = vld [vmem:[#allocation12 + $0x138] sm:$0xff]  ;;  %v1999_v5 = vld [vmem:[#allocation12 + $0x48] sm:$0xff]  ;;  %v6159_v13 = vld [vmem:[#allocation12 + $0x120] sm:$0xff] }
 0x209   : > { %2075 = vmatpush.msra.mxu0 %v6135_v26  ;;  %2104 = vmatpush.msra.mxu1 %v6137_v9  ;;  %v6161_v58 = vld [vmem:[#allocation12 + $0x128] sm:$0xff]  ;;  %v1996_v28 = vld [vmem:[#allocation12 + $0x30] sm:$0xff]  ;;  %v1997_v29 = vld [vmem:[#allocation12 + $0x38] sm:$0xff] }
 0x20a   : > { %2145 = vmatpush.msra.mxu2 %v2004_v2  ;;  %2174 = vmatpush.msra.mxu3 %v2005_v30  ;;  %v1877_v59 = vld [vmem:[#allocation2] sm:$0xff]  ;;  %v1878_v39 = vld [vmem:[#allocation2 + $0x8] sm:$0xff]  ;;  %v1994_v45 = vld [vmem:[#allocation12 + $0x20] sm:$0xff] }
 0x20b   : > { %2076 = vmatpush.msra.mxu0 %v6141_v31  ;;  %2105 = vmatpush.msra.mxu1 %v6143_v15  ;;  %v1881_v44 = vld [vmem:[#allocation3] sm:$0xff]  ;;  %v1882_v40 = vld [vmem:[#allocation3 + $0x8] sm:$0xff]  ;;  %v6173_v34 = vld [vmem:[#allocation12 + $0x100] sm:$0xff] }
 0x20c   : > { %2146 = vmatpush.msra.mxu2 %v2002_v3  ;;  %2175 = vmatpush.msra.mxu3 %v2003_v18  ;;  %vm1885_vm7 = vcmp.gt.f32.partialorder %v1881_v44, 1.0  ;;  %v1897_v24 = vmul.f32 0.5, %v1881_v44  ;;  %v6165_v42 = vld [vmem:[#allocation12 + $0x110] sm:$0xff]  ;;  %v6167_v48 = vld [vmem:[#allocation12 + $0x118] sm:$0xff]  ;;  %vm1886_vm8 = vcmp.gt.f32.partialorder %v1882_v40, 1.0  ;;  %v1898_v62 = vmul.f32 0.5, %v1882_v40 }
 0x20d   : > { %2077 = vmatpush.msra.mxu0 %v6147_v19  ;;  %2106 = vmatpush.msra.mxu1 %v6149_v33  ;;  %v4537_v38 = vsel %vm1885_vm7, 1.0, %v7593_v27  ;;  %v1995_v54 = vld [vmem:[#allocation12 + $0x28] sm:$0xff]  ;;  %v4538_v21 = vsel %vm1886_vm8, 1.0, %v7593_v27  ;;  %v1992_v16 = vld [vmem:[#allocation12 + $0x10] sm:$0xff]  ;;  %v1993_v20 = vld [vmem:[#allocation12 + $0x18] sm:$0xff] }
 0x20e   : > { %2147 = vmatpush.msra.mxu2 %v2000_v32  ;;  %2176 = vmatpush.msra.mxu3 %v2001_v53  ;;  %v1901_v4 = vadd.f32 %v1897_v24, %v1877_v59  ;;  %v6175_v55 = vld [vmem:[#allocation12 + $0x108] sm:$0xff]  ;;  %v1902_v51 = vadd.f32 %v1898_v62, %v1878_v39  ;;  %v1879_v2 = vld [vmem:[#allocation2 + $0x10] sm:$0xff]  ;;  %v6179_v3 = vld [vmem:[#allocation12 + $0xf0] sm:$0xff] }
 0x20f   : > { %2078 = vmatpush.msra.mxu0 %v6153_v35  ;;  %2107 = vmatpush.msra.mxu1 %v6155_v63  ;;  %v1883_v30 = vld [vmem:[#allocation3 + $0x10] sm:$0xff]  ;;  %v6197_v24 = vld [vmem:[#allocation12 + $0x3b0] sm:$0xff] }
 0x210   : > { %2148 = vmatpush.msra.mxu2 %v1998_v12  ;;  %2177 = vmatpush.msra.mxu3 %v1999_v5  ;;  %v1905_v8 = vsub.f32 %v1901_v4, %v4537_v38  ;;  %v6181_v18 = vld [vmem:[#allocation12 + $0xf8] sm:$0xff]  ;;  %v1906_v32 = vsub.f32 %v1902_v51, %v4538_v21  ;;  %vm1887_vm10 = vcmp.gt.f32.partialorder %v1883_v30, 1.0  ;;  %v1899_v53 = vmul.f32 0.5, %v1883_v30  ;;  %v1990_v12 = vld [vmem:[#allocation12] sm:$0xff]  ;;  %v1991_v5 = vld [vmem:[#allocation12 + $0x8] sm:$0xff]  ;;  %7712 = vst [vmem:[#allocation21_spill] sm:$0xff] %v6197_v24 }
 0x211   : > { %2079 = vmatpush.msra.mxu0 %v6159_v13  ;;  %2108 = vmatpush.msra.mxu1 %v6161_v58  ;;  %v6189_v44 = vld [vmem:[#allocation12 + $0x2c0] sm:$0xff]  ;;  %v6199_v38 = vld [vmem:[#allocation12 + $0x3b8] sm:$0xff]  ;;  %v6202_v62 = vld [vmem:[#allocation12 + $0x2b0] sm:$0xff] }
 0x212   : > { %2149 = vmatpush.msra.mxu2 %v1996_v28  ;;  %2178 = vmatpush.msra.mxu3 %v1997_v29  ;;  %1910 = vst.msk [vmem:[#allocation3] sm:$0xff] %vm1909_vm9, %v1905_v8  ;;  %vm1915_vm11 = vcmp.gt.f32.partialorder %v1905_v8, 1.0  ;;  %v4539_v28 = vsel %vm1887_vm10, 1.0, %v7593_v27  ;;  %vm1916_vm12 = vcmp.gt.f32.partialorder %v1906_v32, 1.0  ;;  %v6191_v29 = vld [vmem:[#allocation12 + $0x2c8] sm:$0xff]  ;;  %v1903_v39 = vadd.f32 %v1899_v53, %v1879_v2  ;;  %v6221_v30 = vld [vmem:[#allocation12 + $0x390] sm:$0xff] }
 0x213   : > { %2080 = vmatpush.msra.mxu0 %v6165_v42  ;;  %2109 = vmatpush.msra.mxu1 %v6167_v48  ;;  %1911 = vst.msk [vmem:[#allocation3 + $0x8] sm:$0xff] %vm1909_vm9, %v1906_v32  ;;  %v4541_v59 = vsel %vm1915_vm11, 1.0, %v7593_v27  ;;  %v4542_v40 = vsel %vm1916_vm12, 1.0, %v7593_v27  ;;  %v6210_v4 = vld [vmem:[#allocation12 + $0x3a8] sm:$0xff]  ;;  %v6223_v32 = vld [vmem:[#allocation12 + $0x398] sm:$0xff]  ;;  %v6363_v7 = vld [vmem:[#allocation12 + $0x2f0] sm:$0xff] }
 0x214   : > { %2150 = vmatpush.msra.mxu2 %v1994_v45  ;;  %2179 = vmatpush.msra.mxu3 %v1995_v54  ;;  %1927 = vst.msk [vmem:[#allocation4] sm:$0xff] %vm1909_vm9, %v4541_v59  ;;  %v6204_v45 = vld [vmem:[#allocation12 + $0x2b8] sm:$0xff]  ;;  %v6206_v54 = vld [vmem:[#allocation12 + $0x3a0] sm:$0xff]  ;;  %v1907_v21 = vsub.f32 %v1903_v39, %v4539_v28  ;;  %v6216_v8 = vld [vmem:[#allocation12 + $0x2a8] sm:$0xff]  ;;  %vm2571_vm10 = vcmask 850944  }
 0x215   : > { %2081 = vmatpush.msra.mxu0 %v6173_v34  ;;  %2110 = vmatpush.msra.mxu1 %v6175_v55  ;;  %7713 = vst [vmem:[#allocation22_spill] sm:$0xff] %v6199_v38  ;;  %v1884_v51 = vld [vmem:[#allocation3 + $0x18] sm:$0x3f]  ;;  %v6234_v59 = vld [vmem:[#allocation12 + $0x290] sm:$0xff]  ;;  %v6236_v39 = vld [vmem:[#allocation12 + $0x298] sm:$0xff] }
 0x216   : > { %2151 = vmatpush.msra.mxu2 %v1992_v16  ;;  %2180 = vmatpush.msra.mxu3 %v1993_v20  ;;  %1928 = vst.msk [vmem:[#allocation4 + $0x8] sm:$0xff] %vm1909_vm9, %v4542_v40  ;;  %v1880_v16 = vld [vmem:[#allocation2 + $0x18] sm:$0x3f]  ;;  %vm1917_vm13 = vcmp.gt.f32.partialorder %v1907_v21, 1.0  ;;  %vm1888_vm14 = vcmp.gt.f32.partialorder %v1884_v51, 1.0  ;;  %v1900_v2 = vmul.f32 0.5, %v1884_v51 }
 0x217   : > { %2082 = vmatpush.msra.mxu0 %v6179_v3  ;;  %2111 = vmatpush.msra.mxu1 %v6181_v18  ;;  %7714 = vst [vmem:[#allocation23_spill] sm:$0xff] %v6206_v54  ;;  %v6214_v20 = vld [vmem:[#allocation12 + $0x2a0] sm:$0xff]  ;;  %v4543_v53 = vsel %vm1917_vm13, 1.0, %v7593_v27  ;;  %v6242_v51 = vld [vmem:[#allocation12 + $0x388] sm:$0xff]  ;;  %vm2573_vm13 = vcmask 847872  }
 0x218   : > { %2152 = vmatpush.msra.mxu2 %v1990_v12  ;;  %2181 = vmatpush.msra.mxu3 %v1991_v5  ;;  %7715 = vst [vmem:[#allocation24_spill] sm:$0xff] %v6210_v4  ;;  %v4540_v12 = vsel %vm1888_vm14, 1.0, %v7593_v27  ;;  %v1904_v5 = vadd.f32 %v1900_v2, %v1880_v16  ;;  %v6240_v16 = vld [vmem:[#allocation12 + $0x380] sm:$0xff] }
 0x219   : > { %2243 = vmatpush.msrb.mxu0 %v6189_v44  ;;  %2272 = vmatpush.msrb.mxu1 %v6191_v29  ;;  %1912 = vst.msk [vmem:[#allocation3 + $0x10] sm:$0xff] %vm1909_vm9, %v1907_v21  ;;  %v6246_v2 = vld [vmem:[#allocation12 + $0x280] sm:$0xff] }
 0x21a   : > { %2356 = vmatpush.msrb.mxu2 %v6197_v24  ;;  %2385 = vmatpush.msrb.mxu3 %v6199_v38  ;;  %7716 = vst [vmem:[#allocation25_spill] sm:$0xff] %v6221_v30  ;;  %v1908_v40 = vsub.f32 %v1904_v5, %v4540_v12  ;;  %v6253_v12 = vld [vmem:[#allocation12 + $0x370] sm:$0xff]  ;;  %v6255_v5 = vld [vmem:[#allocation12 + $0x378] sm:$0xff]  ;;  %v6303_v38 = vld [vmem:[#allocation12 + $0x248] sm:$0xff] }
 0x21b   : > { %2244 = vmatpush.msrb.mxu0 %v6202_v62  ;;  %2273 = vmatpush.msrb.mxu1 %v6204_v45  ;;  %7717 = vst [vmem:[#allocation26_spill] sm:$0xff] %v6223_v32  ;;  %v1986_v28 = vld [vmem:[#allocation4] sm:$0xff]  ;;  %v6309_v24 = vld [vmem:[#allocation12 + $0x338] sm:$0xff] }
 0x21c   : > { %2357 = vmatpush.msrb.mxu2 %v6206_v54  ;;  %2386 = vmatpush.msrb.mxu3 %v6210_v4  ;;  %1929 = vst.msk [vmem:[#allocation4 + $0x10] sm:$0xff] %vm1909_vm9, %v4543_v53  ;;  %v6248_v53 = vld [vmem:[#allocation12 + $0x288] sm:$0xff]  ;;  %vm1918_vm0 = vcmp.gt.f32.partialorder %v1908_v40, 1.0 }
 0x21d   : > { %2245 = vmatpush.msrb.mxu0 %v6214_v20  ;;  %2274 = vmatpush.msrb.mxu1 %v6216_v8  ;;  %v2020_v21 = vld [vmem:[#allocation4 + $0x1] sm:$0xff]  ;;  %7718 = vst [vmem:[#allocation27_spill] sm:$0xff] %v6240_v16 }
 0x21e   : > { %2358 = vmatpush.msrb.mxu2 %v6221_v30  ;;  %2387 = vmatpush.msrb.mxu3 %v6223_v32  ;;  %7719 = vst [vmem:[#allocation28_spill] sm:$0xff] %v6242_v51  ;;  %v6262_v32 = vld [vmem:[#allocation12 + $0x278] sm:$0xff]  ;;  %v6269_v30 = vld [vmem:[#allocation12 + $0x368] sm:$0xff] }
 0x21f   : > { %4561 = vmatmul.msk.f32.vlgmr.msra.gmra.mxu2 %vm1909_vm9, %v1986_v28  ;;  %4565 = vmatmul.msk.f32.vlgmr.msra.gmra.mxu3 %vm1909_vm9, %v1986_v28  ;;  %7720 = vst [vmem:[#allocation29_spill] sm:$0xff] %v6246_v2  ;;  %v4544_v28 = vsel %vm1918_vm0, 1.0, %v7593_v27  ;;  %v1987_v4 = vld [vmem:[#allocation4 + $0x8] sm:$0xff]  ;;  %v6297_v54 = vld [vmem:[#allocation12 + $0x348] sm:$0xff] }
 0x220   : > { %4553 = vmatmul.msk.f32.vlgmr.msra.gmra.mxu0 %vm1909_vm9, %v2020_v21  ;;  %4557 = vmatmul.msk.f32.vlgmr.msra.gmra.mxu1 %vm1909_vm9, %v2020_v21  ;;  %7721 = vst [vmem:[#allocation30_spill] sm:$0xff] %v6248_v53  ;;  %v6260_v21 = vld [vmem:[#allocation12 + $0x270] sm:$0xff] }
 0x221   : > { %1914 = vst.msk [vmem:[#allocation3 + $0x18] sm:$0x3f] %vm1913_vm15, %v1908_v40  ;;  %2246 = vmatpush.msrb.mxu0 %v6234_v59  ;;  %2275 = vmatpush.msrb.mxu1 %v6236_v39  ;;  %v6267_v40 = vld [vmem:[#allocation12 + $0x360] sm:$0xff] }
 0x222   : > { %7722 = vst [vmem:[#allocation31_spill] sm:$0xff] %v6253_v12  ;;  %2359 = vmatpush.msrb.mxu2 %v6240_v16  ;;  %2388 = vmatpush.msrb.mxu3 %v6242_v51  ;;  %v6279_v51 = vld [vmem:[#allocation12 + $0x268] sm:$0xff]  ;;  %v6289_v16 = vld [vmem:[#allocation12 + $0x250] sm:$0xff] }
 0x223   : > { %7723 = vst [vmem:[#allocation32_spill] sm:$0xff] %v6255_v5  ;;  %2247 = vmatpush.msrb.mxu0 %v6246_v2  ;;  %2276 = vmatpush.msrb.mxu1 %v6248_v53  ;;  %v2021_v27 = vld [vmem:[#allocation4 + $0x9] sm:$0xff]  ;;  %v7755_v53 = vmov 0.0  }
 0x224   : > { %7724 = vst [vmem:[#allocation33_spill] sm:$0xff] %v6260_v21  ;;  %2360 = vmatpush.msrb.mxu2 %v6253_v12  ;;  %2389 = vmatpush.msrb.mxu3 %v6255_v5  ;;  %v6283_v12 = vld [vmem:[#allocation12 + $0x350] sm:$0xff]  ;;  %v6285_v5 = vld [vmem:[#allocation12 + $0x358] sm:$0xff] }
 0x225   : > { %7725 = vst [vmem:[#allocation34_spill] sm:$0xff] %v6262_v32  ;;  %2248 = vmatpush.msrb.mxu0 %v6260_v21  ;;  %2277 = vmatpush.msrb.mxu1 %v6262_v32  ;;  %v6355_v32 = vld [vmem:[#allocation12 + $0x200] sm:$0xff]  ;;  %v6359_v21 = vld [vmem:[#allocation12 + $0x208] sm:$0xff] }
 0x226   : > { %1930 = vst.msk [vmem:[#allocation4 + $0x18] sm:$0x3f] %vm1913_vm15, %v4544_v28  ;;  %2361 = vmatpush.msrb.mxu2 %v6267_v40  ;;  %2390 = vmatpush.msrb.mxu3 %v6269_v30  ;;  %v6277_v28 = vld [vmem:[#allocation12 + $0x260] sm:$0xff] }
 0x227   : > { %7726 = vst [vmem:[#allocation35_spill] sm:$0xff] %v6267_v40  ;;  %4562 = vmatmul.msk.f32.gmra.mxu2 %vm1909_vm9, %v1987_v4  ;;  %4566 = vmatmul.msk.f32.gmra.mxu3 %vm1909_vm9, %v1987_v4  ;;  %v6291_v40 = vld [vmem:[#allocation12 + $0x258] sm:$0xff]  ;;  %v6301_v4 = vld [vmem:[#allocation12 + $0x240] sm:$0xff] }
 0x228   : > { %7727 = vst [vmem:[#allocation36_spill] sm:$0xff] %v6269_v30  ;;  %4554 = vmatmul.msk.f32.gmra.mxu0 %vm1909_vm9, %v2021_v27  ;;  %4558 = vmatmul.msk.f32.gmra.mxu1 %vm1909_vm9, %v2021_v27  ;;  %v6295_v30 = vld [vmem:[#allocation12 + $0x340] sm:$0xff]  ;;  %v6307_v27 = vld [vmem:[#allocation12 + $0x330] sm:$0xff] }
 0x229   : > { %7728 = vst [vmem:[#allocation37_spill] sm:$0xff] %v6277_v28  ;;  %2249 = vmatpush.msrb.mxu0 %v6277_v28  ;;  %2278 = vmatpush.msrb.mxu1 %v6279_v51  ;;  %v1938_v28 = vld [vmem:[#allocation3 + $0x28] sm:$0xff] }
 0x22a   : > { %7729 = vst [vmem:[#allocation38_spill] sm:$0xff] %v6279_v51  ;;  %2362 = vmatpush.msrb.mxu2 %v6283_v12  ;;  %2391 = vmatpush.msrb.mxu3 %v6285_v5  ;;  %v1988_v51 = vld [vmem:[#allocation4 + $0x10] sm:$0xff]  ;;  %vm1942_vm2 = vcmp.gt.f32.partialorder %v1938_v28, 1.0 }
 0x22b   : > { %7730 = vst [vmem:[#allocation39_spill] sm:$0xff] %v6283_v12  ;;  %2250 = vmatpush.msrb.mxu0 %v6289_v16  ;;  %2279 = vmatpush.msrb.mxu1 %v6291_v40 }
 0x22c   : > { %7731 = vst [vmem:[#allocation40_spill] sm:$0xff] %v6285_v5  ;;  %2363 = vmatpush.msrb.mxu2 %v6295_v30  ;;  %2392 = vmatpush.msrb.mxu3 %v6297_v54  ;;  %v6317_v5 = vld [vmem:[#allocation12 + $0x230] sm:$0xff] }
 0x22d   : > { %7732 = vst [vmem:[#allocation41_spill] sm:$0xff] %v6289_v16  ;;  %v2022_v12 = vld [vmem:[#allocation4 + $0x11] sm:$0xff]  ;;  %2251 = vmatpush.msrb.mxu0 %v6301_v4  ;;  %2280 = vmatpush.msrb.mxu1 %v6303_v38 }
 0x22e   : > { %7733 = vst [vmem:[#allocation42_spill] sm:$0xff] %v6291_v40  ;;  %2364 = vmatpush.msrb.mxu2 %v6307_v27  ;;  %2393 = vmatpush.msrb.mxu3 %v6309_v24  ;;  %v6319_v40 = vld [vmem:[#allocation12 + $0x238] sm:$0xff] }
 0x22f   : > { %7734 = vst [vmem:[#allocation43_spill] sm:$0xff] %v6295_v30  ;;  %4563 = vmatmul.msk.f32.gmra.mxu2 %vm1909_vm9, %v1988_v51  ;;  %4567 = vmatmul.msk.f32.gmra.mxu3 %vm1909_vm9, %v1988_v51  ;;  %v6323_v30 = vld [vmem:[#allocation12 + $0x320] sm:$0xff]  ;;  %v6341_v51 = vld [vmem:[#allocation12 + $0x210] sm:$0xff]  ;;  %v6343_v16 = vld [vmem:[#allocation12 + $0x218] sm:$0xff] }
 0x230   : > { %7735 = vst [vmem:[#allocation44_spill] sm:$0xff] %v6297_v54  ;;  %v6325_v54 = vld [vmem:[#allocation12 + $0x328] sm:$0xff]  ;;  %4555 = vmatmul.msk.f32.gmra.mxu0 %vm1909_vm9, %v2022_v12  ;;  %4559 = vmatmul.msk.f32.gmra.mxu1 %vm1909_vm9, %v2022_v12  ;;  %v6347_v12 = vld [vmem:[#allocation12 + $0x300] sm:$0xff] }
 0x231   : > { %7736 = vst [vmem:[#allocation45_spill] sm:$0xff] %v6301_v4  ;;  %2252 = vmatpush.msrb.mxu0 %v6317_v5  ;;  %2281 = vmatpush.msrb.mxu1 %v6319_v40  ;;  %v6337_v4 = vld [vmem:[#allocation12 + $0x318] sm:$0xff] }
 0x232   : > { %7737 = vst [vmem:[#allocation46_spill] sm:$0xff] %v6303_v38  ;;  %v6329_v38 = vld [vmem:[#allocation12 + $0x220] sm:$0xff]  ;;  %2365 = vmatpush.msrb.mxu2 %v6323_v30  ;;  %2394 = vmatpush.msrb.mxu3 %v6325_v54 }
 0x233   : > { %7738 = vst [vmem:[#allocation47_spill] sm:$0xff] %v6307_v27  ;;  %v6331_v27 = vld [vmem:[#allocation12 + $0x228] sm:$0xff]  ;;  %2253 = vmatpush.msrb.mxu0 %v6329_v38 }
 0x234   : > { %7739 = vst [vmem:[#allocation48_spill] sm:$0xff] %v6309_v24  ;;  %v6335_v24 = vld [vmem:[#allocation12 + $0x310] sm:$0xff]  ;;  %2282 = vmatpush.msrb.mxu1 %v6331_v27  ;;  %2395 = vmatpush.msrb.mxu3 %v6337_v4 }
 0x235   : > { %7740 = vst [vmem:[#allocation49_spill] sm:$0xff] %v6317_v5  ;;  %v6349_v5 = vld [vmem:[#allocation12 + $0x308] sm:$0xff]  ;;  %2366 = vmatpush.msrb.mxu2 %v6335_v24  ;;  %2254 = vmatpush.msrb.mxu0 %v6341_v51 }
 0x236   : > { %7741 = vst [vmem:[#allocation50_spill] sm:$0xff] %v6319_v40  ;;  %v1989_v40 = vld [vmem:[#allocation4 + $0x18] sm:$0x3]  ;;  %2283 = vmatpush.msrb.mxu1 %v6343_v16  ;;  %2396 = vmatpush.msrb.mxu3 %v6349_v5 }
 0x237   : > { %7742 = vst [vmem:[#allocation51_spill] sm:$0xff] %v6323_v30  ;;  %v1937_v30 = vld [vmem:[#allocation3 + $0x20] sm:$0xff]  ;;  %2367 = vmatpush.msrb.mxu2 %v6347_v12  ;;  %4568 = vmatmul.msk.f32.gmra.mxu3 %vm1909_vm9, %v1989_v40 }
 0x238   : > { %7743 = vst [vmem:[#allocation52_spill] sm:$0xff] %v6325_v54  ;;  %v2023_v54 = vld [vmem:[#allocation4 + $0x19] sm:$0x3]  ;;  %4564 = vmatmul.msk.f32.gmra.mxu2 %vm1909_vm9, %v1989_v40  ;;  %vm1941_vm1 = vcmp.gt.f32.partialorder %v1937_v30, 1.0  ;;  %v4546_v40 = vsel %vm1942_vm2, 1.0, %v7755_v53  ;;  %2255 = vmatpush.msrb.mxu0 %v6355_v32 }
 0x239   : > { %7744 = vst [vmem:[#allocation53_spill] sm:$0xff] %v6329_v38  ;;  %v1953_v38 = vmul.f32 0.5, %v1937_v30  ;;  %4556 = vmatmul.msk.f32.gmra.mxu0 %vm1909_vm9, %v2023_v54  ;;  %4560 = vmatmul.msk.f32.gmra.mxu1 %vm1909_vm9, %v2023_v54  ;;  %v4545_v2 = vsel %vm1941_vm1, 1.0, %v7755_v53  ;;  %v6377_v30 = vld [vmem:[#allocation12 + $0x2e0] sm:$0xff] }
 0x23a   : > { %7745 = vst [vmem:[#allocation54_spill] sm:$0xff] %v6331_v27  ;;  %v1954_v27 = vmul.f32 0.5, %v1938_v28  ;;  %2284 = vmatpush.msrb.mxu1 %v6359_v21  ;;  %2368 = vmatpush.msrb.mxu2 %v6363_v7  ;;  %v6383_v54 = vld [vmem:[#allocation12 + $0x1e0] sm:$0xff] }
 0x23b   : > { %7746 = vst [vmem:[#allocation55_spill] sm:$0xff] %v6335_v24  ;;  %v1932_v24 = vld [vmem:[#allocation2 + $0x20] sm:$0xff] }
 0x23c   : > { %7747 = vst [vmem:[#allocation56_spill] sm:$0xff] %v6337_v4  ;;  %v1933_v4 = vld [vmem:[#allocation2 + $0x28] sm:$0xff]  ;;  %2369 = vmatpush.msrb.mxu2 %v6377_v30 }
 0x23d   : > { %7748 = vst [vmem:[#allocation57_spill] sm:$0xff] %v6341_v51  ;;  %v6365_v51 = vld [vmem:[#allocation12 + $0x2f8] sm:$0xff]  ;;  %v1958_v56 = vadd.f32 %v1954_v27, %v1933_v4  ;;  %v6385_v4 = vld [vmem:[#allocation12 + $0x1e8] sm:$0xff]  ;;  %v6389_v27 = vld [vmem:[#allocation12 + $0x2d0] sm:$0xff] }
 0x23e   : > { %7749 = vst [vmem:[#allocation58_spill] sm:$0xff] %v6343_v16  ;;  %v1957_v16 = vadd.f32 %v1953_v38, %v1932_v24  ;;  %v6379_v24 = vld [vmem:[#allocation12 + $0x2e8] sm:$0xff]  ;;  %2397 = vmatpush.msrb.mxu3 %v6365_v51  ;;  %2370 = vmatpush.msrb.mxu2 %v6389_v27 }
 0x23f   : > { %7750 = vst [vmem:[#allocation59_spill] sm:$0xff] %v6347_v12  ;;  %v6371_v12 = vld [vmem:[#allocation12 + $0x1f8] sm:$0xff]  ;;  %v1962_v28 = vsub.f32 %v1958_v56, %v4546_v40  ;;  %v2195_v40 = vld [vmem:[#allocation4 + $0x2] sm:$0xff] }
 0x240   : > { %7751 = vst [vmem:[#allocation60_spill] sm:$0xff] %v6349_v5  ;;  %v6369_v5 = vld [vmem:[#allocation12 + $0x1f0] sm:$0xff]  ;;  %v1961_v38 = vsub.f32 %v1957_v16, %v4545_v2  ;;  %2285 = vmatpush.msrb.mxu1 %v6371_v12  ;;  %2398 = vmatpush.msrb.mxu3 %v6379_v24 }
 0x241   : > { %7752 = vst [vmem:[#allocation61_spill] sm:$0xff] %v6359_v21  ;;  %2256 = vmatpush.msrb.mxu0 %v6369_v5  ;;  %v6391_v21 = vld [vmem:[#allocation12 + $0x2d8] sm:$0xff]  ;;  %vm1970_vm4 = vcmp.gt.f32.partialorder %v1962_v28, 1.0  ;;  %2664 = vmatpush.msra.mxu2 %v6065_v46 }
 0x242   : > { %7753 = vst [vmem:[#allocation62_spill] sm:$0xff] %v6363_v7  ;;  %vm1969_vm3 = vcmp.gt.f32.partialorder %v1961_v38, 1.0  ;;  %v2308_v56 = vld [vmem:[#allocation4 + $0x3] sm:$0xff]  ;;  %v4550_v2 = vsel %vm1970_vm4, 1.0, %v7755_v53  ;;  %2286 = vmatpush.msrb.mxu1 %v6385_v4  ;;  %2399 = vmatpush.msrb.mxu3 %v6391_v21  ;;  %v6424_v7 = vld [vmem:[#allocation12 + $0x488] sm:$0xff]  ;;  %vm3523_vm4 = vcmask 651264  }
 0x243   : > { %7754 = vst [vmem:[#allocation63_spill] sm:$0xff] %v6365_v51  ;;  %v4549_v16 = vsel %vm1969_vm3, 1.0, %v7755_v53  ;;  %2257 = vmatpush.msrb.mxu0 %v6383_v54  ;;  %4577 = vmatmul.msk.f32.vlgmr.msrb.gmra.mxu2 %vm1909_vm9, %v2308_v56  ;;  %v1934_v51 = vld [vmem:[#allocation2 + $0x30] sm:$0xff] }
 0x244   : > { %7756 = vst [vmem:[#allocation64_spill] sm:$0xff] %v6377_v30  ;;  %v6406_v30 = vld [vmem:[#allocation12 + $0x4a8] sm:$0xff]  ;;  %4581 = vmatmul.msk.f32.vlgmr.msrb.gmra.mxu3 %vm1909_vm9, %v2308_v56  ;;  %4569 = vmatmul.msk.f32.vlgmr.msrb.gmra.mxu0 %vm1909_vm9, %v2195_v40  ;;  %v6422_v56 = vld [vmem:[#allocation12 + $0x480] sm:$0xff]  ;;  %v2196_v46 = vld [vmem:[#allocation4 + $0xa] sm:$0xff] }
 0x245   : > { %7757 = vst [vmem:[#allocation65_spill] sm:$0xff] %v6379_v24  ;;  %v6404_v24 = vld [vmem:[#allocation12 + $0x4a0] sm:$0xff]  ;;  %4573 = vmatmul.msk.f32.vlgmr.msrb.gmra.mxu1 %vm1909_vm9, %v2195_v40  ;;  %2693 = vmatpush.msra.mxu3 %v6067_v41 }
 0x246   : > { %7758 = vst [vmem:[#allocation66_spill] sm:$0xff] %v6389_v27  ;;  %v6415_v27 = vld [vmem:[#allocation12 + $0x498] sm:$0xff]  ;;  %2469 = vmatpush.msra.mxu0 %v6404_v24  ;;  %2498 = vmatpush.msra.mxu1 %v6406_v30 }
 0x247   : > { %7759 = vst [vmem:[#allocation67_spill] sm:$0xff] %v6391_v21  ;;  %2665 = vmatpush.msra.mxu2 %v6075_v61  ;;  %2694 = vmatpush.msra.mxu3 %v6077_v17  ;;  %v6438_v61 = vld [vmem:[#allocation12 + $0x478] sm:$0xff] }
 0x248   : > { %1965 = vst.msk [vmem:[#allocation3 + $0x20] sm:$0xff] %vm1909_vm9, %v1961_v38  ;;  %v1939_v38 = vld [vmem:[#allocation3 + $0x30] sm:$0xff]  ;;  %2499 = vmatpush.msra.mxu1 %v6415_v27 }
 0x249   : > { %1966 = vst.msk [vmem:[#allocation3 + $0x28] sm:$0xff] %vm1909_vm9, %v1962_v28  ;;  %v1955_v28 = vmul.f32 0.5, %v1939_v38  ;;  %vm1943_vm5 = vcmp.gt.f32.partialorder %v1939_v38, 1.0  ;;  %2666 = vmatpush.msra.mxu2 %v6085_v1  ;;  %2695 = vmatpush.msra.mxu3 %v6089_v50  ;;  %v6436_v38 = vld [vmem:[#allocation12 + $0x470] sm:$0xff]  ;;  %v6447_v1 = vld [vmem:[#allocation12 + $0x468] sm:$0xff] }
 0x24a   : > { %1982 = vst.msk [vmem:[#allocation4 + $0x20] sm:$0xff] %vm1909_vm9, %v4549_v16  ;;  %v6413_v16 = vld [vmem:[#allocation12 + $0x490] sm:$0xff]  ;;  %2500 = vmatpush.msra.mxu1 %v6424_v7 }
 0x24b   : > { %1983 = vst.msk [vmem:[#allocation4 + $0x28] sm:$0xff] %vm1909_vm9, %v4550_v2  ;;  %v1959_v21 = vadd.f32 %v1955_v28, %v1934_v51  ;;  %v4547_v2 = vsel %vm1943_vm5, 1.0, %v7755_v53  ;;  %2470 = vmatpush.msra.mxu0 %v6413_v16  ;;  %v2309_v51 = vld [vmem:[#allocation4 + $0xb] sm:$0xff]  ;;  %v1935_v28 = vld [vmem:[#allocation2 + $0x38] sm:$0x3f]  ;;  %2667 = vmatpush.msra.mxu2 %v6097_v25  ;;  %vm3539_vm5 = vcmask 654336  }
 0x24c   : > { %4578 = vmatmul.msk.f32.gmra.mxu2 %vm1909_vm9, %v2309_v51  ;;  %4582 = vmatmul.msk.f32.gmra.mxu3 %vm1909_vm9, %v2309_v51  ;;  %v6454_v51 = vld [vmem:[#allocation12 + $0x450] sm:$0xff] }
 0x24d   : > { %v1963_v40 = vsub.f32 %v1959_v21, %v4547_v2  ;;  %2471 = vmatpush.msra.mxu0 %v6422_v56  ;;  %v1940_v21 = vld [vmem:[#allocation3 + $0x38] sm:$0x3f]  ;;  %4574 = vmatmul.msk.f32.gmra.mxu1 %vm1909_vm9, %v2196_v46 }
 0x24e   : > { %v1956_v17 = vmul.f32 0.5, %v1940_v21  ;;  %4570 = vmatmul.msk.f32.gmra.mxu0 %vm1909_vm9, %v2196_v46  ;;  %v6445_v2 = vld [vmem:[#allocation12 + $0x460] sm:$0xff]  ;;  %vm1944_vm7 = vcmp.gt.f32.partialorder %v1940_v21, 1.0  ;;  %2501 = vmatpush.msra.mxu1 %v6438_v61 }
 0x24f   : > { %1967 = vst.msk [vmem:[#allocation3 + $0x30] sm:$0xff] %vm1909_vm9, %v1963_v40  ;;  %vm1971_vm6 = vcmp.gt.f32.partialorder %v1963_v40, 1.0  ;;  %2472 = vmatpush.msra.mxu0 %v6436_v38  ;;  %v4548_v40 = vsel %vm1944_vm7, 1.0, %v7755_v53  ;;  %2696 = vmatpush.msra.mxu3 %v6099_v52  ;;  %v6462_v21 = vld [vmem:[#allocation12 + $0x440] sm:$0xff] }
 0x250   : > { %v4551_v41 = vsel %vm1971_vm6, 1.0, %v7755_v53  ;;  %v1960_v50 = vadd.f32 %v1956_v17, %v1935_v28  ;;  %2502 = vmatpush.msra.mxu1 %v6447_v1  ;;  %2668 = vmatpush.msra.mxu2 %v6109_v36  ;;  %v6464_v17 = vld [vmem:[#allocation12 + $0x448] sm:$0xff]  ;;  %v2197_v52 = vld [vmem:[#allocation4 + $0x12] sm:$0xff]  ;;  %v6479_v28 = vld [vmem:[#allocation12 + $0x438] sm:$0xff] }
 0x251   : > { %1984 = vst.msk [vmem:[#allocation4 + $0x30] sm:$0xff] %vm1909_vm9, %v4551_v41  ;;  %v6456_v41 = vld [vmem:[#allocation12 + $0x458] sm:$0xff]  ;;  %2473 = vmatpush.msra.mxu0 %v6445_v2  ;;  %2697 = vmatpush.msra.mxu3 %v6111_v37  ;;  %v2310_v36 = vld [vmem:[#allocation4 + $0x13] sm:$0xff]  ;;  %v6477_v37 = vld [vmem:[#allocation12 + $0x430] sm:$0xff] }
 0x252   : > { %v1964_v46 = vsub.f32 %v1960_v50, %v4548_v40  ;;  %2503 = vmatpush.msra.mxu1 %v6456_v41  ;;  %2669 = vmatpush.msra.mxu2 %v6121_v22  ;;  %v6485_v22 = vld [vmem:[#allocation12 + $0x420] sm:$0xff]  ;;  %v6503_v40 = vld [vmem:[#allocation12 + $0x408] sm:$0xff] }
 0x253   : > { %2474 = vmatpush.msra.mxu0 %v6454_v51  ;;  %2698 = vmatpush.msra.mxu3 %v6123_v23  ;;  %v6487_v23 = vld [vmem:[#allocation12 + $0x428] sm:$0xff]  ;;  %v6501_v50 = vld [vmem:[#allocation12 + $0x400] sm:$0xff] }
 0x254   : > { %1968 = vst.msk [vmem:[#allocation3 + $0x38] sm:$0x3f] %vm1913_vm15, %v1964_v46  ;;  %vm1972_vm8 = vcmp.gt.f32.partialorder %v1964_v46, 1.0  ;;  %2504 = vmatpush.msra.mxu1 %v6464_v17  ;;  %2670 = vmatpush.msra.mxu2 %v6129_v6  ;;  %v6493_v6 = vld [vmem:[#allocation12 + $0x410] sm:$0xff]  ;;  %v6537_v46 = vld [vmem:[#allocation12 + $0x3c0] sm:$0xff] }
 0x255   : > { %v4552_v25 = vsel %vm1972_vm8, 1.0, %v7755_v53  ;;  %2475 = vmatpush.msra.mxu0 %v6462_v21  ;;  %2699 = vmatpush.msra.mxu3 %v6131_v14  ;;  %v6495_v14 = vld [vmem:[#allocation12 + $0x418] sm:$0xff]  ;;  %vm3711_vm8 = vcmask 73728  }
 0x256   : > { %1985 = vst.msk [vmem:[#allocation4 + $0x38] sm:$0x3f] %vm1913_vm15, %v4552_v25  ;;  %4571 = vmatmul.msk.f32.gmra.mxu0 %vm1909_vm9, %v2197_v52  ;;  %4575 = vmatmul.msk.f32.gmra.mxu1 %vm1909_vm9, %v2197_v52  ;;  %v6539_v25 = vld [vmem:[#allocation12 + $0x3c8] sm:$0xff]  ;;  %v2599_v52 = vld [vmem:[#allocation12 + $0x60] sm:$0xff] }
 0x257   : > { %4579 = vmatmul.msk.f32.gmra.mxu2 %vm1909_vm9, %v2310_v36  ;;  %4583 = vmatmul.msk.f32.gmra.mxu3 %vm1909_vm9, %v2310_v36  ;;  %v2600_v36 = vld [vmem:[#allocation12 + $0x68] sm:$0xff] }
 0x258   : > { %2476 = vmatpush.msra.mxu0 %v6477_v37  ;;  %2505 = vmatpush.msra.mxu1 %v6479_v28 }
 0x259   : > { %2671 = vmatpush.msra.mxu2 %v6135_v26  ;;  %2700 = vmatpush.msra.mxu3 %v6137_v9  ;;  %v2198_v26 = vld [vmem:[#allocation4 + $0x1a] sm:$0x3] }
 0x25a   : > { %2477 = vmatpush.msra.mxu0 %v6485_v22  ;;  %2506 = vmatpush.msra.mxu1 %v6487_v23  ;;  %v2311_v9 = vld [vmem:[#allocation4 + $0x1b] sm:$0x3] }
 0x25b   : > { %2672 = vmatpush.msra.mxu2 %v6141_v31  ;;  %2701 = vmatpush.msra.mxu3 %v6143_v15  ;;  %v6513_v31 = vld [vmem:[#allocation12 + $0x3f0] sm:$0xff]  ;;  %v6515_v15 = vld [vmem:[#allocation12 + $0x3f8] sm:$0xff] }
 0x25c   : > { %2478 = vmatpush.msra.mxu0 %v6493_v6  ;;  %2507 = vmatpush.msra.mxu1 %v6495_v14 }
 0x25d   : > { %2673 = vmatpush.msra.mxu2 %v6147_v19  ;;  %2702 = vmatpush.msra.mxu3 %v6149_v33  ;;  %v6521_v19 = vld [vmem:[#allocation12 + $0x3e0] sm:$0xff]  ;;  %v6523_v33 = vld [vmem:[#allocation12 + $0x3e8] sm:$0xff] }
 0x25e   : > { %2479 = vmatpush.msra.mxu0 %v6501_v50  ;;  %2508 = vmatpush.msra.mxu1 %v6503_v40 }
 0x25f   : > { %2674 = vmatpush.msra.mxu2 %v6153_v35  ;;  %2703 = vmatpush.msra.mxu3 %v6155_v63  ;;  %v6529_v35 = vld [vmem:[#allocation12 + $0x3d0] sm:$0xff]  ;;  %v6531_v63 = vld [vmem:[#allocation12 + $0x3d8] sm:$0xff] }
 0x260   : > { %4572 = vmatmul.msk.f32.gmra.mxu0 %vm1909_vm9, %v2198_v26  ;;  %4576 = vmatmul.msk.f32.gmra.mxu1 %vm1909_vm9, %v2198_v26  ;;  %v7772_v26 = vld [vmem:[#allocation49_spill] sm:$0xff] }
 0x261   : > { %4580 = vmatmul.msk.f32.gmra.mxu2 %vm1909_vm9, %v2311_v9  ;;  %4584 = vmatmul.msk.f32.gmra.mxu3 %vm1909_vm9, %v2311_v9  ;;  %v7773_v9 = vld [vmem:[#allocation50_spill] sm:$0xff] }
 0x262   : > { %2480 = vmatpush.msra.mxu0 %v6513_v31  ;;  %2509 = vmatpush.msra.mxu1 %v6515_v15 }
 0x263   : > { %2675 = vmatpush.msra.mxu2 %v6159_v13  ;;  %2704 = vmatpush.msra.mxu3 %v6161_v58  ;;  %v2421_v13 = vld [vmem:[#allocation4 + $0x4] sm:$0xff] }
 0x264   : > { %2481 = vmatpush.msra.mxu0 %v6521_v19  ;;  %2510 = vmatpush.msra.mxu1 %v6523_v33  ;;  %v2617_v58 = vld [vmem:[#allocation4 + $0x21] sm:$0xff] }
 0x265   : > { %2676 = vmatpush.msra.mxu2 %v6165_v42  ;;  %2705 = vmatpush.msra.mxu3 %v6167_v48  ;;  %v2422_v42 = vld [vmem:[#allocation4 + $0xc] sm:$0xff] }
 0x266   : > { %2482 = vmatpush.msra.mxu0 %v6529_v35  ;;  %2511 = vmatpush.msra.mxu1 %v6531_v63  ;;  %v2618_v48 = vld [vmem:[#allocation4 + $0x29] sm:$0xff] }
 0x267   : > { %2677 = vmatpush.msra.mxu2 %v6173_v34  ;;  %2706 = vmatpush.msra.mxu3 %v6175_v55  ;;  %v7764_v34 = vld [vmem:[#allocation33_spill] sm:$0xff]  ;;  %v7765_v55 = vld [vmem:[#allocation34_spill] sm:$0xff] }
 0x268   : > { %2483 = vmatpush.msra.mxu0 %v6537_v46  ;;  %2512 = vmatpush.msra.mxu1 %v6539_v25 }
 0x269   : > { %2678 = vmatpush.msra.mxu2 %v6179_v3  ;;  %2707 = vmatpush.msra.mxu3 %v6181_v18  ;;  %v2423_v3 = vld [vmem:[#allocation4 + $0x14] sm:$0xff] }
 0x26a   : > { %4585 = vmatmul.msk.f32.vlgmr.msra.gmra.mxu0 %vm1909_vm9, %v2421_v13  ;;  %4589 = vmatmul.msk.f32.vlgmr.msra.gmra.mxu1 %vm1909_vm9, %v2421_v13  ;;  %v2619_v18 = vld [vmem:[#allocation4 + $0x31] sm:$0xff]  ;;  %v2424_v13 = vld [vmem:[#allocation4 + $0x1c] sm:$0x3] }
 0x26b   : > { %4597 = vmatmul.msk.f32.vlgmr.msra.gmra.mxu2 %vm1909_vm9, %v2617_v58  ;;  %4601 = vmatmul.msk.f32.vlgmr.msra.gmra.mxu3 %vm1909_vm9, %v2617_v58  ;;  %v2620_v58 = vld [vmem:[#allocation4 + $0x39] sm:$0x3] }
 0x26c   : > { %2838 = vmatpush.msrb.mxu2 %v6189_v44  ;;  %2867 = vmatpush.msrb.mxu3 %v6191_v29  ;;  %v2603_v44 = vld [vmem:[#allocation12 + $0x80] sm:$0xff]  ;;  %v2604_v29 = vld [vmem:[#allocation12 + $0x88] sm:$0xff] }
 0x26d   : > { %2734 = vmatpush.msrb.mxu0 %v6069_v43  ;;  %2763 = vmatpush.msrb.mxu1 %v6073_v60  ;;  %v7760_v43 = vld [vmem:[#allocation29_spill] sm:$0xff]  ;;  %v7761_v60 = vld [vmem:[#allocation30_spill] sm:$0xff] }
 0x26e   : > { %2839 = vmatpush.msrb.mxu2 %v6202_v62  ;;  %2868 = vmatpush.msrb.mxu3 %v6204_v45  ;;  %v7768_v62 = vld [vmem:[#allocation41_spill] sm:$0xff]  ;;  %v7769_v45 = vld [vmem:[#allocation42_spill] sm:$0xff] }
 0x26f   : > { %2735 = vmatpush.msrb.mxu0 %v6081_v49  ;;  %2764 = vmatpush.msrb.mxu1 %v6083_v0  ;;  %v2605_v49 = vld [vmem:[#allocation12 + $0x90] sm:$0xff]  ;;  %v2606_v0 = vld [vmem:[#allocation12 + $0x98] sm:$0xff] }
 0x270   : > { %2840 = vmatpush.msrb.mxu2 %v6214_v20  ;;  %2869 = vmatpush.msrb.mxu3 %v6216_v8  ;;  %v2601_v20 = vld [vmem:[#allocation12 + $0x70] sm:$0xff]  ;;  %v2602_v8 = vld [vmem:[#allocation12 + $0x78] sm:$0xff] }
 0x271   : > { %2736 = vmatpush.msrb.mxu0 %v6091_v10  ;;  %2765 = vmatpush.msrb.mxu1 %v6093_v11  ;;  %v7762_v10 = vld [vmem:[#allocation19_spill] sm:$0xff]  ;;  %v7763_v11 = vld [vmem:[#allocation20_spill] sm:$0xff] }
 0x272   : > { %4586 = vmatmul.msk.f32.gmra.mxu0 %vm1909_vm9, %v2422_v42  ;;  %4590 = vmatmul.msk.f32.gmra.mxu1 %vm1909_vm9, %v2422_v42  ;;  %v7774_v42 = vld [vmem:[#allocation53_spill] sm:$0xff] }
 0x273   : > { %4598 = vmatmul.msk.f32.gmra.mxu2 %vm1909_vm9, %v2618_v48  ;;  %4602 = vmatmul.msk.f32.gmra.mxu3 %vm1909_vm9, %v2618_v48  ;;  %v7775_v48 = vld [vmem:[#allocation54_spill] sm:$0xff] }
 0x274   : > { %2841 = vmatpush.msrb.mxu2 %v6234_v59  ;;  %2870 = vmatpush.msrb.mxu3 %v6236_v39  ;;  %v7770_v59 = vld [vmem:[#allocation45_spill] sm:$0xff]  ;;  %v7771_v39 = vld [vmem:[#allocation46_spill] sm:$0xff] }
 0x275   : > { %2737 = vmatpush.msrb.mxu0 %v6103_v57  ;;  %2766 = vmatpush.msrb.mxu1 %v6105_v47  ;;  %v7766_v57 = vld [vmem:[#allocation37_spill] sm:$0xff]  ;;  %v7767_v47 = vld [vmem:[#allocation38_spill] sm:$0xff] }
 0x276   : > { %2842 = vmatpush.msrb.mxu2 %v7760_v43  ;;  %2871 = vmatpush.msrb.mxu3 %v7761_v60  ;;  %v2597_v43 = vld [vmem:[#allocation12 + $0x50] sm:$0xff]  ;;  %v2598_v60 = vld [vmem:[#allocation12 + $0x58] sm:$0xff] }
 0x277   : > { %2738 = vmatpush.msrb.mxu0 %v7762_v10  ;;  %2767 = vmatpush.msrb.mxu1 %v7763_v11  ;;  %v7776_v10 = vld [vmem:[#allocation57_spill] sm:$0xff]  ;;  %v7777_v11 = vld [vmem:[#allocation58_spill] sm:$0xff] }
 0x278   : > { %2843 = vmatpush.msrb.mxu2 %v7764_v34  ;;  %2872 = vmatpush.msrb.mxu3 %v7765_v55  ;;  %v2593_v34 = vld [vmem:[#allocation12 + $0x30] sm:$0xff]  ;;  %v2594_v55 = vld [vmem:[#allocation12 + $0x38] sm:$0xff] }
 0x279   : > { %2739 = vmatpush.msrb.mxu0 %v2605_v49  ;;  %2768 = vmatpush.msrb.mxu1 %v2606_v0  ;;  %v2595_v49 = vld [vmem:[#allocation12 + $0x40] sm:$0xff]  ;;  %v2596_v0 = vld [vmem:[#allocation12 + $0x48] sm:$0xff] }
 0x27a   : > { %2844 = vmatpush.msrb.mxu2 %v7766_v57  ;;  %2873 = vmatpush.msrb.mxu3 %v7767_v47  ;;  %v2592_v57 = vld [vmem:[#allocation12 + $0x28] sm:$0xff]  ;;  %v2791_v47 = vld [vmem:[#allocation4 + $0x22] sm:$0xff] }
 0x27b   : > { %4587 = vmatmul.msk.f32.gmra.mxu0 %vm1909_vm9, %v2423_v3  ;;  %4591 = vmatmul.msk.f32.gmra.mxu1 %vm1909_vm9, %v2423_v3  ;;  %v7778_v3 = vld [vmem:[#allocation61_spill] sm:$0xff] }
 0x27c   : > { %4599 = vmatmul.msk.f32.gmra.mxu2 %vm1909_vm9, %v2619_v18  ;;  %4603 = vmatmul.msk.f32.gmra.mxu3 %vm1909_vm9, %v2619_v18  ;;  %v2591_v18 = vld [vmem:[#allocation12 + $0x20] sm:$0xff] }
 0x27d   : > { %2845 = vmatpush.msrb.mxu2 %v7768_v62  ;;  %2874 = vmatpush.msrb.mxu3 %v7769_v45  ;;  %v2588_v62 = vld [vmem:[#allocation12 + $0x8] sm:$0xff] }
 0x27e   : > { %2740 = vmatpush.msrb.mxu0 %v2603_v44  ;;  %2769 = vmatpush.msrb.mxu1 %v2604_v29  ;;  %v2589_v44 = vld [vmem:[#allocation12 + $0x10] sm:$0xff]  ;;  %v2590_v29 = vld [vmem:[#allocation12 + $0x18] sm:$0xff]  ;;  %v7784_v45 = vld [vmem:[#allocation26_spill] sm:$0xff] }
 0x27f   : > { %2846 = vmatpush.msrb.mxu2 %v7770_v59  ;;  %2875 = vmatpush.msrb.mxu3 %v7771_v39  ;;  %v2794_v59 = vld [vmem:[#allocation4 + $0x3a] sm:$0x3] }
 0x280   : > { %2741 = vmatpush.msrb.mxu0 %v2601_v20  ;;  %2770 = vmatpush.msrb.mxu1 %v2602_v8  ;;  %v7788_v20 = vld [vmem:[#allocation32_spill] sm:$0xff] }
 0x281   : > { %2847 = vmatpush.msrb.mxu2 %v7772_v26  ;;  %2876 = vmatpush.msrb.mxu3 %v7773_v9  ;;  %v7798_v26 = vld [vmem:[#allocation52_spill] sm:$0xff]  ;;  %v2586_v9 = vld [vmem:[#allocation4 + $0x38] sm:$0x3] }
 0x282   : > { %2742 = vmatpush.msrb.mxu0 %v2599_v52  ;;  %2771 = vmatpush.msrb.mxu1 %v2600_v36  ;;  %v7797_v36 = vld [vmem:[#allocation51_spill] sm:$0xff] }
 0x283   : > { %2848 = vmatpush.msrb.mxu2 %v7774_v42  ;;  %2877 = vmatpush.msrb.mxu3 %v7775_v48  ;;  %v3015_v42 = vld [vmem:[#allocation4 + $0x24] sm:$0xff] }
 0x284   : > { %4588 = vmatmul.msk.f32.gmra.mxu0 %vm1909_vm9, %v2424_v13  ;;  %4592 = vmatmul.msk.f32.gmra.mxu1 %vm1909_vm9, %v2424_v13 }
 0x285   : > { %4600 = vmatmul.msk.f32.gmra.mxu2 %vm1909_vm9, %v2620_v58  ;;  %4604 = vmatmul.msk.f32.gmra.mxu3 %vm1909_vm9, %v2620_v58 }
 0x286   : > { %2743 = vmatpush.msrb.mxu0 %v2597_v43  ;;  %2772 = vmatpush.msrb.mxu1 %v2598_v60  ;;  %v2903_v60 = vld [vmem:[#allocation4 + $0x23] sm:$0xff] }
 0x287   : > { %2849 = vmatpush.msrb.mxu2 %v7776_v10  ;;  %2878 = vmatpush.msrb.mxu3 %v7777_v11 }
 0x288   : > { %2744 = vmatpush.msrb.mxu0 %v2595_v49  ;;  %2773 = vmatpush.msrb.mxu1 %v2596_v0  ;;  %v7807_v49 = vld [vmem:[#allocation66_spill] sm:$0xff]  ;;  %v7808_v0 = vld [vmem:[#allocation67_spill] sm:$0xff] }
 0x289   : > { %2850 = vmatpush.msrb.mxu2 %v6355_v32  ;;  %2879 = vmatpush.msrb.mxu3 %v7778_v3  ;;  %v2587_v32 = vld [vmem:[#allocation12] sm:$0xff] }
 0x28a   : > { %2745 = vmatpush.msrb.mxu0 %v2593_v34  ;;  %2774 = vmatpush.msrb.mxu1 %v2594_v55  ;;  %v2904_v55 = vld [vmem:[#allocation4 + $0x2b] sm:$0xff] }
 0x28b   : > { %2851 = vmatpush.msrb.mxu2 %v6369_v5  ;;  %2880 = vmatpush.msrb.mxu3 %v6371_v12  ;;  %v2583_v5 = vld [vmem:[#allocation4 + $0x20] sm:$0xff]  ;;  %v2792_v12 = vld [vmem:[#allocation4 + $0x2a] sm:$0xff] }
 0x28c   : > { %2746 = vmatpush.msrb.mxu0 %v2591_v18  ;;  %2775 = vmatpush.msrb.mxu1 %v2592_v57  ;;  %v3017_v57 = vld [vmem:[#allocation4 + $0x34] sm:$0xff] }
 0x28d   : > { %2852 = vmatpush.msrb.mxu2 %v6383_v54  ;;  %2881 = vmatpush.msrb.mxu3 %v6385_v4  ;;  %v7779_v54 = vld [vmem:[#allocation21_spill] sm:$0xff]  ;;  %v7780_v4 = vld [vmem:[#allocation22_spill] sm:$0xff] }
 0x28e   : > { %4613 = vmatmul.msk.f32.vlgmr.msrb.gmra.mxu2 %vm1909_vm9, %v2791_v47  ;;  %4617 = vmatmul.msk.f32.vlgmr.msrb.gmra.mxu3 %vm1909_vm9, %v2791_v47 }
 0x28f   : > { %2747 = vmatpush.msrb.mxu0 %v2589_v44  ;;  %2776 = vmatpush.msrb.mxu1 %v2590_v29  ;;  %v2905_v29 = vld [vmem:[#allocation4 + $0x33] sm:$0xff] }
 0x290   : > { %3062 = vmatpush.msra.mxu2 %v6404_v24  ;;  %3091 = vmatpush.msra.mxu3 %v6406_v30  ;;  %v7781_v30 = vld [vmem:[#allocation23_spill] sm:$0xff]  ;;  %v7782_v24 = vld [vmem:[#allocation24_spill] sm:$0xff] }
 0x291   : > { %2748 = vmatpush.msrb.mxu0 %v2587_v32  ;;  %2777 = vmatpush.msrb.mxu1 %v2588_v62 }
 0x292   : > { %4605 = vmatmul.msk.f32.vlgmr.msrb.gmra.mxu0 %vm1909_vm9, %v2583_v5  ;;  %4609 = vmatmul.msk.f32.vlgmr.msrb.gmra.mxu1 %vm1909_vm9, %v2583_v5  ;;  %v3018_v5 = vld [vmem:[#allocation4 + $0x3c] sm:$0x3] }
 0x293   : > { %3063 = vmatpush.msra.mxu2 %v6413_v16  ;;  %3092 = vmatpush.msra.mxu3 %v6415_v27  ;;  %v2584_v27 = vld [vmem:[#allocation4 + $0x28] sm:$0xff]  ;;  %v7783_v16 = vld [vmem:[#allocation25_spill] sm:$0xff] }
 0x294   : > { %2950 = vmatpush.msra.mxu0 %v7779_v54  ;;  %2979 = vmatpush.msra.mxu1 %v7780_v4  ;;  %v2906_v4 = vld [vmem:[#allocation4 + $0x3b] sm:$0x3] }
 0x295   : > { %3064 = vmatpush.msra.mxu2 %v6422_v56  ;;  %3093 = vmatpush.msra.mxu3 %v6424_v7  ;;  %v7785_v7 = vld [vmem:[#allocation27_spill] sm:$0xff]  ;;  %v7786_v56 = vld [vmem:[#allocation28_spill] sm:$0xff] }
 0x296   : > { %4614 = vmatmul.msk.f32.gmra.mxu2 %vm1909_vm9, %v2792_v12  ;;  %4618 = vmatmul.msk.f32.gmra.mxu3 %vm1909_vm9, %v2792_v12 }
 0x297   : > { %2951 = vmatpush.msra.mxu0 %v7781_v30  ;;  %2980 = vmatpush.msra.mxu1 %v7782_v24 }
 0x298   : > { %3065 = vmatpush.msra.mxu2 %v6436_v38  ;;  %3094 = vmatpush.msra.mxu3 %v6438_v61  ;;  %v2793_v38 = vld [vmem:[#allocation4 + $0x32] sm:$0xff]  ;;  %v7787_v61 = vld [vmem:[#allocation31_spill] sm:$0xff] }
 0x299   : > { %2952 = vmatpush.msra.mxu0 %v7783_v16  ;;  %2981 = vmatpush.msra.mxu1 %v7784_v45 }
 0x29a   : > { %3066 = vmatpush.msra.mxu2 %v6445_v2  ;;  %3095 = vmatpush.msra.mxu3 %v6447_v1  ;;  %v7789_v2 = vld [vmem:[#allocation35_spill] sm:$0xff]  ;;  %v7790_v1 = vld [vmem:[#allocation36_spill] sm:$0xff] }
 0x29b   : > { %4606 = vmatmul.msk.f32.gmra.mxu0 %vm1909_vm9, %v2584_v27  ;;  %4610 = vmatmul.msk.f32.gmra.mxu1 %vm1909_vm9, %v2584_v27 }
 0x29c   : > { %2953 = vmatpush.msra.mxu0 %v7785_v7  ;;  %2982 = vmatpush.msra.mxu1 %v7786_v56  ;;  %v6745_v56 = vld [vmem:[#allocation14 + $0xc0] sm:$0xff] }
 0x29d   : > { %3067 = vmatpush.msra.mxu2 %v6454_v51  ;;  %3096 = vmatpush.msra.mxu3 %v6456_v41  ;;  %v2585_v51 = vld [vmem:[#allocation4 + $0x30] sm:$0xff]  ;;  %v6643_v41 = vpop.f32.mrf.mxu0  ;;  %v6645_v8 = vpop.f32.mrf.mxu1 }
 0x29e   : > { %2954 = vmatpush.msra.mxu0 %v7787_v61  ;;  %2983 = vmatpush.msra.mxu1 %v7788_v20  ;;  %v6747_v61 = vld [vmem:[#allocation14 + $0xb0] sm:$0xff] }
 0x29f   : > { %3068 = vmatpush.msra.mxu2 %v6462_v21  ;;  %3097 = vmatpush.msra.mxu3 %v6464_v17  ;;  %v7791_v21 = vld [vmem:[#allocation39_spill] sm:$0xff]  ;;  %v7792_v17 = vld [vmem:[#allocation40_spill] sm:$0xff] }
 0x2a0   : > { %4615 = vmatmul.msk.f32.gmra.mxu2 %vm1909_vm9, %v2793_v38  ;;  %4619 = vmatmul.msk.f32.gmra.mxu3 %vm1909_vm9, %v2793_v38  ;;  %v3200_v38 = vld [vmem:[#allocation14 + $0xc8] sm:$0xff] }
 0x2a1   : > { %2955 = vmatpush.msra.mxu0 %v7789_v2  ;;  %2984 = vmatpush.msra.mxu1 %v7790_v1  ;;  %v3198_v1 = vld [vmem:[#allocation14 + $0xb8] sm:$0xff] }
 0x2a2   : > { %3069 = vmatpush.msra.mxu2 %v6477_v37  ;;  %3098 = vmatpush.msra.mxu3 %v6479_v28  ;;  %v7793_v37 = vld [vmem:[#allocation43_spill] sm:$0xff]  ;;  %v7794_v28 = vld [vmem:[#allocation44_spill] sm:$0xff]  ;;  %v6657_v39 = vpop.f32.mrf.mxu2  ;;  %v6659_v52 = vpop.f32.mrf.mxu3 }
 0x2a3   : > { %2956 = vmatpush.msra.mxu0 %v7791_v21  ;;  %2985 = vmatpush.msra.mxu1 %v7792_v17  ;;  %v3196_v21 = vld [vmem:[#allocation14 + $0xa8] sm:$0xff]  ;;  %v6754_v17 = vld [vmem:[#allocation14 + $0x190] sm:$0xff] }
 0x2a4   : > { %3070 = vmatpush.msra.mxu2 %v6485_v22  ;;  %3099 = vmatpush.msra.mxu3 %v6487_v23  ;;  %v7795_v22 = vld [vmem:[#allocation47_spill] sm:$0xff]  ;;  %v7796_v23 = vld [vmem:[#allocation48_spill] sm:$0xff] }
 0x2a5   : > { %4607 = vmatmul.msk.f32.gmra.mxu0 %vm1909_vm9, %v2585_v51  ;;  %4611 = vmatmul.msk.f32.gmra.mxu1 %vm1909_vm9, %v2585_v51  ;;  %v3195_v51 = vld [vmem:[#allocation14 + $0xa0] sm:$0xff] }
 0x2a6   : > { %2957 = vmatpush.msra.mxu0 %v7793_v37  ;;  %2986 = vmatpush.msra.mxu1 %v7794_v28  ;;  %v3193_v37 = vld [vmem:[#allocation14 + $0x90] sm:$0xff]  ;;  %v6757_v28 = vld [vmem:[#allocation14 + $0x198] sm:$0xff] }
 0x2a7   : > { %3071 = vmatpush.msra.mxu2 %v6493_v6  ;;  %3100 = vmatpush.msra.mxu3 %v6495_v14  ;;  %v6667_v6 = vpop.f32.mrf.mxu0  ;;  %v6669_v14 = vpop.f32.mrf.mxu1 }
 0x2a8   : > { %2958 = vmatpush.msra.mxu0 %v7795_v22  ;;  %2987 = vmatpush.msra.mxu1 %v7796_v23  ;;  %v6761_v22 = vld [vmem:[#allocation14 + $0x180] sm:$0xff]  ;;  %v6763_v23 = vld [vmem:[#allocation14 + $0x188] sm:$0xff] }
 0x2a9   : > { %3072 = vmatpush.msra.mxu2 %v6501_v50  ;;  %3101 = vmatpush.msra.mxu3 %v6503_v40  ;;  %v7799_v50 = vld [vmem:[#allocation55_spill] sm:$0xff]  ;;  %v7800_v40 = vld [vmem:[#allocation56_spill] sm:$0xff] }
 0x2aa   : > { %4616 = vmatmul.msk.f32.gmra.mxu2 %vm1909_vm9, %v2794_v59  ;;  %4620 = vmatmul.msk.f32.gmra.mxu3 %vm1909_vm9, %v2794_v59  ;;  %v6681_v13 = vpop.f32.mrf.mxu2  ;;  %v6683_v58 = vpop.f32.mrf.mxu3  ;;  %v3194_v59 = vld [vmem:[#allocation14 + $0x98] sm:$0xff] }
 0x2ab   : > { %2959 = vmatpush.msra.mxu0 %v7797_v36  ;;  %2988 = vmatpush.msra.mxu1 %v7798_v26  ;;  %v2155_v36 = vadd.f32 %v6657_v39, %v6643_v41  ;;  %v2184_v26 = vadd.f32 %v6659_v52, %v6645_v8  ;;  %v3190_v41 = vld [vmem:[#allocation14 + $0x78] sm:$0xff] }
 0x2ac   : > { %3073 = vmatpush.msra.mxu2 %v6513_v31  ;;  %3102 = vmatpush.msra.mxu3 %v6515_v15  ;;  %v7801_v31 = vld [vmem:[#allocation59_spill] sm:$0xff]  ;;  %v7802_v15 = vld [vmem:[#allocation60_spill] sm:$0xff] }
 0x2ad   : > { %2960 = vmatpush.msra.mxu0 %v7799_v50  ;;  %2989 = vmatpush.msra.mxu1 %v7800_v40  ;;  %v3192_v50 = vld [vmem:[#allocation14 + $0x88] sm:$0xff] }
 0x2ae   : > { %3074 = vmatpush.msra.mxu2 %v6521_v19  ;;  %3103 = vmatpush.msra.mxu3 %v6523_v33  ;;  %v7803_v19 = vld [vmem:[#allocation62_spill] sm:$0xff]  ;;  %v7804_v33 = vld [vmem:[#allocation63_spill] sm:$0xff] }
 0x2af   : > { %4608 = vmatmul.msk.f32.gmra.mxu0 %vm1909_vm9, %v2586_v9  ;;  %4612 = vmatmul.msk.f32.gmra.mxu1 %vm1909_vm9, %v2586_v9  ;;  %v6691_v48 = vpop.f32.mrf.mxu0  ;;  %v6693_v43 = vpop.f32.mrf.mxu1  ;;  %v6769_v9 = vld [vmem:[#allocation14 + $0x80] sm:$0xff] }
 0x2b0   : > { %2961 = vmatpush.msra.mxu0 %v7801_v31  ;;  %2990 = vmatpush.msra.mxu1 %v7802_v15 }
 0x2b1   : > { %3075 = vmatpush.msra.mxu2 %v6529_v35  ;;  %3104 = vmatpush.msra.mxu3 %v6531_v63  ;;  %v7805_v35 = vld [vmem:[#allocation64_spill] sm:$0xff]  ;;  %v7806_v63 = vld [vmem:[#allocation65_spill] sm:$0xff] }
 0x2b2   : > { %2962 = vmatpush.msra.mxu0 %v7803_v19  ;;  %2991 = vmatpush.msra.mxu1 %v7804_v33  ;;  %v6703_v10 = vpop.f32.mrf.mxu2  ;;  %v6705_v11 = vpop.f32.mrf.mxu3  ;;  %v6777_v19 = vld [vmem:[#allocation14 + $0x70] sm:$0xff] }
 0x2b3   : > { %3076 = vmatpush.msra.mxu2 %v6537_v46  ;;  %3105 = vmatpush.msra.mxu3 %v6539_v25  ;;  %v3016_v46 = vld [vmem:[#allocation4 + $0x2c] sm:$0xff] }
 0x2b4   : > { %4629 = vmatmul.msk.f32.vlgmr.msra.gmra.mxu2 %vm1909_vm9, %v3015_v42  ;;  %4633 = vmatmul.msk.f32.vlgmr.msra.gmra.mxu3 %vm1909_vm9, %v3015_v42 }
 0x2b5   : > { %2963 = vmatpush.msra.mxu0 %v7805_v35  ;;  %2992 = vmatpush.msra.mxu1 %v7806_v63 }
 0x2b6   : > { %3291 = vmatpush.msrb.mxu2 %v6745_v56  ;;  %3314 = vmatpush.msrb.mxu3 %v3200_v38 }
 0x2b7   : > { %2964 = vmatpush.msra.mxu0 %v7807_v49  ;;  %2993 = vmatpush.msra.mxu1 %v7808_v0  ;;  %v6709_v25 = vpop.f32.mrf.mxu0  ;;  %v6711_v34 = vpop.f32.mrf.mxu1  ;;  %v6783_v49 = vld [vmem:[#allocation14 + $0x178] sm:$0xff]  ;;  %v6785_v0 = vld [vmem:[#allocation14 + $0x60] sm:$0xff] }
 0x2b8   : > { %4621 = vmatmul.msk.f32.vlgmr.msra.gmra.mxu0 %vm1909_vm9, %v2903_v60  ;;  %4625 = vmatmul.msk.f32.vlgmr.msra.gmra.mxu1 %vm1909_vm9, %v2903_v60  ;;  %v6781_v60 = vld [vmem:[#allocation14 + $0x170] sm:$0xff] }
 0x2b9   : > { %3292 = vmatpush.msrb.mxu2 %v6747_v61  ;;  %3315 = vmatpush.msrb.mxu3 %v3198_v1  ;;  %v3184_v1 = vld [vmem:[#allocation14 + $0x48] sm:$0xff] }
 0x2ba   : > { %v6717_v18 = vpop.f32.mrf.mxu3  ;;  %3239 = vmatpush.msrb.mxu0 %v6754_v17  ;;  %3262 = vmatpush.msrb.mxu1 %v6757_v28 }
 0x2bb   : > { %v6715_v3 = vpop.f32.mrf.mxu2  ;;  %3293 = vmatpush.msrb.mxu2 %v3195_v51  ;;  %3316 = vmatpush.msrb.mxu3 %v3196_v21 }
 0x2bc   : > { %4630 = vmatmul.msk.f32.gmra.mxu2 %vm1909_vm9, %v3016_v46  ;;  %4634 = vmatmul.msk.f32.gmra.mxu3 %vm1909_vm9, %v3016_v46  ;;  %v2158_v46 = vadd.f32 %v6681_v13, %v6667_v6 }
 0x2bd   : > { %3240 = vmatpush.msrb.mxu0 %v6761_v22  ;;  %3263 = vmatpush.msrb.mxu1 %v6763_v23 }
 0x2be   : > { %3294 = vmatpush.msrb.mxu2 %v3193_v37  ;;  %3317 = vmatpush.msrb.mxu3 %v3194_v59  ;;  %v6820_v37 = vld [vmem:[#allocation14 + $0x140] sm:$0xff]  ;;  %v6822_v59 = vld [vmem:[#allocation14 + $0x148] sm:$0xff] }
 0x2bf   : > { %3241 = vmatpush.msrb.mxu0 %v6781_v60  ;;  %3264 = vmatpush.msrb.mxu1 %v6783_v49 }
 0x2c0   : > { %4622 = vmatmul.msk.f32.gmra.mxu0 %vm1909_vm9, %v2904_v55  ;;  %4626 = vmatmul.msk.f32.gmra.mxu1 %vm1909_vm9, %v2904_v55  ;;  %v2187_v55 = vadd.f32 %v6683_v58, %v6669_v14  ;;  %v3186_v14 = vld [vmem:[#allocation14 + $0x58] sm:$0xff]  ;;  %v6805_v58 = vld [vmem:[#allocation14 + $0x150] sm:$0xff] }
 0x2c1   : > { %v2259_v47 = vpop.f32.mrf.mxu0  ;;  %3295 = vmatpush.msrb.mxu2 %v6769_v9  ;;  %3318 = vmatpush.msrb.mxu3 %v3192_v50  ;;  %v6829_v50 = vld [vmem:[#allocation14 + $0x130] sm:$0xff] }
 0x2c2   : > { %v2288_v44 = vpop.f32.mrf.mxu1  ;;  %v2300_v40 = vadd.f32 %v2259_v47, %v2155_v36  ;;  %v3188_v47 = vld [vmem:[#allocation14 + $0x68] sm:$0xff] }
 0x2c3   : > { %v2301_v31 = vadd.f32 %v2288_v44, %v2184_v26  ;;  %3296 = vmatpush.msrb.mxu2 %v6777_v19  ;;  %3319 = vmatpush.msrb.mxu3 %v3190_v41  ;;  %v6794_v44 = vld [vmem:[#allocation14 + $0x160] sm:$0xff]  ;;  %v3182_v26 = vld [vmem:[#allocation14 + $0x38] sm:$0xff] }
 0x2c4   : > { %4631 = vmatmul.msk.f32.gmra.mxu2 %vm1909_vm9, %v3017_v57  ;;  %4635 = vmatmul.msk.f32.gmra.mxu3 %vm1909_vm9, %v3017_v57 }
 0x2c5   : > { %3297 = vmatpush.msrb.mxu2 %v6785_v0  ;;  %3320 = vmatpush.msrb.mxu3 %v3188_v47  ;;  %v6854_v47 = vld [vmem:[#allocation14] sm:$0xff] }
 0x2c6   : > { %v2372_v32 = vpop.f32.mrf.mxu2  ;;  %3242 = vmatpush.msrb.mxu0 %v6794_v44  ;;  %7812 = vst [vmem:[#allocation20_spill] sm:$0xff] %v6854_v47 }
 0x2c7   : > { %v2401_v62 = vpop.f32.mrf.mxu3  ;;  %v2413_v8 = vadd.f32 %v2372_v32, %v2300_v40  ;;  %v6798_v32 = vld [vmem:[#allocation14 + $0x50] sm:$0xff]  ;;  %3321 = vmatpush.msrb.mxu3 %v3186_v14  ;;  %v6831_v40 = vld [vmem:[#allocation14 + $0x138] sm:$0xff] }
 0x2c8   : > { %4623 = vmatmul.msk.f32.gmra.mxu0 %vm1909_vm9, %v2905_v29  ;;  %4627 = vmatmul.msk.f32.gmra.mxu1 %vm1909_vm9, %v2905_v29  ;;  %v2414_v39 = vadd.f32 %v2401_v62, %v2301_v31  ;;  %v6796_v29 = vld [vmem:[#allocation14 + $0x168] sm:$0xff]  ;;  %v6807_v62 = vld [vmem:[#allocation14 + $0x158] sm:$0xff]  ;;  %v6833_v31 = vld [vmem:[#allocation14 + $0x20] sm:$0xff] }
 0x2c9   : > { %3265 = vmatpush.msrb.mxu1 %v6796_v29  ;;  %3298 = vmatpush.msrb.mxu2 %v6798_v32  ;;  %7810 = vst [vmem:[#allocation30_spill] sm:$0xff] %v6833_v31 }
 0x2ca   : > { %v6727_v54 = vpop.f32.mrf.mxu1  ;;  %3243 = vmatpush.msrb.mxu0 %v6805_v58  ;;  %3322 = vmatpush.msrb.mxu3 %v3184_v1  ;;  %v6874_v1 = vld [vmem:[#allocation14 + $0x320] sm:$0xff] }
 0x2cb   : > { %v6725_v12 = vpop.f32.mrf.mxu0  ;;  %v2303_v13 = vadd.f32 %v6727_v54, %v2187_v55  ;;  %3266 = vmatpush.msrb.mxu1 %v6807_v62  ;;  %v6848_v55 = vld [vmem:[#allocation14 + $0x110] sm:$0xff]  ;;  %7814 = vst [vmem:[#allocation34_spill] sm:$0xff] %v6874_v1 }
 0x2cc   : > { %4632 = vmatmul.msk.f32.gmra.mxu2 %vm1909_vm9, %v3018_v5  ;;  %4636 = vmatmul.msk.f32.gmra.mxu3 %vm1909_vm9, %v3018_v5  ;;  %v2302_v6 = vadd.f32 %v6725_v12, %v2158_v46  ;;  %v6809_v5 = vld [vmem:[#allocation14 + $0x40] sm:$0xff]  ;;  %v3178_v46 = vld [vmem:[#allocation14 + $0x18] sm:$0xff] }
 0x2cd   : > { %3299 = vmatpush.msrb.mxu2 %v6809_v5  ;;  %3244 = vmatpush.msrb.mxu0 %v6820_v37 }
 0x2ce   : > { %3267 = vmatpush.msrb.mxu1 %v6822_v59  ;;  %3323 = vmatpush.msrb.mxu3 %v3182_v26  ;;  %v6882_v26 = vld [vmem:[#allocation14 + $0xf0] sm:$0xff] }
 0x2cf   : > { %v6733_v30 = vpop.f32.mrf.mxu2  ;;  %v6735_v24 = vpop.f32.mrf.mxu3  ;;  %3245 = vmatpush.msrb.mxu0 %v6829_v50  ;;  %7815 = vst [vmem:[#allocation37_spill] sm:$0xff] %v6882_v26 }
 0x2d0   : > { %4624 = vmatmul.msk.f32.gmra.mxu0 %vm1909_vm9, %v2906_v4  ;;  %4628 = vmatmul.msk.f32.gmra.mxu1 %vm1909_vm9, %v2906_v4  ;;  %v2415_v4 = vadd.f32 %v6733_v30, %v2302_v6  ;;  %v2416_v12 = vadd.f32 %v6735_v24, %v2303_v13  ;;  %v6824_v30 = vld [vmem:[#allocation14 + $0x30] sm:$0xff]  ;;  %v3447_v6 = vld [vmem:[#allocation14 + $0x338] sm:$0xff] }
 0x2d1   : > { %7809 = vst [vmem:[#allocation29_spill] sm:$0xff] %v6824_v30  ;;  %3300 = vmatpush.msrb.mxu2 %v6824_v30  ;;  %3268 = vmatpush.msrb.mxu1 %v6831_v40 }
 0x2d3   : > { %v6737_v27 = vpop.f32.mrf.mxu0  ;;  %v6739_v16 = vpop.f32.mrf.mxu1  ;;  %3301 = vmatpush.msrb.mxu2 %v6833_v31 }
 0x2da   : > { %v6741_v45 = vpop.f32.mrf.mxu2  ;;  %v6743_v7 = vpop.f32.mrf.mxu3 }
 0x2dd   : > { %v6749_v20 = vpop.f32.mrf.mxu0  ;;  %v6751_v2 = vpop.f32.mrf.mxu1 }
 0x2e4   : > { %v6773_v15 = vpop.f32.mrf.mxu2  ;;  %v6775_v42 = vpop.f32.mrf.mxu3 }
 0x2e7   : > { %v2485_v52 = vpop.f32.mrf.mxu0  ;;  %v2514_v33 = vpop.f32.mrf.mxu1 }
 0x2e8   : > { %v2526_v35 = vadd.f32 %v2485_v52, %v2413_v8  ;;  %v2527_v63 = vadd.f32 %v2514_v33, %v2414_v39  ;;  %v3180_v8 = vld [vmem:[#allocation14 + $0x28] sm:$0xff]  ;;  %v6837_v39 = vld [vmem:[#allocation14 + $0x120] sm:$0xff]  ;;  %v2161_v33 = vadd.f32 %v6703_v10, %v6691_v48 }
 0x2e9   : > { %v6839_v52 = vld [vmem:[#allocation14 + $0x128] sm:$0xff]  ;;  %3324 = vmatpush.msrb.mxu3 %v3180_v8  ;;  %3246 = vmatpush.msrb.mxu0 %v6837_v39  ;;  %v2557_v8 = vld [vmem:[#allocation5] sm:$0xff] }
 0x2ea   : > { %v2534_v57 = vmax.f32 %v2526_v35, %v2527_v63  ;;  %v2190_v35 = vadd.f32 %v6705_v11, %v6693_v43  ;;  %v6846_v63 = vld [vmem:[#allocation14 + $0x10] sm:$0xff]  ;;  %3269 = vmatpush.msrb.mxu1 %v6839_v52  ;;  %v3176_v48 = vld [vmem:[#allocation14 + $0x8] sm:$0xff]  ;;  %v2304_v43 = vadd.f32 %v6737_v27, %v2161_v33  ;;  %vm2559_vm9 = vcmp.gt.f32.partialorder %v2557_v8, 1.0 }
 0x2eb   : > { %7811 = vst [vmem:[#allocation19_spill] sm:$0xff] %v6846_v63  ;;  %3302 = vmatpush.msrb.mxu2 %v6846_v63  ;;  %3325 = vmatpush.msrb.mxu3 %v3178_v46  ;;  %v6859_v11 = vld [vmem:[#allocation14 + $0x330] sm:$0xff]  ;;  %v6891_v46 = vld [vmem:[#allocation14 + $0xe0] sm:$0xff] }
 0x2ec   : > { %2538 = vst [vmem:[#allocation9] sm:$0xff] %v2534_v57  ;;  %v6852_v57 = vld [vmem:[#allocation14 + $0x118] sm:$0xff]  ;;  %v2305_v10 = vadd.f32 %v6739_v16, %v2190_v35  ;;  %3247 = vmatpush.msrb.mxu0 %v6848_v55  ;;  %v2417_v27 = vadd.f32 %v6741_v45, %v2304_v43  ;;  %v6888_v33 = vld [vmem:[#allocation14 + $0x310] sm:$0xff]  ;;  %v6895_v43 = vld [vmem:[#allocation14 + $0x300] sm:$0xff] }
 0x2ed   : > { %7813 = vst [vmem:[#allocation33_spill] sm:$0xff] %v6859_v11  ;;  %3270 = vmatpush.msrb.mxu1 %v6852_v57  ;;  %3303 = vmatpush.msrb.mxu2 %v6854_v47  ;;  %v6884_v45 = vld [vmem:[#allocation14 + $0xf8] sm:$0xff] }
 0x2ee   : > { %v6813_v54 = vpop.f32.mrf.mxu2  ;;  %v6815_v38 = vpop.f32.mrf.mxu3  ;;  %v2418_v16 = vadd.f32 %v6743_v7, %v2305_v10  ;;  %3326 = vmatpush.msrb.mxu3 %v3176_v48  ;;  %7816 = vst [vmem:[#allocation38_spill] sm:$0xff] %v6884_v45  ;;  %v3443_v35 = vld [vmem:[#allocation14 + $0x318] sm:$0xff]  ;;  %v6893_v48 = vld [vmem:[#allocation14 + $0xe8] sm:$0xff]  ;;  %v2164_v10 = vadd.f32 %v6715_v3, %v6709_v25  ;;  %v6910_v3 = vld [vmem:[#allocation14 + $0x260] sm:$0xff] }
 0x2ef   : > { %v2488_v51 = vpop.f32.mrf.mxu0  ;;  %v2517_v21 = vpop.f32.mrf.mxu1  ;;  %3457 = vmatpush.msra.mxu2 %v6859_v11  ;;  %7817 = vst [vmem:[#allocation41_spill] sm:$0xff] %v6888_v33  ;;  %v6904_v11 = vld [vmem:[#allocation14 + $0xd0] sm:$0xff]  ;;  %v6906_v25 = vld [vmem:[#allocation14 + $0xd8] sm:$0xff] }
 0x2f0   : > { %v2528_v24 = vadd.f32 %v2488_v51, %v2415_v4  ;;  %v2529_v36 = vadd.f32 %v2517_v21, %v2416_v12  ;;  %v6867_v4 = vld [vmem:[#allocation14 + $0x100] sm:$0xff]  ;;  %v6869_v12 = vld [vmem:[#allocation14 + $0x108] sm:$0xff]  ;;  %3480 = vmatpush.msra.mxu3 %v3447_v6  ;;  %7818 = vst [vmem:[#allocation42_spill] sm:$0xff] %v6891_v46 }
 0x2f1   : > { %v3445_v51 = vld [vmem:[#allocation14 + $0x328] sm:$0xff]  ;;  %3248 = vmatpush.msrb.mxu0 %v6867_v4  ;;  %3271 = vmatpush.msrb.mxu1 %v6869_v12  ;;  %7819 = vst [vmem:[#allocation45_spill] sm:$0xff] %v6893_v48 }
 0x2f2   : > { %v2535_v41 = vmax.f32 %v2528_v24, %v2529_v36  ;;  %v6879_v36 = vld [vmem:[%s7582_s4] ss:$0 sm:$0xff]  ;;  %3458 = vmatpush.msra.mxu2 %v6874_v1  ;;  %3481 = vmatpush.msra.mxu3 %v3445_v51  ;;  %7820 = vst [vmem:[#allocation46_spill] sm:$0xff] %v6895_v43  ;;  %v2193_v51 = vadd.f32 %v6717_v18, %v6711_v34  ;;  %v2565_v1 = vmul.f32 0.5, %v2557_v8  ;;  %v3437_v8 = vld [vmem:[#allocation14 + $0x2e8] sm:$0xff] }
 0x2f3   : > { %3249 = vmatpush.msrb.mxu0 %v6882_v26  ;;  %3272 = vmatpush.msrb.mxu1 %v6884_v45  ;;  %7821 = vst [vmem:[#allocation49_spill] sm:$0xff] %v6904_v11  ;;  %v2306_v34 = vadd.f32 %v6749_v20, %v2164_v10  ;;  %v6928_v20 = vld [vmem:[#allocation14 + $0x250] sm:$0xff] }
 0x2f4   : > { %2539 = vst [vmem:[#allocation9 + $0x8] sm:$0xff] %v2535_v41  ;;  %3459 = vmatpush.msra.mxu2 %v6888_v33  ;;  %3482 = vmatpush.msra.mxu3 %v3443_v35  ;;  %v2307_v18 = vadd.f32 %v6751_v2, %v2193_v51  ;;  %v6918_v35 = vld [vmem:[#allocation14 + $0x2f0] sm:$0xff]  ;;  %v4593_v33 = vsel %vm2559_vm9, 1.0, %v7755_v53  ;;  %v6930_v2 = vld [vmem:[#allocation14 + $0x258] sm:$0xff] }
 0x2f5   : > { %7822 = vst [vmem:[#allocation50_spill] sm:$0xff] %v6906_v25  ;;  %3250 = vmatpush.msrb.mxu0 %v6891_v46  ;;  %3273 = vmatpush.msrb.mxu1 %v6893_v48  ;;  %v2419_v10 = vadd.f32 %v6773_v15, %v2306_v34  ;;  %v6945_v34 = vld [vmem:[#allocation14 + $0x2d0] sm:$0xff] }
 0x2f6   : > { %v6861_v13 = vpop.f32.mrf.mxu2  ;;  %v6863_v14 = vpop.f32.mrf.mxu3  ;;  %7823 = vst [vmem:[#allocation53_spill] sm:$0xff] %v6910_v3  ;;  %3460 = vmatpush.msra.mxu2 %v6895_v43 }
 0x2f7   : > { %7825 = vst [vmem:[#allocation57_spill] sm:$0xff] %v6918_v35  ;;  %3251 = vmatpush.msrb.mxu0 %v6904_v11  ;;  %3274 = vmatpush.msrb.mxu1 %v6906_v25  ;;  %v6939_v25 = vld [vmem:[#allocation14 + $0x240] sm:$0xff]  ;;  %v6941_v11 = vld [vmem:[#allocation14 + $0x248] sm:$0xff] }
 0x2f8   : > { %v2491_v21 = vpop.f32.mrf.mxu0  ;;  %v2520_v24 = vpop.f32.mrf.mxu1  ;;  %7826 = vst [vmem:[#allocation58_spill] sm:$0xff] %v6928_v20  ;;  %3461 = vmatpush.msra.mxu2 %v6918_v35 }
 0x2f9   : > { %v2530_v7 = vadd.f32 %v2491_v21, %v2417_v27  ;;  %v2531_v41 = vadd.f32 %v2520_v24, %v2418_v16  ;;  %v3441_v21 = vld [vmem:[#allocation14 + $0x308] sm:$0xff]  ;;  %7827 = vst [vmem:[#allocation61_spill] sm:$0xff] %v6930_v2  ;;  %3372 = vmatpush.msra.mxu0 %v6910_v3 }
 0x2fa   : > { %3483 = vmatpush.msra.mxu3 %v3441_v21  ;;  %v2420_v21 = vadd.f32 %v6775_v42, %v2307_v18  ;;  %7829 = vst [vmem:[#allocation22_spill] sm:$0xff] %v6939_v25  ;;  %v3435_v18 = vld [vmem:[#allocation14 + $0x2d8] sm:$0xff] }
 0x2fb   : > { %v2542_v6 = vld [vmem:[#allocation9] ss:$2 sm:$0xff]  ;;  %v2546_v27 = vld [vmem:[#allocation9 + $0x1] ss:$2 sm:$0xff]  ;;  %v2536_v16 = vmax.f32 %v2530_v7, %v2531_v41  ;;  %v6912_v7 = vld [vmem:[#allocation14 + $0x268] sm:$0xff]  ;;  %7830 = vst [vmem:[#allocation23_spill] sm:$0xff] %v6941_v11  ;;  %3373 = vmatpush.msra.mxu0 %v6928_v20 }
 0x2fc   : > { %v2549_v24 = vmax.f32 %v2542_v6, %v2546_v27  ;;  %7824 = vst [vmem:[#allocation54_spill] sm:$0xff] %v6912_v7  ;;  %v3439_v6 = vld [vmem:[#allocation14 + $0x2f8] sm:$0xff]  ;;  %3395 = vmatpush.msra.mxu1 %v6912_v7 }
 0x2fd   : > { %2540 = vst [vmem:[#allocation9 + $0x10] sm:$0xff] %v2536_v16  ;;  %3484 = vmatpush.msra.mxu3 %v3439_v6  ;;  %v6950_v6 = vld [vmem:[#allocation14 + $0x238] sm:$0xff]  ;;  %3374 = vmatpush.msra.mxu0 %v6939_v25 }
 0x2fe   : > { %v2555_v41 = vadd.f32 %v6879_v36, %v2549_v24  ;;  %v6936_v24 = vld [vmem:[#allocation14 + $0x2e0] sm:$0xff]  ;;  %3396 = vmatpush.msra.mxu1 %v6930_v2  ;;  %7831 = vst [vmem:[#allocation24_spill] sm:$0xff] %v6945_v34 }
 0x2ff   : > { %v6920_v27 = vpop.f32.mrf.mxu2  ;;  %v6922_v16 = vpop.f32.mrf.mxu3  ;;  %7828 = vst [vmem:[#allocation21_spill] sm:$0xff] %v6936_v24  ;;  %3462 = vmatpush.msra.mxu2 %v6936_v24  ;;  %3485 = vmatpush.msra.mxu3 %v3437_v8  ;;  %v3431_v8 = vld [vmem:[#allocation14 + $0x2b8] sm:$0xff] }
 0x300   : > { %v2567_v51 = vadd.f32 %v2565_v1, %v2555_v41  ;;  %v6948_v41 = vld [vmem:[#allocation14 + $0x230] sm:$0xff]  ;;  %7833 = vst [vmem:[#allocation26_spill] sm:$0xff] %v6950_v6  ;;  %3397 = vmatpush.msra.mxu1 %v6941_v11  ;;  %v6990_v24 = vld [vmem:[#allocation14 + $0x298] sm:$0xff] }
 0x301   : > { %v2494_v43 = vpop.f32.mrf.mxu0  ;;  %v2523_v47 = vpop.f32.mrf.mxu1  ;;  %7832 = vst [vmem:[#allocation25_spill] sm:$0xff] %v6948_v41  ;;  %3463 = vmatpush.msra.mxu2 %v6945_v34  ;;  %3486 = vmatpush.msra.mxu3 %v3435_v18  ;;  %v3429_v34 = vld [vmem:[#allocation14 + $0x2a8] sm:$0xff] }
 0x302   : > { %v2532_v15 = vadd.f32 %v2494_v43, %v2419_v10  ;;  %v2533_v42 = vadd.f32 %v2523_v47, %v2420_v21  ;;  %v2569_v1 = vsub.f32 %v2567_v51, %v4593_v33  ;;  %v6955_v47 = vld [vmem:[#allocation14 + $0x2c0] sm:$0xff]  ;;  %v3433_v33 = vld [vmem:[#allocation14 + $0x2c8] sm:$0xff]  ;;  %3375 = vmatpush.msra.mxu0 %v6948_v41  ;;  %3398 = vmatpush.msra.mxu1 %v6950_v6  ;;  %v6965_v51 = vld [vmem:[#allocation14 + $0x2b0] sm:$0xff] }
 0x303   : > { %7834 = vst [vmem:[#allocation27_spill] sm:$0xff] %v6955_v47  ;;  %v6959_v10 = vld [vmem:[#allocation14 + $0x220] sm:$0xff]  ;;  %v6961_v21 = vld [vmem:[#allocation14 + $0x228] sm:$0xff]  ;;  %3464 = vmatpush.msra.mxu2 %v6955_v47  ;;  %3487 = vmatpush.msra.mxu3 %v3433_v33  ;;  %v6988_v47 = vld [vmem:[#allocation14 + $0x290] sm:$0xff] }
 0x304   : > { %v2537_v35 = vmax.f32 %v2532_v15, %v2533_v42  ;;  %2572 = vst.msk [vmem:[#allocation5] sm:$0xff] %vm2571_vm10, %v2569_v1  ;;  %vm2575_vm11 = vcmp.gt.f32.partialorder %v2569_v1, 1.0  ;;  %v6969_v15 = vld [vmem:[#allocation14 + $0x210] sm:$0xff]  ;;  %v6971_v42 = vld [vmem:[#allocation14 + $0x218] sm:$0xff]  ;;  %3376 = vmatpush.msra.mxu0 %v6959_v10  ;;  %3399 = vmatpush.msra.mxu1 %v6961_v21  ;;  %v6984_v33 = vld [vmem:[#allocation14 + $0x208] sm:$0xff] }
 0x305   : > { %v4595_v43 = vsel %vm2575_vm11, 1.0, %v7755_v53  ;;  %7835 = vst [vmem:[#allocation28_spill] sm:$0xff] %v6959_v10  ;;  %3465 = vmatpush.msra.mxu2 %v6965_v51  ;;  %3488 = vmatpush.msra.mxu3 %v3431_v8  ;;  %v2558_v10 = vld [vmem:[#allocation5 + $0x8] sm:$0x1f]  ;;  %v6995_v8 = vld [vmem:[#allocation14 + $0x1f0] sm:$0xff] }
 0x306   : > { %7836 = vst [vmem:[#allocation31_spill] sm:$0xff] %v6961_v21  ;;  %3377 = vmatpush.msra.mxu0 %v6969_v15  ;;  %3400 = vmatpush.msra.mxu1 %v6971_v42  ;;  %v6999_v21 = vld [vmem:[#allocation14 + $0x280] sm:$0xff]  ;;  %v2566_v41 = vmul.f32 0.5, %v2558_v10  ;;  %vm2560_vm12 = vcmp.gt.f32.partialorder %v2558_v10, 1.0 }
 0x307   : > { %2541 = vst [vmem:[#allocation9 + $0x18] sm:$0x3] %v2537_v35  ;;  %v6979_v35 = vld [vmem:[#allocation14 + $0x2a0] sm:$0xff]  ;;  %3489 = vmatpush.msra.mxu3 %v3429_v34  ;;  %v7005_v34 = vld [vmem:[#allocation14 + $0x288] sm:$0xff] }
 0x308   : > { %7837 = vst [vmem:[#allocation32_spill] sm:$0xff] %v6965_v51  ;;  %v6973_v1 = vpop.f32.mrf.mxu2  ;;  %v6975_v18 = vpop.f32.mrf.mxu3  ;;  %3466 = vmatpush.msra.mxu2 %v6979_v35  ;;  %3401 = vmatpush.msra.mxu1 %v6984_v33  ;;  %v6997_v51 = vld [vmem:[#allocation14 + $0x1f8] sm:$0xff] }
 0x309   : > { %2581 = vst.msk [vmem:[#allocation6] sm:$0xff] %vm2571_vm10, %v4595_v43  ;;  %v6982_v43 = vld [vmem:[#allocation14 + $0x200] sm:$0xff]  ;;  %3490 = vmatpush.msra.mxu3 %v6990_v24 }
 0x30a   : > { %7838 = vst [vmem:[#allocation35_spill] sm:$0xff] %v6969_v15  ;;  %3378 = vmatpush.msra.mxu0 %v6982_v43  ;;  %3467 = vmatpush.msra.mxu2 %v6988_v47 }
 0x30b   : > { %7839 = vst [vmem:[#allocation36_spill] sm:$0xff] %v6971_v42  ;;  %3402 = vmatpush.msra.mxu1 %v6997_v51  ;;  %3491 = vmatpush.msra.mxu3 %v7005_v34 }
 0x30c   : > { %7840 = vst [vmem:[#allocation39_spill] sm:$0xff] %v6979_v35  ;;  %3379 = vmatpush.msra.mxu0 %v6995_v8  ;;  %3468 = vmatpush.msra.mxu2 %v6999_v21 }
 0x30d   : > { %7841 = vst [vmem:[#allocation40_spill] sm:$0xff] %v6982_v43 }
 0x30e   : > { %7842 = vst [vmem:[#allocation43_spill] sm:$0xff] %v6984_v33  ;;  %v2544_v15 = vld [vmem:[#allocation9 + $0x10] ss:$2 sm:$0x1f] }
 0x30f   : > { %7843 = vst [vmem:[#allocation44_spill] sm:$0xff] %v6988_v47  ;;  %v2548_v42 = vld [vmem:[#allocation9 + $0x11] ss:$2 sm:$0x1f]  ;;  %v7009_v43 = vpop.f32.mrf.mxu0  ;;  %v7011_v11 = vpop.f32.mrf.mxu1 }
 0x310   : > { %7844 = vst [vmem:[#allocation47_spill] sm:$0xff] %v6990_v24  ;;  %v2550_v6 = vmax.f32 %v2544_v15, %v2548_v42  ;;  %v3173_v35 = vld [vmem:[#allocation6] sm:$0xff]  ;;  %v7015_v15 = vld [vmem:[#allocation14 + $0x1e8] sm:$0xff]  ;;  %v7017_v42 = vld [vmem:[#allocation14 + $0x270] sm:$0xff]  ;;  %v2780_v7 = vadd.f32 %v7011_v11, %v6815_v38 }
 0x311   : > { %7845 = vst [vmem:[#allocation48_spill] sm:$0xff] %v6995_v8  ;;  %v7007_v33 = vld [vmem:[#allocation14 + $0x1e0] sm:$0xff]  ;;  %4645 = vmatmul.msk.f32.vlgmr.msrb.gmra.mxu2 %vm2571_vm10, %v3173_v35  ;;  %4647 = vmatmul.msk.f32.vlgmr.msrb.gmra.mxu3 %vm2571_vm10, %v3173_v35  ;;  %v7019_v24 = vld [vmem:[#allocation14 + $0x278] sm:$0xff]  ;;  %v2854_v25 = vpop.f32.mrf.mxu2  ;;  %v2883_v2 = vpop.f32.mrf.mxu3  ;;  %v4594_v35 = vsel %vm2560_vm12, 1.0, %v7755_v53 }
 0x312   : > { %7846 = vst [vmem:[#allocation51_spill] sm:$0xff] %v6997_v51  ;;  %v2556_v47 = vadd.f32 %v6879_v36, %v2550_v6  ;;  %v7024_v51 = vld [vmem:[#allocation14 + $0x1d0] sm:$0xff]  ;;  %v7026_v8 = vld [vmem:[#allocation14 + $0x1d8] sm:$0xff]  ;;  %3380 = vmatpush.msra.mxu0 %v7007_v33  ;;  %3403 = vmatpush.msra.mxu1 %v7015_v15  ;;  %v7034_v36 = vld [vmem:[#allocation14 + $0x1c0] sm:$0xff]  ;;  %v2896_v63 = vadd.f32 %v2883_v2, %v2780_v7 }
 0x313   : > { %7847 = vst [vmem:[#allocation52_spill] sm:$0xff] %v6999_v21  ;;  %3469 = vmatpush.msra.mxu2 %v7017_v42  ;;  %3492 = vmatpush.msra.mxu3 %v7019_v24  ;;  %v7036_v6 = vld [vmem:[#allocation14 + $0x1c8] sm:$0xff]  ;;  %v7042_v21 = vld [vmem:[#allocation14 + $0x1b8] sm:$0xff] }
 0x314   : > { %7848 = vst [vmem:[#allocation55_spill] sm:$0xff] %v7005_v34  ;;  %v2568_v20 = vadd.f32 %v2566_v41, %v2556_v47  ;;  %3381 = vmatpush.msra.mxu0 %v7024_v51  ;;  %3404 = vmatpush.msra.mxu1 %v7026_v8  ;;  %v7040_v34 = vld [vmem:[#allocation14 + $0x1b0] sm:$0xff]  ;;  %v7047_v41 = vld [vmem:[#allocation14 + $0x1a0] sm:$0xff]  ;;  %v7049_v47 = vld [vmem:[#allocation14 + $0x1a8] sm:$0xff] }
 0x315   : > { %7849 = vst [vmem:[#allocation56_spill] sm:$0xff] %v7007_v33 }
 0x316   : > { %7850 = vst [vmem:[#allocation59_spill] sm:$0xff] %v7015_v15  ;;  %v2570_v10 = vsub.f32 %v2568_v20, %v4594_v35  ;;  %3382 = vmatpush.msra.mxu0 %v7034_v36  ;;  %3405 = vmatpush.msra.mxu1 %v7036_v6 }
 0x317   : > { %7851 = vst [vmem:[#allocation60_spill] sm:$0xff] %v7017_v42 }
 0x318   : > { %7852 = vst [vmem:[#allocation62_spill] sm:$0xff] %v7019_v24  ;;  %vm2576_vm14 = vcmp.gt.f32.partialorder %v2570_v10, 1.0  ;;  %3383 = vmatpush.msra.mxu0 %v7040_v34  ;;  %3406 = vmatpush.msra.mxu1 %v7042_v21  ;;  %v2753_v20 = vpop.f32.mrf.mxu0  ;;  %v2782_v35 = vpop.f32.mrf.mxu1 }
 0x319   : > { %7853 = vst [vmem:[#allocation63_spill] sm:$0xff] %v7024_v51  ;;  %v4596_v24 = vsel %vm2576_vm14, 1.0, %v7755_v53  ;;  %v2857_v42 = vpop.f32.mrf.mxu2  ;;  %v2754_v31 = vadd.f32 %v2753_v20, %v6861_v13 }
 0x31a   : > { %7854 = vst [vmem:[#allocation64_spill] sm:$0xff] %v7026_v8  ;;  %3384 = vmatpush.msra.mxu0 %v7047_v41  ;;  %3407 = vmatpush.msra.mxu1 %v7049_v47 }
 0x31b   : > { %7855 = vst [vmem:[#allocation65_spill] sm:$0xff] %v7034_v36  ;;  %v2886_v36 = vpop.f32.mrf.mxu3 }
 0x31c   : > { %7856 = vst [vmem:[#allocation66_spill] sm:$0xff] %v7036_v6 }
 0x31d   : > { %7857 = vst [vmem:[#allocation67_spill] sm:$0xff] %v7040_v34 }
 0x31e   : > { %7858 = vst [vmem:[#allocation68_spill] sm:$0xff] %v7042_v21 }
 0x31f   : > { %2574 = vst.msk [vmem:[#allocation5 + $0x8] sm:$0x1f] %vm2573_vm13, %v2570_v10 }
 0x320   : > { %7859 = vst [vmem:[#allocation69_spill] sm:$0xff] %v7047_v41 }
 0x321   : > { %7860 = vst [vmem:[#allocation70_spill] sm:$0xff] %v7049_v47 }
 0x322   : > { %2582 = vst.msk [vmem:[#allocation6 + $0x8] sm:$0x1f] %vm2573_vm13, %v4596_v24  ;;  %v2756_v21 = vpop.f32.mrf.mxu0  ;;  %v2785_v34 = vpop.f32.mrf.mxu1 }
 0x323   : > { %v2860_v8 = vpop.f32.mrf.mxu2  ;;  %v2889_v24 = vpop.f32.mrf.mxu3  ;;  %v2757_v13 = vadd.f32 %v2756_v21, %v6920_v27 }
 0x329   : > { %v3201_v10 = vld [vmem:[#allocation6 + $0x1] sm:$0xff]  ;;  %v3202_v51 = vld [vmem:[#allocation6 + $0x9] sm:$0x3] }
 0x32a   : > { %v3174_v6 = vld [vmem:[#allocation6 + $0x8] sm:$0x3]  ;;  %4641 = vmatmul.msk.f32.vlgmr.msrb.gmra.mxu0 %vm2571_vm10, %v3201_v10  ;;  %4643 = vmatmul.msk.f32.vlgmr.msrb.gmra.mxu1 %vm2571_vm10, %v3201_v10  ;;  %v3335_v26 = vld [vmem:[#allocation6 + $0xa] sm:$0x3] }
 0x32b   : > { %4646 = vmatmul.msk.f32.gmra.mxu2 %vm2571_vm10, %v3174_v6  ;;  %4648 = vmatmul.msk.f32.gmra.mxu3 %vm2571_vm10, %v3174_v6  ;;  %v3419_v47 = vld [vmem:[#allocation6 + $0x3] sm:$0xff]  ;;  %v2751_v6 = vadd.f32 %v7009_v43, %v6813_v54  ;;  %v2783_v54 = vadd.f32 %v2782_v35, %v6863_v14  ;;  %v2786_v14 = vadd.f32 %v2785_v34, %v6922_v16 }
 0x32c   : > { %v2759_v41 = vpop.f32.mrf.mxu0  ;;  %v2788_v10 = vpop.f32.mrf.mxu1  ;;  %v3334_v3 = vld [vmem:[#allocation6 + $0x2] sm:$0xff] }
 0x32d   : > { %v2863_v15 = vpop.f32.mrf.mxu2  ;;  %v2892_v33 = vpop.f32.mrf.mxu3 }
 0x332   : > { %4642 = vmatmul.msk.f32.gmra.mxu0 %vm2571_vm10, %v3202_v51  ;;  %4644 = vmatmul.msk.f32.gmra.mxu1 %vm2571_vm10, %v3202_v51  ;;  %v3420_v51 = vld [vmem:[#allocation6 + $0xb] sm:$0x3] }
 0x333   : > { %4653 = vmatmul.msk.f32.vlgmr.msra.gmra.mxu2 %vm2571_vm10, %v3419_v47  ;;  %4655 = vmatmul.msk.f32.vlgmr.msra.gmra.mxu3 %vm2571_vm10, %v3419_v47  ;;  %v2895_v47 = vadd.f32 %v2854_v25, %v2751_v6  ;;  %v2898_v25 = vadd.f32 %v2886_v36, %v2783_v54 }
 0x335   : > { %v2966_v48 = vpop.f32.mrf.mxu0  ;;  %v2995_v46 = vpop.f32.mrf.mxu1 }
 0x336   : > { %v3007_v43 = vadd.f32 %v2966_v48, %v2895_v47  ;;  %v3008_v38 = vadd.f32 %v2995_v46, %v2896_v63  ;;  %v2899_v47 = vadd.f32 %v2860_v8, %v2757_v13  ;;  %v4819_v8 = vld [vmem:[%s7582_s4] ss:$0 sm:$0xff] }
 0x337   : > { %v3078_v11 = vpop.f32.mrf.mxu2  ;;  %v3107_v45 = vpop.f32.mrf.mxu3 }
 0x338   : > { %v3119_v30 = vadd.f32 %v3078_v11, %v3007_v43  ;;  %v2900_v43 = vadd.f32 %v2889_v24, %v2786_v14  ;;  %v3148_v11 = vld [vmem:[#allocation5 + $0x10] sm:$0xff] }
 0x339   : > { %vm3150_vm15 = vcmp.gt.f32.partialorder %v3148_v11, 1.0 }
 0x33a   : > { %4649 = vmatmul.msk.f32.vlgmr.msra.gmra.mxu0 %vm2571_vm10, %v3334_v3  ;;  %4651 = vmatmul.msk.f32.vlgmr.msra.gmra.mxu1 %vm2571_vm10, %v3334_v3  ;;  %v3120_v3 = vadd.f32 %v3107_v45, %v3008_v38 }
 0x33b   : > { %4654 = vmatmul.msk.f32.gmra.mxu2 %vm2571_vm10, %v3420_v51  ;;  %4656 = vmatmul.msk.f32.gmra.mxu3 %vm2571_vm10, %v3420_v51  ;;  %v2897_v51 = vadd.f32 %v2857_v42, %v2754_v31  ;;  %v2789_v42 = vadd.f32 %v2788_v10, %v6975_v18  ;;  %v3156_v18 = vmul.f32 0.5, %v3148_v11  ;;  %v7113_v11 = vld [vmem:[%s7585_s7 + $0x90] sm:$0xff] }
 0x33c   : > { %v3127_v7 = vmax.f32 %v3119_v30, %v3120_v3  ;;  %v2760_v30 = vadd.f32 %v2759_v41, %v6973_v1 }
 0x33d   : > { %v2969_v2 = vpop.f32.mrf.mxu0  ;;  %v2998_v6 = vpop.f32.mrf.mxu1 }
 0x33e   : > { %3131 = vst [vmem:[#allocation9] sm:$0xff] %v3127_v7  ;;  %v3009_v63 = vadd.f32 %v2969_v2, %v2897_v51  ;;  %v3010_v46 = vadd.f32 %v2998_v6, %v2898_v25  ;;  %v2901_v3 = vadd.f32 %v2863_v15, %v2760_v30  ;;  %v2902_v51 = vadd.f32 %v2892_v33, %v2789_v42 }
 0x33f   : > { %v3081_v48 = vpop.f32.mrf.mxu2  ;;  %v3110_v20 = vpop.f32.mrf.mxu3  ;;  %v4637_v33 = vsel %vm3150_vm15, 1.0, %v7755_v53 }
 0x340   : > { %v3121_v35 = vadd.f32 %v3081_v48, %v3009_v63  ;;  %v3122_v45 = vadd.f32 %v3110_v20, %v3010_v46 }
 0x342   : > { %4650 = vmatmul.msk.f32.gmra.mxu0 %vm2571_vm10, %v3335_v26  ;;  %4652 = vmatmul.msk.f32.gmra.mxu1 %vm2571_vm10, %v3335_v26  ;;  %v3128_v38 = vmax.f32 %v3121_v35, %v3122_v45 }
 0x344   : > { %3132 = vst [vmem:[#allocation9 + $0x8] sm:$0xff] %v3128_v38 }
 0x345   : > { %v2972_v31 = vpop.f32.mrf.mxu0  ;;  %v3001_v26 = vpop.f32.mrf.mxu1 }
 0x346   : > { %v3011_v36 = vadd.f32 %v2972_v31, %v2899_v47  ;;  %v3012_v27 = vadd.f32 %v3001_v26, %v2900_v43  ;;  %v3149_v47 = vld [vmem:[#allocation5 + $0x18] sm:$0x1f] }
 0x347   : > { %v3084_v21 = vpop.f32.mrf.mxu2  ;;  %v3113_v16 = vpop.f32.mrf.mxu3  ;;  %v3157_v26 = vmul.f32 0.5, %v3149_v47  ;;  %vm3151_vm1 = vcmp.gt.f32.partialorder %v3149_v47, 1.0  ;;  %v7247_v47 = vld [vmem:[%s7585_s7 + $0x20] sm:$0xff] }
 0x348   : > { %v3123_v34 = vadd.f32 %v3084_v21, %v3011_v36  ;;  %v3124_v54 = vadd.f32 %v3113_v16, %v3012_v27  ;;  %v4638_v42 = vsel %vm3151_vm1, 1.0, %v7755_v53  ;;  %v7095_v16 = vld [vmem:[%s7585_s7 + $0x98] sm:$0xff] }
 0x349   : > { %3584 = vmatpush.msrb.mxu1 %v7095_v16 }
 0x34a   : > { %v3129_v25 = vmax.f32 %v3123_v34, %v3124_v54  ;;  %v7100_v34 = vld [vmem:[%s7585_s7 + $0xe8] sm:$0xff]  ;;  %v7105_v54 = vld [vmem:[%s7585_s7 + $0x138] sm:$0xff] }
 0x34b   : > { %v3135_v24 = vld [vmem:[#allocation9] ss:$2 sm:$0xff]  ;;  %v3137_v7 = vld [vmem:[#allocation9 + $0x1] ss:$2 sm:$0xff]  ;;  %7861 = vst [vmem:[#allocation71_spill] sm:$0xff] %v7105_v54  ;;  %3619 = vmatpush.msrb.mxu2 %v7100_v34  ;;  %3654 = vmatpush.msrb.mxu3 %v7105_v54  ;;  %v7337_v54 = vld [vmem:[%s7585_s7 + $0x188] sm:$0xff] }
 0x34c   : > { %3133 = vst [vmem:[#allocation9 + $0x10] sm:$0xff] %v3129_v25  ;;  %v3139_v1 = vmax.f32 %v3135_v24, %v3137_v7  ;;  %3585 = vmatpush.msrb.mxu1 %v7113_v11  ;;  %v7130_v25 = vld [vmem:[%s7585_s7 + $0x48] sm:$0xff]  ;;  %v7140_v24 = vld [vmem:[%s7585_s7 + $0xd8] sm:$0xff] }
 0x34d   : > { %v2975_v41 = vpop.f32.mrf.mxu0  ;;  %v3004_v10 = vpop.f32.mrf.mxu1  ;;  %3549 = vmatpush.msrb.mxu0 %v7130_v25  ;;  %v7147_v7 = vld [vmem:[%s7585_s7 + $0x128] sm:$0xff] }
 0x34e   : > { %v3013_v2 = vadd.f32 %v2975_v41, %v2901_v3  ;;  %v3014_v6 = vadd.f32 %v3004_v10, %v2902_v51  ;;  %v3145_v13 = vadd.f32 %v4819_v8, %v3139_v1  ;;  %v7118_v3 = vld [vmem:[%s7585_s7 + $0xe0] sm:$0xff]  ;;  %v7123_v51 = vld [vmem:[%s7585_s7 + $0x130] sm:$0xff]  ;;  %7863 = vst [vmem:[#allocation73_spill] sm:$0xff] %v7147_v7 }
 0x34f   : > { %v3087_v14 = vpop.f32.mrf.mxu2  ;;  %v3116_v63 = vpop.f32.mrf.mxu3  ;;  %7862 = vst [vmem:[#allocation72_spill] sm:$0xff] %v7123_v51  ;;  %3620 = vmatpush.msrb.mxu2 %v7118_v3  ;;  %3655 = vmatpush.msrb.mxu3 %v7123_v51  ;;  %v7152_v1 = vld [vmem:[%s7585_s7 + $0x40] sm:$0xff]  ;;  %v7164_v41 = vld [vmem:[%s7585_s7 + $0xd0] sm:$0xff] }
 0x350   : > { %v3125_v15 = vadd.f32 %v3087_v14, %v3013_v2  ;;  %v3126_v46 = vadd.f32 %v3116_v63, %v3014_v6  ;;  %v3158_v48 = vadd.f32 %v3156_v18, %v3145_v13  ;;  %v7157_v18 = vld [vmem:[%s7585_s7 + $0x80] sm:$0xff]  ;;  %3550 = vmatpush.msrb.mxu0 %v7152_v1  ;;  %v7179_v2 = vld [vmem:[%s7585_s7 + $0x38] sm:$0xff]  ;;  %v7189_v13 = vld [vmem:[%s7585_s7 + $0xc8] sm:$0xff] }
 0x351   : > { %3621 = vmatpush.msrb.mxu2 %v7140_v24  ;;  %v7169_v10 = vld [vmem:[%s7585_s7 + $0x120] sm:$0xff]  ;;  %3656 = vmatpush.msrb.mxu3 %v7147_v7  ;;  %v7184_v6 = vld [vmem:[%s7585_s7 + $0x78] sm:$0xff]  ;;  %v7203_v63 = vld [vmem:[%s7585_s7 + $0x30] sm:$0xff] }
 0x352   : > { %v3130_v20 = vmax.f32 %v3125_v15, %v3126_v46  ;;  %v3160_v35 = vsub.f32 %v3158_v48, %v4637_v33  ;;  %7864 = vst [vmem:[#allocation74_spill] sm:$0xff] %v7169_v10  ;;  %3551 = vmatpush.msrb.mxu0 %v7179_v2  ;;  %v7196_v14 = vld [vmem:[%s7585_s7 + $0x118] sm:$0xff]  ;;  %v7208_v33 = vld [vmem:[%s7585_s7 + $0x70] sm:$0xff]  ;;  %v7213_v15 = vld [vmem:[%s7585_s7 + $0xc0] sm:$0xff] }
 0x353   : > { %3622 = vmatpush.msrb.mxu2 %v7164_v41  ;;  %3657 = vmatpush.msrb.mxu3 %v7169_v10  ;;  %7865 = vst [vmem:[#allocation75_spill] sm:$0xff] %v7196_v14  ;;  %v7220_v46 = vld [vmem:[%s7585_s7 + $0x110] sm:$0xff]  ;;  %v7225_v48 = vld [vmem:[%s7585_s7 + $0x28] sm:$0xff]  ;;  %v7330_v51 = vld [vmem:[%s7585_s7] sm:$0xff] }
 0x354   : > { %3134 = vst [vmem:[#allocation9 + $0x18] sm:$0x3] %v3130_v20  ;;  %vm3164_vm0 = vcmp.gt.f32.partialorder %v3160_v35, 1.0  ;;  %3552 = vmatpush.msrb.mxu0 %v7203_v63  ;;  %v7230_v20 = vld [vmem:[%s7585_s7 + $0x68] sm:$0xff] }
 0x355   : > { %3162 = vst.msk [vmem:[#allocation5 + $0x10] sm:$0xff] %vm2571_vm10, %v3160_v35  ;;  %v4639_v45 = vsel %vm3164_vm0, 1.0, %v7755_v53  ;;  %3623 = vmatpush.msrb.mxu2 %v7189_v13  ;;  %3658 = vmatpush.msrb.mxu3 %v7196_v14  ;;  %v7237_v35 = vld [vmem:[%s7585_s7 + $0xb8] sm:$0xff]  ;;  %v7321_v7 = vld [vmem:[%s7585_s7 + $0x8] sm:$0xff] }
 0x356   : > { %3171 = vst.msk [vmem:[#allocation6 + $0x10] sm:$0xff] %vm2571_vm10, %v4639_v45  ;;  %v7242_v45 = vld [vmem:[%s7585_s7 + $0x108] sm:$0xff]  ;;  %3553 = vmatpush.msrb.mxu0 %v7225_v48 }
 0x357   : > { %7866 = vst [vmem:[#allocation76_spill] sm:$0xff] %v7220_v46  ;;  %3624 = vmatpush.msrb.mxu2 %v7213_v15  ;;  %3659 = vmatpush.msrb.mxu3 %v7220_v46  ;;  %v7304_v46 = vld [vmem:[%s7585_s7 + $0x50] sm:$0xff] }
 0x358   : > { %7867 = vst [vmem:[#allocation77_spill] sm:$0xff] %v7242_v45  ;;  %3554 = vmatpush.msrb.mxu0 %v7247_v47 }
 0x359   : > { %3625 = vmatpush.msrb.mxu2 %v7237_v35  ;;  %3660 = vmatpush.msrb.mxu3 %v7242_v45  ;;  %v7299_v45 = vld [vmem:[%s7585_s7 + $0x10] sm:$0xff] }
 0x35b   : > { %v3136_v43 = vld [vmem:[#allocation9 + $0x10] ss:$2 sm:$0x1f]  ;;  %v3138_v38 = vld [vmem:[#allocation9 + $0x11] ss:$2 sm:$0x1f] }
 0x35c   : > { %v3140_v31 = vmax.f32 %v3136_v43, %v3138_v38  ;;  %v7254_v43 = vld [vmem:[%s7585_s7 + $0x60] sm:$0xff]  ;;  %v7259_v38 = vld [vmem:[%s7585_s7 + $0xb0] sm:$0xff] }
 0x35d   : > { %3626 = vmatpush.msrb.mxu2 %v7259_v38 }
 0x35e   : > { %v3146_v30 = vadd.f32 %v4819_v8, %v3140_v31  ;;  %v7135_v8 = vld [vmem:[%s7585_s7 + $0x88] sm:$0xff]  ;;  %v7264_v31 = vld [vmem:[%s7585_s7 + $0x100] sm:$0xff] }
 0x35f   : > { %3586 = vmatpush.msrb.mxu1 %v7135_v8  ;;  %7868 = vst [vmem:[#allocation78_spill] sm:$0xff] %v7264_v31  ;;  %3661 = vmatpush.msrb.mxu3 %v7264_v31  ;;  %v7309_v31 = vld [vmem:[%s7585_s7 + $0xa0] sm:$0xff] }
 0x360   : > { %v3159_v36 = vadd.f32 %v3157_v26, %v3146_v30  ;;  %v7271_v26 = vld [vmem:[%s7585_s7 + $0x18] sm:$0xff] }
 0x361   : > { %3587 = vmatpush.msrb.mxu1 %v7157_v18  ;;  %v7276_v30 = vld [vmem:[%s7585_s7 + $0x58] sm:$0xff]  ;;  %3555 = vmatpush.msrb.mxu0 %v7271_v26 }
 0x362   : > { %v3161_v27 = vsub.f32 %v3159_v36, %v4638_v42  ;;  %v7283_v42 = vld [vmem:[%s7585_s7 + $0xa8] sm:$0xff]  ;;  %v7288_v36 = vld [vmem:[%s7585_s7 + $0xf8] sm:$0xff] }
 0x363   : > { %3588 = vmatpush.msrb.mxu1 %v7184_v6  ;;  %7869 = vst [vmem:[#allocation79_spill] sm:$0xff] %v7288_v36  ;;  %3627 = vmatpush.msrb.mxu2 %v7283_v42 }
 0x364   : > { %3163 = vst.msk [vmem:[#allocation5 + $0x18] sm:$0x1f] %vm2573_vm13, %v3161_v27  ;;  %vm3165_vm2 = vcmp.gt.f32.partialorder %v3161_v27, 1.0  ;;  %3662 = vmatpush.msrb.mxu3 %v7288_v36  ;;  %3556 = vmatpush.msrb.mxu0 %v7299_v45  ;;  %v7316_v36 = vld [vmem:[%s7585_s7 + $0xf0] sm:$0xff] }
 0x365   : > { %v4640_v21 = vsel %vm3165_vm2, 1.0, %v7755_v53  ;;  %3589 = vmatpush.msrb.mxu1 %v7208_v33  ;;  %7870 = vst [vmem:[#allocation80_spill] sm:$0xff] %v7316_v36  ;;  %3628 = vmatpush.msrb.mxu2 %v7309_v31 }
 0x366   : > { %3172 = vst.msk [vmem:[#allocation6 + $0x18] sm:$0x1f] %vm2573_vm13, %v4640_v21  ;;  %3663 = vmatpush.msrb.mxu3 %v7316_v36  ;;  %3557 = vmatpush.msrb.mxu0 %v7321_v7 }
 0x367   : > { %3590 = vmatpush.msrb.mxu1 %v7230_v20  ;;  %3805 = vmatpush.msra.mxu2 %v6757_v28 }
 0x368   : > { %3834 = vmatpush.msra.mxu3 %v6745_v56  ;;  %3558 = vmatpush.msrb.mxu0 %v7330_v51 }
 0x369   : > { %3591 = vmatpush.msrb.mxu1 %v7254_v43  ;;  %3806 = vmatpush.msra.mxu2 %v6763_v23 }
 0x36a   : > { %3835 = vmatpush.msra.mxu3 %v6747_v61  ;;  %3689 = vmatpush.msra.mxu0 %v7337_v54  ;;  %v7354_v61 = vld [vmem:[%s7585_s7 + $0x178] sm:$0xff] }
 0x36b   : > { %3592 = vmatpush.msrb.mxu1 %v7276_v30  ;;  %3807 = vmatpush.msra.mxu2 %v6783_v49  ;;  %v7362_v49 = vld [vmem:[%s7585_s7 + $0x170] sm:$0xff] }
 0x36d   : > { %3593 = vmatpush.msrb.mxu1 %v7304_v46  ;;  %3808 = vmatpush.msra.mxu2 %v6796_v29  ;;  %v7380_v29 = vld [vmem:[%s7585_s7 + $0x160] sm:$0xff] }
 0x36f   : > { %3782 = vmatpush.msra.mxu1 %v6754_v17  ;;  %v7346_v17 = vld [vmem:[%s7585_s7 + $0x180] sm:$0xff]  ;;  %3809 = vmatpush.msra.mxu2 %v6807_v62 }
 0x370   : > { %3690 = vmatpush.msra.mxu0 %v7346_v17 }
 0x371   : > { %3783 = vmatpush.msra.mxu1 %v6761_v22  ;;  %v4822_v22 = vld [vmem:[#allocation14 + $0xa0] sm:$0xff]  ;;  %3810 = vmatpush.msra.mxu2 %v6822_v59 }
 0x372   : > { %3836 = vmatpush.msra.mxu3 %v4822_v22  ;;  %3691 = vmatpush.msra.mxu0 %v7354_v61 }
 0x373   : > { %3784 = vmatpush.msra.mxu1 %v6781_v60  ;;  %v4823_v60 = vld [vmem:[#allocation14 + $0x90] sm:$0xff]  ;;  %3811 = vmatpush.msra.mxu2 %v6831_v40 }
 0x374   : > { %3837 = vmatpush.msra.mxu3 %v4823_v60  ;;  %3692 = vmatpush.msra.mxu0 %v7362_v49 }
 0x375   : > { %3785 = vmatpush.msra.mxu1 %v6794_v44  ;;  %v7371_v44 = vld [vmem:[%s7585_s7 + $0x168] sm:$0xff]  ;;  %3812 = vmatpush.msra.mxu2 %v6839_v52  ;;  %v7871_v52 = vld [vmem:[#allocation29_spill] sm:$0xff] }
 0x376   : > { %3838 = vmatpush.msra.mxu3 %v6769_v9  ;;  %3693 = vmatpush.msra.mxu0 %v7371_v44 }
 0x377   : > { %3786 = vmatpush.msra.mxu1 %v6805_v58  ;;  %3813 = vmatpush.msra.mxu2 %v6852_v57 }
 0x378   : > { %3839 = vmatpush.msra.mxu3 %v6777_v19  ;;  %v7389_v19 = vld [vmem:[%s7585_s7 + $0x158] sm:$0xff]  ;;  %3694 = vmatpush.msra.mxu0 %v7380_v29 }
 0x379   : > { %3787 = vmatpush.msra.mxu1 %v6820_v37  ;;  %3814 = vmatpush.msra.mxu2 %v6869_v12 }
 0x37a   : > { %3840 = vmatpush.msra.mxu3 %v6785_v0  ;;  %v7398_v0 = vld [vmem:[%s7585_s7 + $0x150] sm:$0xff]  ;;  %3695 = vmatpush.msra.mxu0 %v7389_v19 }
 0x37b   : > { %3788 = vmatpush.msra.mxu1 %v6829_v50 }
 0x37c   : > { %3841 = vmatpush.msra.mxu3 %v6798_v32  ;;  %3696 = vmatpush.msra.mxu0 %v7398_v0 }
 0x37d   : > { %3789 = vmatpush.msra.mxu1 %v6837_v39  ;;  %v7407_v39 = vld [vmem:[%s7585_s7 + $0x148] sm:$0xff] }
 0x37e   : > { %3842 = vmatpush.msra.mxu3 %v6809_v5  ;;  %3697 = vmatpush.msra.mxu0 %v7407_v39  ;;  %v7872_v5 = vld [vmem:[#allocation37_spill] sm:$0xff] }
 0x37f   : > { %3790 = vmatpush.msra.mxu1 %v6848_v55  ;;  %v7416_v55 = vld [vmem:[%s7585_s7 + $0x140] sm:$0xff] }
 0x380   : > { %3843 = vmatpush.msra.mxu3 %v7871_v52  ;;  %3698 = vmatpush.msra.mxu0 %v7416_v55 }
 0x381   : > { %3791 = vmatpush.msra.mxu1 %v6867_v4  ;;  %v7874_v4 = vld [vmem:[#allocation30_spill] sm:$0xff] }
 0x382   : > { %3844 = vmatpush.msra.mxu3 %v7874_v4 }
 0x383   : > { %3792 = vmatpush.msra.mxu1 %v7872_v5 }
 0x394   : > { %v3305_v27 = vpop.f32.mrf.mxu2  ;;  %v3328_v21 = vpop.f32.mrf.mxu3 }
 0x3a7   : > { %v3253_v14 = vpop.f32.mrf.mxu0  ;;  %v3276_v10 = vpop.f32.mrf.mxu1 }
 0x3a8   : > { %v3306_v9 = vadd.f32 %v3305_v27, %v3253_v14  ;;  %v3329_v58 = vadd.f32 %v3328_v21, %v3276_v10  ;;  %v7873_v21 = vld [vmem:[#allocation38_spill] sm:$0xff] }
 0x3a9   : > { %3815 = vmatpush.msra.mxu2 %v7873_v21 }
 0x3ae   : > { %v3308_v56 = vpop.f32.mrf.mxu2  ;;  %v3331_v28 = vpop.f32.mrf.mxu3 }
 0x3af   : > { %v3256_v23 = vpop.f32.mrf.mxu0  ;;  %v3279_v36 = vpop.f32.mrf.mxu1 }
 0x3b0   : > { %v3309_v57 = vadd.f32 %v3308_v56, %v3256_v23  ;;  %v3332_v27 = vadd.f32 %v3331_v28, %v3279_v36  ;;  %v7878_v36 = vld [vmem:[#allocation49_spill] sm:$0xff] }
 0x3b6   : > { %v3471_v62 = vpop.f32.mrf.mxu2  ;;  %v3494_v22 = vpop.f32.mrf.mxu3 }
 0x3b7   : > { %v3386_v37 = vpop.f32.mrf.mxu0  ;;  %v3409_v59 = vpop.f32.mrf.mxu1 }
 0x3b8   : > { %v3415_v50 = vadd.f32 %v3386_v37, %v3306_v9  ;;  %v3416_v14 = vadd.f32 %v3409_v59, %v3329_v58  ;;  %v7875_v9 = vld [vmem:[#allocation42_spill] sm:$0xff]  ;;  %v7877_v37 = vld [vmem:[#allocation19_spill] sm:$0xff] }
 0x3b9   : > { %3793 = vmatpush.msra.mxu1 %v7875_v9  ;;  %3845 = vmatpush.msra.mxu3 %v7877_v37  ;;  %v3744_v9 = vld [vmem:[#allocation14 + $0xc8] sm:$0xff] }
 0x3ba   : > { %v3500_v40 = vadd.f32 %v3471_v62, %v3415_v50  ;;  %v3501_v10 = vadd.f32 %v3494_v22, %v3416_v14  ;;  %v7876_v22 = vld [vmem:[#allocation45_spill] sm:$0xff]  ;;  %v7879_v50 = vld [vmem:[#allocation50_spill] sm:$0xff]  ;;  %v7880_v14 = vld [vmem:[#allocation20_spill] sm:$0xff] }
 0x3bb   : > { %3816 = vmatpush.msra.mxu2 %v7876_v22  ;;  %3794 = vmatpush.msra.mxu1 %v7878_v36  ;;  %v7881_v36 = vld [vmem:[#allocation53_spill] sm:$0xff] }
 0x3bc   : > { %v3504_v32 = vmax.f32 %v3500_v40, %v3501_v10  ;;  %3846 = vmatpush.msra.mxu3 %v7880_v14  ;;  %v3516_v10 = vld [vmem:[#allocation7] sm:$0x1f] }
 0x3bd   : > { %3817 = vmatpush.msra.mxu2 %v7879_v50  ;;  %vm3517_vm3 = vcmp.gt.f32.partialorder %v3516_v10, 1.0  ;;  %v7883_v50 = vld [vmem:[#allocation33_spill] sm:$0xff]  ;;  %v7884_v14 = vld [vmem:[#allocation58_spill] sm:$0xff] }
 0x3be   : > { %3506 = vst [vmem:[#allocation9] sm:$0xff] %v3504_v32  ;;  %v3474_v59 = vpop.f32.mrf.mxu2  ;;  %v3497_v56 = vpop.f32.mrf.mxu3  ;;  %v4820_v32 = vld [vmem:[%s7584_s6] ss:$0 sm:$0xff]  ;;  %v4657_v4 = vsel %vm3517_vm3, 1.0, %v7755_v53 }
 0x3bf   : > { %v3389_v60 = vpop.f32.mrf.mxu0  ;;  %v3412_v12 = vpop.f32.mrf.mxu1 }
 0x3c0   : > { %v3417_v58 = vadd.f32 %v3389_v60, %v3309_v57  ;;  %v3418_v62 = vadd.f32 %v3412_v12, %v3332_v27  ;;  %v3520_v27 = vmul.f32 0.5, %v3516_v10 }
 0x3c2   : > { %v3502_v28 = vadd.f32 %v3474_v59, %v3417_v58  ;;  %v3503_v23 = vadd.f32 %v3497_v56, %v3418_v62  ;;  %v3742_v59 = vld [vmem:[#allocation14 + $0xb8] sm:$0xff]  ;;  %v3740_v56 = vld [vmem:[#allocation14 + $0xa8] sm:$0xff] }
 0x3c4   : > { %v3505_v40 = vmax.f32 %v3502_v28, %v3503_v23  ;;  %v7882_v28 = vld [vmem:[#allocation54_spill] sm:$0xff] }
 0x3c5   : > { %v3738_v23 = vld [vmem:[#allocation14 + $0x98] sm:$0xff] }
 0x3c6   : > { %3507 = vst [vmem:[#allocation9 + $0x8] sm:$0x3] %v3505_v40  ;;  %v7885_v40 = vld [vmem:[#allocation61_spill] sm:$0xff] }
 0x3cd   : > { %v3508_v52 = vld [vmem:[#allocation9] ss:$2 sm:$0x1f]  ;;  %v3509_v5 = vld [vmem:[#allocation9 + $0x1] ss:$2 sm:$0x1f] }
 0x3ce   : > { %v3510_v57 = vmax.f32 %v3508_v52, %v3509_v5  ;;  %v3736_v52 = vld [vmem:[#allocation14 + $0x88] sm:$0xff]  ;;  %v7887_v5 = vld [vmem:[#allocation22_spill] sm:$0xff] }
 0x3d0   : > { %v3515_v21 = vadd.f32 %v4820_v32, %v3510_v57  ;;  %v7886_v32 = vld [vmem:[#allocation34_spill] sm:$0xff]  ;;  %v7888_v57 = vld [vmem:[#allocation23_spill] sm:$0xff] }
 0x3d2   : > { %v3521_v60 = vadd.f32 %v3520_v27, %v3515_v21  ;;  %v7889_v27 = vld [vmem:[#allocation41_spill] sm:$0xff] }
 0x3d3   : > { %v7890_v21 = vld [vmem:[#allocation25_spill] sm:$0xff] }
 0x3d4   : > { %v3522_v12 = vsub.f32 %v3521_v60, %v4657_v4  ;;  %v3734_v4 = vld [vmem:[#allocation14 + $0x78] sm:$0xff] }
 0x3d5   : > { %v7891_v60 = vld [vmem:[#allocation26_spill] sm:$0xff] }
 0x3d6   : > { %3524 = vst.msk [vmem:[#allocation7] sm:$0x1f] %vm3523_vm4, %v3522_v12  ;;  %vm3525_vm6 = vcmp.gt.f32.partialorder %v3522_v12, 1.0  ;;  %v7892_v12 = vld [vmem:[#allocation46_spill] sm:$0xff] }
 0x3d7   : > { %v4658_v58 = vsel %vm3525_vm6, 1.0, %v7755_v53 }
 0x3d8   : > { %4659 = vmatmul.msk.f32.vlgmr.msrb.gmra.mxu0 %vm3539_vm5, %v4658_v58  ;;  %v3575_v62 = vrot.slane %v4658_v58, 1  ;;  %v3610_v22 = vrot.slane %v4658_v58, 2  ;;  %v3645_v37 = vrot.slane %v4658_v58, 3  ;;  %v3680_v10 = vrot.slane %v4658_v58, 4  ;;  %v3717_v58 = vld [vmem:[#allocation6 + $0x10] sm:$0xff] }
 0x3d9   : > { %3857 = vmatpush.msrb.mxu0 %v3744_v9  ;;  %v3745_v9 = vld [vmem:[#allocation6 + $0x11] sm:$0xff] }
 0x3da   : > { %4670 = vmatmul.msk.f32.vlgmr.msrb.gmra.mxu1 %vm3539_vm5, %v3575_v62  ;;  %4681 = vmatmul.msk.f32.vlgmr.msrb.gmra.mxu2 %vm3539_vm5, %v3610_v22  ;;  %v3732_v62 = vld [vmem:[#allocation14 + $0x68] sm:$0xff] }
 0x3db   : > { %4692 = vmatmul.msk.f32.vlgmr.msrb.gmra.mxu3 %vm3539_vm5, %v3645_v37  ;;  %3858 = vmatpush.msrb.mxu0 %v3742_v59  ;;  %v7893_v22 = vld [vmem:[#allocation28_spill] sm:$0xff]  ;;  %v7894_v37 = vld [vmem:[#allocation31_spill] sm:$0xff]  ;;  %v3730_v59 = vld [vmem:[#allocation14 + $0x58] sm:$0xff] }
 0x3dc   : > { %3914 = vmatpush.msrb.mxu1 %v7881_v36  ;;  %3937 = vmatpush.msrb.mxu2 %v7882_v28  ;;  %v7896_v36 = vld [vmem:[#allocation35_spill] sm:$0xff]  ;;  %v7897_v28 = vld [vmem:[#allocation36_spill] sm:$0xff] }
 0x3dd   : > { %3998 = vmatpush.msrb.mxu3 %v7883_v50  ;;  %3859 = vmatpush.msrb.mxu0 %v3740_v56  ;;  %v7895_v56 = vld [vmem:[#allocation57_spill] sm:$0xff] }
 0x3de   : > { %3915 = vmatpush.msrb.mxu1 %v7884_v14  ;;  %3938 = vmatpush.msrb.mxu2 %v7885_v40  ;;  %v7898_v50 = vld [vmem:[#allocation21_spill] sm:$0xff]  ;;  %v7899_v14 = vld [vmem:[#allocation40_spill] sm:$0xff]  ;;  %v7900_v40 = vld [vmem:[#allocation43_spill] sm:$0xff] }
 0x3df   : > { %3999 = vmatpush.msrb.mxu3 %v7886_v32  ;;  %3860 = vmatpush.msrb.mxu0 %v3738_v23  ;;  %v3728_v23 = vld [vmem:[#allocation14 + $0x48] sm:$0xff] }
 0x3e0   : > { %3916 = vmatpush.msrb.mxu1 %v7887_v5  ;;  %3939 = vmatpush.msrb.mxu2 %v7888_v57  ;;  %v7902_v32 = vld [vmem:[#allocation48_spill] sm:$0xff]  ;;  %v3746_v5 = vld [vmem:[#allocation6 + $0x19] sm:$0x3] }
 0x3e1   : > { %4000 = vmatpush.msrb.mxu3 %v7889_v27  ;;  %4703 = vmatmul.msk.f32.vlgmr.msra.gmra.mxu0 %vm3539_vm5, %v3680_v10  ;;  %v7901_v10 = vld [vmem:[#allocation24_spill] sm:$0xff]  ;;  %v3726_v57 = vld [vmem:[#allocation14 + $0x38] sm:$0xff]  ;;  %v7904_v27 = vld [vmem:[#allocation27_spill] sm:$0xff] }
 0x3e2   : > { %3861 = vmatpush.msrb.mxu0 %v3736_v52  ;;  %3917 = vmatpush.msrb.mxu1 %v7890_v21  ;;  %v7903_v52 = vld [vmem:[#allocation51_spill] sm:$0xff]  ;;  %v3718_v21 = vld [vmem:[#allocation6 + $0x18] sm:$0x3] }
 0x3e3   : > { %3940 = vmatpush.msrb.mxu2 %v7891_v60  ;;  %4001 = vmatpush.msrb.mxu3 %v7892_v12  ;;  %v7905_v60 = vld [vmem:[#allocation56_spill] sm:$0xff]  ;;  %v7906_v12 = vld [vmem:[#allocation59_spill] sm:$0xff] }
 0x3e4   : > { %4706 = vmatmul.msk.f32.vlgmr.msra.gmra.mxu1 %vm2571_vm10, %v3745_v9  ;;  %4708 = vmatmul.msk.f32.vlgmr.msra.gmra.mxu2 %vm2571_vm10, %v3745_v9  ;;  %v7907_v9 = vld [vmem:[#allocation32_spill] sm:$0xff] }
 0x3e5   : > { %4710 = vmatmul.msk.f32.vlgmr.msra.gmra.mxu3 %vm2571_vm10, %v3717_v58  ;;  %3862 = vmatpush.msrb.mxu0 %v3734_v4  ;;  %v3724_v4 = vld [vmem:[#allocation14 + $0x28] sm:$0xff] }
 0x3e6   : > { %3918 = vmatpush.msrb.mxu1 %v7893_v22  ;;  %3941 = vmatpush.msrb.mxu2 %v7894_v37  ;;  %v7908_v22 = vld [vmem:[#allocation63_spill] sm:$0xff]  ;;  %v7909_v37 = vld [vmem:[#allocation64_spill] sm:$0xff] }
 0x3e7   : > { %4002 = vmatpush.msrb.mxu3 %v7895_v56  ;;  %3863 = vmatpush.msrb.mxu0 %v3732_v62  ;;  %v3722_v62 = vld [vmem:[#allocation14 + $0x18] sm:$0xff]  ;;  %v3720_v56 = vld [vmem:[#allocation14 + $0x8] sm:$0xff] }
 0x3e8   : > { %3919 = vmatpush.msrb.mxu1 %v7896_v36  ;;  %3942 = vmatpush.msrb.mxu2 %v7897_v28  ;;  %v7911_v36 = vld [vmem:[#allocation65_spill] sm:$0xff]  ;;  %v7912_v28 = vld [vmem:[#allocation66_spill] sm:$0xff] }
 0x3e9   : > { %4003 = vmatpush.msrb.mxu3 %v7898_v50  ;;  %3864 = vmatpush.msrb.mxu0 %v3730_v59  ;;  %v7910_v59 = vld [vmem:[#allocation39_spill] sm:$0xff] }
 0x3ea   : > { %3920 = vmatpush.msrb.mxu1 %v7899_v14  ;;  %3943 = vmatpush.msrb.mxu2 %v7900_v40  ;;  %v7914_v50 = vld [vmem:[#allocation67_spill] sm:$0xff]  ;;  %v3988_v14 = vld [vmem:[#allocation14 + $0x338] sm:$0xff]  ;;  %v7915_v40 = vld [vmem:[#allocation68_spill] sm:$0xff] }
 0x3eb   : > { %4004 = vmatpush.msrb.mxu3 %v7901_v10  ;;  %3865 = vmatpush.msrb.mxu0 %v3728_v23  ;;  %v7913_v23 = vld [vmem:[#allocation44_spill] sm:$0xff] }
 0x3ec   : > { %3921 = vmatpush.msrb.mxu1 %v7902_v32  ;;  %3944 = vmatpush.msrb.mxu2 %v7903_v52  ;;  %v7916_v10 = vld [vmem:[#allocation52_spill] sm:$0xff]  ;;  %v7917_v32 = vld [vmem:[#allocation69_spill] sm:$0xff]  ;;  %v7918_v52 = vld [vmem:[#allocation70_spill] sm:$0xff] }
 0x3ed   : > { %4005 = vmatpush.msrb.mxu3 %v7904_v27  ;;  %4707 = vmatmul.msk.f32.gmra.mxu1 %vm2571_vm10, %v3746_v5  ;;  %v7919_v27 = vld [vmem:[#allocation60_spill] sm:$0xff] }
 0x3ee   : > { %4709 = vmatmul.msk.f32.gmra.mxu2 %vm2571_vm10, %v3746_v5  ;;  %4711 = vmatmul.msk.f32.gmra.mxu3 %vm2571_vm10, %v3718_v21  ;;  %v3877_v5 = vld [vmem:[#allocation6 + $0x12] sm:$0xff] }
 0x3ef   : > { %3866 = vmatpush.msrb.mxu0 %v3726_v57  ;;  %3922 = vmatpush.msrb.mxu1 %v7905_v60  ;;  %v3986_v57 = vld [vmem:[#allocation14 + $0x328] sm:$0xff]  ;;  %v3984_v60 = vld [vmem:[#allocation14 + $0x318] sm:$0xff] }
 0x3f0   : > { %3945 = vmatpush.msrb.mxu2 %v7906_v12  ;;  %4006 = vmatpush.msrb.mxu3 %v7907_v9  ;;  %v3980_v12 = vld [vmem:[#allocation14 + $0x2f8] sm:$0xff] }
 0x3f1   : > { %3867 = vmatpush.msrb.mxu0 %v3724_v4  ;;  %3923 = vmatpush.msrb.mxu1 %v7908_v22  ;;  %v3961_v4 = vld [vmem:[#allocation6 + $0x13] sm:$0xff] }
 0x3f2   : > { %3946 = vmatpush.msrb.mxu2 %v7909_v37  ;;  %4007 = vmatpush.msrb.mxu3 %v7910_v59  ;;  %v3878_v9 = vld [vmem:[#allocation6 + $0x1a] sm:$0x3] }
 0x3f3   : > { %3868 = vmatpush.msrb.mxu0 %v3722_v62  ;;  %3924 = vmatpush.msrb.mxu1 %v7911_v36 }
 0x3f4   : > { %3947 = vmatpush.msrb.mxu2 %v7912_v28  ;;  %4008 = vmatpush.msrb.mxu3 %v7913_v23 }
 0x3f5   : > { %3869 = vmatpush.msrb.mxu0 %v3720_v56  ;;  %3925 = vmatpush.msrb.mxu1 %v7914_v50 }
 0x3f6   : > { %3948 = vmatpush.msrb.mxu2 %v7915_v40  ;;  %4009 = vmatpush.msrb.mxu3 %v7916_v10 }
 0x3f7   : > { %4712 = vmatmul.msk.f32.vlgmr.msrb.gmra.mxu0 %vm2571_vm10, %v3717_v58  ;;  %3926 = vmatpush.msrb.mxu1 %v7917_v32  ;;  %v3982_v58 = vld [vmem:[#allocation14 + $0x308] sm:$0xff] }
 0x3f8   : > { %4021 = vmatpush.msra.mxu0 %v3988_v14  ;;  %3949 = vmatpush.msrb.mxu2 %v7918_v52 }
 0x3f9   : > { %4010 = vmatpush.msrb.mxu3 %v7919_v27  ;;  %4714 = vmatmul.msk.f32.vlgmr.msrb.gmra.mxu1 %vm2571_vm10, %v3877_v5 }
 0x3fa   : > { %4716 = vmatmul.msk.f32.vlgmr.msrb.gmra.mxu2 %vm2571_vm10, %v3877_v5  ;;  %4718 = vmatmul.msk.f32.vlgmr.msrb.gmra.mxu3 %vm2571_vm10, %v3961_v4 }
 0x3fb   : > { %4022 = vmatpush.msra.mxu0 %v3986_v57  ;;  %4089 = vmatpush.msra.mxu1 %v7130_v25  ;;  %v3978_v25 = vld [vmem:[#allocation14 + $0x2e8] sm:$0xff] }
 0x3fc   : > { %4123 = vmatpush.msra.mxu2 %v7095_v16  ;;  %4157 = vmatpush.msra.mxu3 %v7100_v34  ;;  %v3962_v16 = vld [vmem:[#allocation6 + $0x1b] sm:$0x3] }
 0x3fd   : > { %4023 = vmatpush.msra.mxu0 %v3984_v60  ;;  %4090 = vmatpush.msra.mxu1 %v7152_v1  ;;  %v3976_v34 = vld [vmem:[#allocation14 + $0x2d8] sm:$0xff]  ;;  %v7921_v1 = vld [vmem:[#allocation55_spill] sm:$0xff] }
 0x3fe   : > { %4124 = vmatpush.msra.mxu2 %v7113_v11  ;;  %4158 = vmatpush.msra.mxu3 %v7118_v3  ;;  %v3974_v11 = vld [vmem:[#allocation14 + $0x2c8] sm:$0xff]  ;;  %v3972_v3 = vld [vmem:[#allocation14 + $0x2b8] sm:$0xff] }
 0x3ff   : > { %4024 = vmatpush.msra.mxu0 %v3982_v58  ;;  %4091 = vmatpush.msra.mxu1 %v7179_v2  ;;  %v7927_v2 = vld [vmem:[#allocation75_spill] sm:$0xff] }
 0x400   : > { %4713 = vmatmul.msk.f32.gmra.mxu0 %vm2571_vm10, %v3718_v21  ;;  %4125 = vmatpush.msra.mxu2 %v7135_v8  ;;  %v3970_v8 = vld [vmem:[#allocation14 + $0x2a8] sm:$0xff] }
 0x401   : > { %4025 = vmatpush.msra.mxu0 %v3980_v12  ;;  %4715 = vmatmul.msk.f32.gmra.mxu1 %vm2571_vm10, %v3878_v9 }
 0x402   : > { %4717 = vmatmul.msk.f32.gmra.mxu2 %vm2571_vm10, %v3878_v9  ;;  %4719 = vmatmul.msk.f32.gmra.mxu3 %vm2571_vm10, %v3962_v16 }
 0x403   : > { %4026 = vmatpush.msra.mxu0 %v3978_v25  ;;  %4092 = vmatpush.msra.mxu1 %v7203_v63  ;;  %v7930_v63 = vld [vmem:[#allocation78_spill] sm:$0xff] }
 0x404   : > { %4159 = vmatpush.msra.mxu3 %v7140_v24  ;;  %4126 = vmatpush.msra.mxu2 %v7157_v18  ;;  %v7920_v24 = vld [vmem:[#allocation47_spill] sm:$0xff]  ;;  %v7922_v18 = vld [vmem:[#allocation62_spill] sm:$0xff] }
 0x405   : > { %4027 = vmatpush.msra.mxu0 %v3976_v34  ;;  %4093 = vmatpush.msra.mxu1 %v7225_v48 }
 0x406   : > { %4160 = vmatpush.msra.mxu3 %v7164_v41  ;;  %4127 = vmatpush.msra.mxu2 %v7184_v6  ;;  %v7924_v41 = vld [vmem:[#allocation72_spill] sm:$0xff] }
 0x407   : > { %4028 = vmatpush.msra.mxu0 %v3974_v11  ;;  %4094 = vmatpush.msra.mxu1 %v7247_v47  ;;  %v7928_v6 = vld [vmem:[#allocation76_spill] sm:$0xff] }
 0x408   : > { %4161 = vmatpush.msra.mxu3 %v7189_v13  ;;  %4128 = vmatpush.msra.mxu2 %v7208_v33  ;;  %v7929_v13 = vld [vmem:[#allocation77_spill] sm:$0xff]  ;;  %v7931_v33 = vld [vmem:[#allocation79_spill] sm:$0xff] }
 0x409   : > { %4029 = vmatpush.msra.mxu0 %v3972_v3  ;;  %4095 = vmatpush.msra.mxu1 %v7271_v26  ;;  %v4058_v11 = vld [vmem:[#allocation7 + $0x8] sm:$0x1f]  ;;  %v4821_v3 = vld [vmem:[%s7584_s6] ss:$0 sm:$0xff] }
 0x40a   : > { %4162 = vmatpush.msra.mxu3 %v7213_v15  ;;  %4129 = vmatpush.msra.mxu2 %v7230_v20  ;;  %v7932_v15 = vld [vmem:[#allocation80_spill] sm:$0xff] }
 0x40b   : > { %4030 = vmatpush.msra.mxu0 %v3970_v8  ;;  %4096 = vmatpush.msra.mxu1 %v7299_v45 }
 0x40c   : > { %4163 = vmatpush.msra.mxu3 %v7237_v35  ;;  %4130 = vmatpush.msra.mxu2 %v7254_v43  ;;  %v3704_v43 = vld [vmem:[#allocation8] sm:$0x1] }
 0x40d   : > { %4031 = vmatpush.msra.mxu0 %v7920_v24  ;;  %4097 = vmatpush.msra.mxu1 %v7321_v7  ;;  %v7923_v7 = vld [vmem:[#allocation71_spill] sm:$0xff]  ;;  %vm3705_vm7 = vcmp.gt.f32.partialorder %v3704_v43, 1.0 }
 0x40e   : > { %4164 = vmatpush.msra.mxu3 %v7259_v38  ;;  %4131 = vmatpush.msra.mxu2 %v7276_v30  ;;  %v3708_v30 = vmul.f32 0.5, %v3704_v43 }
 0x40f   : > { %4032 = vmatpush.msra.mxu0 %v7921_v1  ;;  %4098 = vmatpush.msra.mxu1 %v7330_v51  ;;  %v7926_v51 = vld [vmem:[#allocation74_spill] sm:$0xff] }
 0x410   : > { %4165 = vmatpush.msra.mxu3 %v7283_v42  ;;  %4132 = vmatpush.msra.mxu2 %v7304_v46  ;;  %v3528_v46 = vld [vmem:[%s7586_s8] sm:$0x1] }
 0x411   : > { %4225 = vmatpush.msrb.mxu1 %v7337_v54  ;;  %4033 = vmatpush.msra.mxu0 %v7922_v18  ;;  %v7925_v54 = vld [vmem:[#allocation73_spill] sm:$0xff]  ;;  %v4062_v18 = vmul.f32 0.5, %v4058_v11 }
 0x412   : > { %4720 = vmatmul.msk.f32.vlgmr.msra.gmra.mxu0 %vm2571_vm10, %v3961_v4  ;;  %4166 = vmatpush.msra.mxu3 %v7309_v31 }
 0x413   : > { %4226 = vmatpush.msrb.mxu1 %v7346_v17  ;;  %4191 = vmatpush.msrb.mxu0 %v7923_v7 }
 0x415   : > { %4227 = vmatpush.msrb.mxu1 %v7354_v61  ;;  %4192 = vmatpush.msrb.mxu0 %v7924_v41  ;;  %v4704_v61 = vsel %vm3705_vm7, 1.0, %v7755_v53 }
 0x417   : > { %4228 = vmatpush.msrb.mxu1 %v7362_v49  ;;  %4193 = vmatpush.msrb.mxu0 %v7925_v54 }
 0x419   : > { %4229 = vmatpush.msrb.mxu1 %v7371_v44  ;;  %4194 = vmatpush.msrb.mxu0 %v7926_v51 }
 0x41a   : > { %4721 = vmatmul.msk.f32.gmra.mxu0 %vm2571_vm10, %v3962_v16  ;;  %vm4059_vm10 = vcmp.gt.f32.partialorder %v4058_v11, 1.0 }
 0x41b   : > { %4230 = vmatpush.msrb.mxu1 %v7380_v29  ;;  %4195 = vmatpush.msrb.mxu0 %v7927_v2  ;;  %v4722_v41 = vsel %vm4059_vm10, 1.0, %v7755_v53 }
 0x41d   : > { %4231 = vmatpush.msrb.mxu1 %v7389_v19  ;;  %4196 = vmatpush.msrb.mxu0 %v7928_v6 }
 0x41f   : > { %4232 = vmatpush.msrb.mxu1 %v7398_v0  ;;  %4197 = vmatpush.msrb.mxu0 %v7929_v13 }
 0x421   : > { %4233 = vmatpush.msrb.mxu1 %v7407_v39  ;;  %4198 = vmatpush.msrb.mxu0 %v7930_v63 }
 0x423   : > { %4234 = vmatpush.msrb.mxu1 %v7416_v55  ;;  %4199 = vmatpush.msrb.mxu0 %v7931_v33 }
 0x425   : > { %4200 = vmatpush.msrb.mxu0 %v7932_v15  ;;  %v4069_v15 = vld [vmem:[%s7586_s8] sm:$0x1] }
 0x455   : > { %v3560_v48 = vpop.f32.mrf.mxu0 }
 0x456   : > { %v3563_v20 = vadd.f32 %v3560_v48, %v3528_v46 }
 0x457   : > { %v3595_v35 = vpop.f32.mrf.mxu1 }
 0x458   : > { %v3598_v45 = vadd.f32 %v3595_v35, %v3563_v20 }
 0x45d   : > { %v3630_v47 = vpop.f32.mrf.mxu2 }
 0x45e   : > { %v3633_v38 = vadd.f32 %v3630_v47, %v3598_v45  ;;  %v3665_v31 = vpop.f32.mrf.mxu3  ;;  %v3700_v42 = vpop.f32.mrf.mxu0  ;;  %v4241_v47 = vld [vmem:[#allocation8 + $0x1] sm:$0x1] }
 0x45f   : > { %vm4242_vm12 = vcmp.gt.f32.partialorder %v4241_v47, 1.0 }
 0x460   : > { %v3668_v26 = vadd.f32 %v3665_v31, %v3633_v38 }
 0x461   : > { %v3796_v19 = vpop.f32.mrf.mxu1 }
 0x462   : > { %v3703_v17 = vadd.f32 %v3700_v42, %v3668_v26  ;;  %v4245_v26 = vmul.f32 0.5, %v4241_v47 }
 0x464   : > { %v3709_v49 = vadd.f32 %v3708_v30, %v3703_v17  ;;  %v4769_v17 = vsel %vm4242_vm12, 1.0, %v7755_v53 }
 0x466   : > { %v3710_v44 = vsub.f32 %v3709_v49, %v4704_v61 }
 0x467   : > { %v3819_v0 = vpop.f32.mrf.mxu2 }
 0x468   : > { %3712 = vst.msk [vmem:[#allocation8] sm:$0x1] %vm3711_vm8, %v3710_v44  ;;  %vm3713_vm9 = vcmp.gt.f32.partialorder %v3710_v44, 1.0  ;;  %v3848_v39 = vpop.f32.mrf.mxu3 }
 0x469   : > { %v4705_v29 = vsel %vm3713_vm9, 1.0, %v7755_v53  ;;  %v3849_v28 = vadd.f32 %v3848_v39, %v3796_v19 }
 0x46a   : > { %3716 = vst.msk [vmem:[%s5031_s14] sm:$0x1] %vm3711_vm8, %v4705_v29  ;;  %v3799_v21 = vpop.f32.mrf.mxu1 }
 0x471   : > { %v3822_v62 = vpop.f32.mrf.mxu2  ;;  %v3851_v22 = vpop.f32.mrf.mxu3 }
 0x472   : > { %v3852_v27 = vadd.f32 %v3851_v22, %v3799_v21 }
 0x474   : > { %v3871_v55 = vpop.f32.mrf.mxu0 }
 0x475   : > { %v3872_v23 = vadd.f32 %v3871_v55, %v3819_v0 }
 0x476   : > { %v3928_v59 = vpop.f32.mrf.mxu1 }
 0x477   : > { %v3957_v50 = vadd.f32 %v3928_v59, %v3849_v28 }
 0x47d   : > { %v3874_v37 = vpop.f32.mrf.mxu0  ;;  %v3951_v56 = vpop.f32.mrf.mxu2 }
 0x47e   : > { %v4012_v36 = vpop.f32.mrf.mxu3  ;;  %v3958_v14 = vadd.f32 %v3951_v56, %v3872_v23  ;;  %v3931_v5 = vpop.f32.mrf.mxu1  ;;  %v3875_v4 = vadd.f32 %v3874_v37, %v3822_v62 }
 0x47f   : > { %v4041_v10 = vadd.f32 %v4012_v36, %v3957_v50  ;;  %v3959_v58 = vadd.f32 %v3931_v5, %v3852_v27 }
 0x485   : > { %v3954_v57 = vpop.f32.mrf.mxu2 }
 0x486   : > { %v4015_v60 = vpop.f32.mrf.mxu3  ;;  %v3960_v12 = vadd.f32 %v3954_v57, %v3875_v4 }
 0x487   : > { %v4043_v25 = vadd.f32 %v4015_v60, %v3959_v58 }
 0x48f   : > { %v4035_v40 = vpop.f32.mrf.mxu0 }
 0x490   : > { %v4042_v32 = vadd.f32 %v4035_v40, %v3958_v14 }
 0x492   : > { %v4045_v52 = vmax.f32 %v4041_v10, %v4042_v32 }
 0x494   : > { %4047 = vst [vmem:[#allocation9] sm:$0xff] %v4045_v52 }
 0x497   : > { %v4038_v9 = vpop.f32.mrf.mxu0 }
 0x498   : > { %v4044_v16 = vadd.f32 %v4038_v9, %v3960_v12 }
 0x49a   : > { %v4046_v34 = vmax.f32 %v4043_v25, %v4044_v16 }
 0x49c   : > { %4048 = vst [vmem:[#allocation9 + $0x8] sm:$0x3] %v4046_v34 }
 0x4a3   : > { %v4049_v8 = vld [vmem:[#allocation9] ss:$2 sm:$0x1f]  ;;  %v4050_v24 = vld [vmem:[#allocation9 + $0x1] ss:$2 sm:$0x1f] }
 0x4a4   : > { %v4051_v1 = vmax.f32 %v4049_v8, %v4050_v24 }
 0x4a6   : > { %v4056_v7 = vadd.f32 %v4821_v3, %v4051_v1 }
 0x4a8   : > { %v4063_v54 = vadd.f32 %v4062_v18, %v4056_v7 }
 0x4aa   : > { %v4064_v51 = vsub.f32 %v4063_v54, %v4722_v41 }
 0x4ac   : > { %4065 = vst.msk [vmem:[#allocation7 + $0x8] sm:$0x1f] %vm3523_vm4, %v4064_v51  ;;  %vm4066_vm11 = vcmp.gt.f32.partialorder %v4064_v51, 1.0 }
 0x4ad   : > { %v4723_v2 = vsel %vm4066_vm11, 1.0, %v7755_v53 }
 0x4ae   : > { %4724 = vmatmul.msk.f32.vlgmr.msra.gmra.mxu1 %vm3539_vm5, %v4723_v2  ;;  %v4114_v6 = vrot.slane %v4723_v2, 1  ;;  %v4148_v13 = vrot.slane %v4723_v2, 2  ;;  %v4182_v63 = vrot.slane %v4723_v2, 3  ;;  %v4216_v33 = vrot.slane %v4723_v2, 4 }
 0x4b0   : > { %4735 = vmatmul.msk.f32.vlgmr.msra.gmra.mxu2 %vm3539_vm5, %v4114_v6  ;;  %4746 = vmatmul.msk.f32.vlgmr.msra.gmra.mxu3 %vm3539_vm5, %v4148_v13 }
 0x4b1   : > { %4757 = vmatmul.msk.f32.vlgmr.msrb.gmra.mxu0 %vm3539_vm5, %v4182_v63 }
 0x4b6   : > { %4768 = vmatmul.msk.f32.vlgmr.msrb.gmra.mxu1 %vm3539_vm5, %v4216_v33 }
 0x52b   : > { %v4100_v46 = vpop.f32.mrf.mxu1 }
 0x52c   : > { %v4103_v48 = vadd.f32 %v4100_v46, %v4069_v15 }
 0x52e   : > { %v4202_v38 = vpop.f32.mrf.mxu0 }
 0x533   : > { %v4134_v20 = vpop.f32.mrf.mxu2  ;;  %v4168_v45 = vpop.f32.mrf.mxu3 }
 0x534   : > { %v4137_v35 = vadd.f32 %v4134_v20, %v4103_v48  ;;  %v4236_v30 = vpop.f32.mrf.mxu1 }
 0x536   : > { %v4171_v43 = vadd.f32 %v4168_v45, %v4137_v35 }
 0x538   : > { %v4205_v31 = vadd.f32 %v4202_v38, %v4171_v43 }
 0x53a   : > { %v4239_v42 = vadd.f32 %v4236_v30, %v4205_v31 }
 0x53c   : > { %v4246_v61 = vadd.f32 %v4245_v26, %v4239_v42 }
 0x53e   : > { %v4247_v49 = vsub.f32 %v4246_v61, %v4769_v17 }
 0x540   : > { %4248 = vst.msk [vmem:[#allocation8 + $0x1] sm:$0x1] %vm3711_vm8, %v4247_v49  ;;  %vm4249_vm13 = vcmp.gt.f32.partialorder %v4247_v49, 1.0 }
 0x541   : > { %v4770_v44 = vsel %vm4249_vm13, 1.0, %v7755_v53 }
 0x542   : > { %4252 = vst.msk [vmem:[%s5031_s14 + $0x1] sm:$0x1] %vm3711_vm8, %v4770_v44 }
 0x543 PF: > { %s21_s30 = sadd.s32 1, %s4928_s30  }
 0x544   : > { %p18_p8 = scmp.ge.s32.totalorder %s21_s30, 18  }
 0x546   :  { %20 = sbr.rel (!%p18_p8) target bundleno = 2 (0x2), region = 134 }
 0x54b   :  { %4272 = vsyncpa [#allocation11], 1 }
 0x54c   :  { %4274 = vsyncpa [#allocation11 + $0x1], 1 }
 0x54d   :  { %4275 = vsyncpa [#allocation13], 1 }

</bundles_post_ra>
